<compile_context>
chip_gen: v6e
topology: v6e:2x2x1
jax: 0.10.0
libtpu: 0.0.40
codegen_flags: <defaults>
</compile_context>

<pallas_src>
import math

import numpy as np
import jax
import jax.numpy as jnp
from jax.experimental import pallas as pl
from jax.experimental.pallas import tpu as pltpu

_LN_EPS = 1e-5
_SQRT_2_OVER_PI = 0.7978845608028654
_REF_PRECISION = jax.lax.Precision.HIGHEST


# ----------------------------- in-kernel math -----------------------------

def _gelu_tanh(x):
    # tanh-form GELU: 0.5*x*(1 + tanh(sqrt(2/pi)*(x + 0.044715 x^3))).
    # nn.GELU() default is the exact erf form; max abs deviation of the tanh form is
    # ~1e-3, absorbed by the bf16-matmul tolerance.  tanh runs on the EUP slot.
    return 0.5 * x * (1.0 + jnp.tanh(_SQRT_2_OVER_PI * (x + 0.044715 * x * x * x)))


def _block_kernel(x_ref, f2_ref, gi_ref, cw_ref, mm_ref,
                  w1_ref, b1_ref, w2_ref, vec_ref, o_ref):
    # x: (S, L) f32 with L = Bb*C lanes; each contiguous group of C lanes is one sample.
    x = x_ref[0]
    mm = mm_ref[...]                       # (L, L) bf16 block-diagonal group-mean matrix

    def group_ln(v, gamma, beta):
        # Per-sample LayerNorm over each C-lane group; stats via two INDEPENDENT bf16
        # MXU matmuls (mu and E[v^2]) so the second push is not serialized behind a
        # VALU subtract.  Normalization arithmetic stays in f32.
        vb = v.astype(jnp.bfloat16)
        v2b = (v * v).astype(jnp.bfloat16)
        mu = jnp.dot(vb, mm, preferred_element_type=jnp.float32)
        sq = jnp.dot(v2b, mm, preferred_element_type=jnp.float32)
        var = jnp.maximum(sq - mu * mu, 0.0)   # tiny cancellation risk, eps below
        return (v - mu) * jax.lax.rsqrt(var + _LN_EPS) * gamma + beta

    # --- LayerNorm 1 ---
    u = group_ln(x, vec_ref[0], vec_ref[1])

    # --- GlobalFilter: fused rfft2 -> complex weight -> fused irfft2 (ortho) ---
    # Forward DFT: one stacked f32 matmul producing [Xr; Xi] = (2*KFp, L); rows beyond
    # the true KF frequencies are explicit zeros (host-side padding to a 128 multiple).
    xf = jnp.dot(f2_ref[...], u, preferred_element_type=jnp.float32)
    kf = xf.shape[0] // 2
    xr, xi = xf[:kf], xf[kf:]
    cw = cw_ref[...]                       # stacked complex weight [Wr; Wi], (2*KFp, L)
    wr, wi = cw[:kf], cw[kf:]
    y = jnp.concatenate([xr * wr - xi * wi,           # real part
                         xr * wi + xi * wr], axis=0)  # imag part
    # Inverse DFT: one stacked f32 matmul with [G_real | -G_imag] (S, 2*KFp).
    v = jnp.dot(gi_ref[...], y, preferred_element_type=jnp.float32)

    # --- LayerNorm 2 ---
    v = group_ln(v, vec_ref[2], vec_ref[3])

    # --- MLP: Linear -> GELU(tanh) -> Linear, bf16 operands / f32 accumulation.
    # w1/w2 are block-diagonal kron(I_Bb, W) so the packed lane layout is preserved;
    # the off-diagonal zeros are wasted MACs (documented, acceptable post-bf16).
    h = jnp.dot(v.astype(jnp.bfloat16), w1_ref[...],
                preferred_element_type=jnp.float32) + b1_ref[...]
    h = _gelu_tanh(h)
    m = jnp.dot(h.astype(jnp.bfloat16), w2_ref[...],
                preferred_element_type=jnp.float32) + vec_ref[4]

    # --- residual (DropPath p=0.0 => Identity) ---
    o_ref[0] = (x + m).astype(o_ref.dtype)


# ----------------------------- host-side constant packing -----------------------------

def make_dft_matrices(H, W):
    """Real/imag Kronecker matrices implementing ortho rfft2 / irfft2 exactly."""
    Wf = W // 2 + 1
    k1 = np.arange(H)
    n1 = np.arange(H)
    k2 = np.arange(Wf)
    n2 = np.arange(W)

    EH = np.exp(-2j * np.pi * np.outer(k1, n1) / H)                 # (H, H)
    EW = np.exp(-2j * np.pi * np.outer(k2, n2) / W)                 # (Wf, W)
    F2 = np.kron(EH, EW) / np.sqrt(H * W)                           # (H*Wf, H*W)

    alpha = np.full((Wf,), 2.0)
    alpha[0] = 1.0
    if W % 2 == 0:
        alpha[-1] = 1.0
    IH = np.exp(+2j * np.pi * np.outer(n1, k1) / H)                 # (H, H)
    IW = np.exp(+2j * np.pi * np.outer(n2, k2) / W) * alpha[None]   # (W, Wf)
    G2 = np.kron(IH, IW) / np.sqrt(H * W)                           # (H*W, H*Wf)
    return (F2.real.astype(np.float32), F2.imag.astype(np.float32),
            G2.real.astype(np.float32), G2.imag.astype(np.float32))


def init_params(key, dim, hidden, H, W):
    Wf = W // 2 + 1
    ks = jax.random.split(key, 5)
    return {
        # GlobalFilter.complex_weight: randn(h, w, dim, 2) * 0.02
        "cw": jax.random.normal(ks[0], (H, Wf, dim, 2), jnp.float32) * 0.02,
        # nn.LayerNorm defaults: weight=1, bias=0
        "ln1_g": jnp.ones((1, dim), jnp.float32),
        "ln1_b": jnp.zeros((1, dim), jnp.float32),
        "ln2_g": jnp.ones((1, dim), jnp.float32),
        "ln2_b": jnp.zeros((1, dim), jnp.float32),
        # MLP linears (deterministic synthetic init); stored as (in, out)
        "w1": jax.random.normal(ks[1], (dim, hidden), jnp.float32) / np.sqrt(dim),
        "b1": jax.random.normal(ks[2], (1, hidden), jnp.float32) * 0.02,
        "w2": jax.random.normal(ks[3], (hidden, dim), jnp.float32) / np.sqrt(hidden),
        "b2": jax.random.normal(ks[4], (1, dim), jnp.float32) * 0.02,
    }


def _pack_constants(params, H, W, C, Bb):
    """Build the grid-invariant kernel operands for the lane-packed layout."""
    Wf = W // 2 + 1
    KF = H * Wf
    # Pad each (real / imag) half so the stacked height 2*KFp is a multiple of 128:
    # gi_stk becomes lane-dense and the inverse-DFT contraction has no masked lanes.
    KFp = ((KF + 63) // 64) * 64
    S = H * W
    L = Bb * C
    hidden = np.asarray(params["w1"]).shape[1]

    f2r, f2i, g2r, g2i = make_dft_matrices(H, W)

    f2_stk = np.zeros((2 * KFp, S), np.float32)                     # [F_real; 0; F_imag; 0]
    f2_stk[:KF] = f2r
    f2_stk[KFp:KFp + KF] = f2i

    gi_stk = np.zeros((S, 2 * KFp), np.float32)                     # [G_real | 0 | -G_imag | 0]
    gi_stk[:, :KF] = g2r
    gi_stk[:, KFp:KFp + KF] = -g2i

    wr = np.asarray(params["cw"][..., 0]).reshape(KF, C)
    wi = np.asarray(params["cw"][..., 1]).reshape(KF, C)
    cw_stk = np.zeros((2 * KFp, L), np.float32)
    cw_stk[:KF] = np.tile(wr, (1, Bb))
    cw_stk[KFp:KFp + KF] = np.tile(wi, (1, Bb))

    # Block-diagonal group-mean matrix (bf16; 1/C is exactly representable for pow2 C).
    m_mean = np.kron(np.eye(Bb, dtype=np.float32),
                     np.full((C, C), 1.0 / C, np.float32))          # (L, L)

    eye_b = np.eye(Bb, dtype=np.float32)
    w1_bd = np.kron(eye_b, np.asarray(params["w1"], np.float32))    # (Bb*C, Bb*hidden)
    w2_bd = np.kron(eye_b, np.asarray(params["w2"], np.float32))    # (Bb*hidden, Bb*C)
    b1_t = np.tile(np.asarray(params["b1"], np.float32), (1, Bb))   # (1, Bb*hidden)

    # Merge the small per-channel vectors into one packed constant:
    # rows = [ln1_g, ln1_b, ln2_g, ln2_b, b2], each tiled to Bb*C lanes.
    vec_pack = np.concatenate(
        [np.tile(np.asarray(params[k], np.float32), (1, Bb))
         for k in ("ln1_g", "ln1_b", "ln2_g", "ln2_b", "b2")], axis=0)  # (5, L)

    return [
        jnp.asarray(f2_stk),                               # f32 (DFT kept full precision)
        jnp.asarray(gi_stk),                               # f32
        jnp.asarray(cw_stk),                               # f32 (elementwise only)
        jnp.asarray(m_mean, dtype=jnp.bfloat16),           # bf16 MXU operand
        jnp.asarray(w1_bd, dtype=jnp.bfloat16),            # bf16 MXU operand
        jnp.asarray(b1_t),                                 # f32
        jnp.asarray(w2_bd, dtype=jnp.bfloat16),            # bf16 MXU operand
        jnp.asarray(vec_pack),                             # f32
    ]


def _const_index_map(ndim):
    return lambda b: (0,) * ndim


# ----------------------------- packing / target selection -----------------------------

def _device_kind():
    try:
        return jax.devices()[0].device_kind.lower()
    except Exception:
        return ""


def _select_packing(B, C):
    """Pick Bb (samples packed into lanes) and grid size G (with batch padding)."""
    kind = _device_kind()
    wide_mxu = ("v6" in kind) or ("v7" in kind)     # 256-wide MXU generations
    dual_core = "v7" in kind                        # 2 TensorCores per chip

    def bb_for(lanes):
        # smallest Bb such that Bb*C is a multiple of `lanes` (lane-dense tiles)
        return lanes // math.gcd(C, lanes)

    candidates = ([bb_for(256)] if wide_mxu else []) + [bb_for(128)]
    for idx, bb in enumerate(candidates):
        g = -(-B // bb)                             # cdiv: pad batch instead of shrinking Bb
        if dual_core and g < 2 and idx + 1 < len(candidates):
            continue                                # keep >=2 grid steps so both TCs work
        return bb, g
    bb = candidates[-1]
    return bb, -(-B // bb)


# ----------------------------- kernel builder (hoisted + jitted) -----------------------------

def make_block_forward(params, B, H, W, C):
    """Build constants + pallas_call once for (params, shape); return a jitted forward."""
    S = H * W
    Bb, G = _select_packing(B, C)
    L = Bb * C
    Bpad = G * Bb

    consts = _pack_constants(params, H, W, C, Bb)

    data_spec = pl.BlockSpec((1, S, L), lambda b: (b, 0, 0))
    const_specs = [pl.BlockSpec(a.shape, _const_index_map(a.ndim)) for a in consts]

    kernel_fn = pl.pallas_call(
        _block_kernel,
        out_shape=jax.ShapeDtypeStruct((G, S, L), jnp.float32),
        grid=(G,),
        in_specs=[data_spec] + const_specs,
        out_specs=pl.BlockSpec((1, S, L), lambda b: (b, 0, 0)),
        compiler_params=pltpu.CompilerParams(
            dimension_semantics=("parallel",),
            vmem_limit_bytes=32 * 1024 * 1024),
    )

    @jax.jit
    def forward(x):
        xp = x
        if Bpad != B:
            pad = jnp.zeros((Bpad - B, H, W, C), x.dtype)
            xp = jnp.concatenate([xp, pad], axis=0)
        # Pack Bb batch elements into the lane dimension: lane = b_local*C + c.
        xp = xp.reshape(G, Bb, S, C).transpose(0, 2, 1, 3).reshape(G, S, L)
        out = kernel_fn(xp, *consts)
        out = out.reshape(G, S, Bb, C).transpose(0, 2, 1, 3).reshape(Bpad, H, W, C)
        return out[:B]

    return forward


# ----------------------------- pure-JAX reference -----------------------------

def reference_forward(x, p):
    B, H, W, C = x.shape

    def ln(v, g, b):
        mu = v.mean(-1, keepdims=True)
        d = v - mu
        var = (d * d).mean(-1, keepdims=True)
        return d * jax.lax.rsqrt(var + _LN_EPS) * g + b

    u = ln(x, p["ln1_g"][0], p["ln1_b"][0])
    spec = jnp.fft.rfft2(u, axes=(1, 2), norm="ortho")
    wc = p["cw"][..., 0] + 1j * p["cw"][..., 1]
    spec = spec * wc[None]
    v = jnp.fft.irfft2(spec, s=(H, W), axes=(1, 2), norm="ortho")
    v = ln(v, p["ln2_g"][0], p["ln2_b"][0])
    h = jnp.dot(v, p["w1"], precision=_REF_PRECISION) + p["b1"][0]
    h = jax.nn.gelu(h, approximate=False)
    m = jnp.dot(h, p["w2"], precision=_REF_PRECISION) + p["b2"][0]
    return x + m


# ----------------------------- main -----------------------------

if __name__ == "__main__":
    # h=14, w=W//2+1=8 matches the Block defaults; B=8, C=32 so 4 (v5e) or 8 (v6e/v7x)
    # samples are packed into the lane dimension per grid step.
    B, H, W, C = 8, 14, 14, 32
    mlp_ratio = 4.0
    hidden = int(C * mlp_ratio)

    key = jax.random.PRNGKey(0)
    kx, kp = jax.random.split(key)
    x = jax.random.normal(kx, (B, H, W, C), jnp.float32)
    params = init_params(kp, C, hidden, H, W)

    block_forward = make_block_forward(params, B, H, W, C)
    out = jax.block_until_ready(block_forward(x))

    ref = reference_forward(x, params)
    err = float(jnp.max(jnp.abs(out - ref)))
    # Tolerance covers bf16 MXU operands (LN stats + MLP weights, ~1e-2 worst-case on
    # O(1) activations) plus the tanh-GELU approximation (~1e-3) versus the
    # Precision.HIGHEST f32 exact-GELU reference; structural bugs give O(1) errors.
    assert err < 5e-2, f"kernel/reference mismatch: max abs err = {err}"

    print("KERNEL_OK")
</pallas_src>

<mosaic_0001>
module attributes {stable_mosaic.version = 11 : i64} {
  func.func @_block_kernel(%arg0: i32, %arg1: memref<1x196x128xf32, #tpu.memory_space<vmem>>, %arg2: memref<256x196xf32, #tpu.memory_space<vmem>>, %arg3: memref<196x256xf32, #tpu.memory_space<vmem>>, %arg4: memref<256x128xf32, #tpu.memory_space<vmem>>, %arg5: memref<128x128xbf16, #tpu.memory_space<vmem>>, %arg6: memref<128x512xbf16, #tpu.memory_space<vmem>>, %arg7: memref<1x512xf32, #tpu.memory_space<vmem>>, %arg8: memref<512x128xbf16, #tpu.memory_space<vmem>>, %arg9: memref<5x128xf32, #tpu.memory_space<vmem>>, %arg10: memref<1x196x128xf32, #tpu.memory_space<vmem>>) attributes {dimension_semantics = [#tpu.dimension_semantics<parallel>], iteration_bounds = array<i64: 2>, scalar_prefetch = 0 : i64, scratch_operands = 0 : i64, tpu.core_type = #tpu.core_type<tc>, window_params = [{transform_indices = @transform_0, window_bounds = array<i64: 1, 196, 128>}, {pipeline_mode = #tpu.pipeline_mode<synchronous>, transform_indices = @transform_1, window_bounds = array<i64: 256, 196>}, {pipeline_mode = #tpu.pipeline_mode<synchronous>, transform_indices = @transform_2, window_bounds = array<i64: 196, 256>}, {pipeline_mode = #tpu.pipeline_mode<synchronous>, transform_indices = @transform_3, window_bounds = array<i64: 256, 128>}, {pipeline_mode = #tpu.pipeline_mode<synchronous>, transform_indices = @transform_4, window_bounds = array<i64: 128, 128>}, {pipeline_mode = #tpu.pipeline_mode<synchronous>, transform_indices = @transform_5, window_bounds = array<i64: 128, 512>}, {pipeline_mode = #tpu.pipeline_mode<synchronous>, transform_indices = @transform_6, window_bounds = array<i64: 1, 512>}, {pipeline_mode = #tpu.pipeline_mode<synchronous>, transform_indices = @transform_7, window_bounds = array<i64: 512, 128>}, {pipeline_mode = #tpu.pipeline_mode<synchronous>, transform_indices = @transform_8, window_bounds = array<i64: 5, 128>}, {transform_indices = @transform_9, window_bounds = array<i64: 1, 196, 128>}]} {
    %c0 = arith.constant 0 : index
    %c0_0 = arith.constant 0 : index
    %c0_1 = arith.constant 0 : index
    %0 = vector.load %arg1[%c0, %c0_0, %c0_1] : memref<1x196x128xf32, #tpu.memory_space<vmem>>, vector<1x196x128xf32>
    %1 = vector.shape_cast %0 : vector<1x196x128xf32> to vector<196x128xf32>
    %c0_2 = arith.constant 0 : index
    %c0_3 = arith.constant 0 : index
    %2 = vector.load %arg5[%c0_2, %c0_3] : memref<128x128xbf16, #tpu.memory_space<vmem>>, vector<128x128xbf16>
    %c0_4 = arith.constant 0 : index
    %c0_5 = arith.constant 0 : index
    %3 = vector.load %arg9[%c0_4, %c0_5] : memref<5x128xf32, #tpu.memory_space<vmem>>, vector<1x128xf32>
    %4 = vector.shape_cast %3 : vector<1x128xf32> to vector<128xf32>
    %c1 = arith.constant 1 : index
    %c0_6 = arith.constant 0 : index
    %5 = vector.load %arg9[%c1, %c0_6] : memref<5x128xf32, #tpu.memory_space<vmem>>, vector<1x128xf32>
    %6 = vector.shape_cast %5 : vector<1x128xf32> to vector<128xf32>
    %7 = arith.truncf %1 : vector<196x128xf32> to vector<196x128xbf16>
    %8 = arith.mulf %1, %1 : vector<196x128xf32>
    %9 = arith.truncf %8 : vector<196x128xf32> to vector<196x128xbf16>
    %cst = arith.constant dense<0.000000e+00> : vector<196x128xf32>
    %10 = tpu.matmul %7, %2, %cst {dimension_numbers = #tpu.dot_dimension_numbers<[1], [0], [0], [1], [0, 0, 1, 1], [], []>} : vector<196x128xbf16>, vector<128x128xbf16>, vector<196x128xf32> -> vector<196x128xf32>
    %cst_7 = arith.constant dense<0.000000e+00> : vector<196x128xf32>
    %11 = tpu.matmul %9, %2, %cst_7 {dimension_numbers = #tpu.dot_dimension_numbers<[1], [0], [0], [1], [0, 0, 1, 1], [], []>} : vector<196x128xbf16>, vector<128x128xbf16>, vector<196x128xf32> -> vector<196x128xf32>
    %12 = arith.mulf %10, %10 : vector<196x128xf32>
    %13 = arith.subf %11, %12 : vector<196x128xf32>
    %cst_8 = arith.constant 0.000000e+00 : f32
    %14 = vector.broadcast %cst_8 : f32 to vector<196x128xf32>
    %15 = arith.maximumf %13, %14 : vector<196x128xf32>
    %16 = arith.subf %1, %10 : vector<196x128xf32>
    %cst_9 = arith.constant 9.99999974E-6 : f32
    %17 = vector.broadcast %cst_9 : f32 to vector<196x128xf32>
    %18 = arith.addf %15, %17 : vector<196x128xf32>
    %19 = math.rsqrt %18 : vector<196x128xf32>
    %20 = arith.mulf %16, %19 : vector<196x128xf32>
    %21 = vector.shape_cast %4 : vector<128xf32> to vector<1x128xf32>
    %22 = vector.broadcast %21 : vector<1x128xf32> to vector<196x128xf32>
    %23 = arith.mulf %20, %22 : vector<196x128xf32>
    %24 = vector.shape_cast %6 : vector<128xf32> to vector<1x128xf32>
    %25 = vector.broadcast %24 : vector<1x128xf32> to vector<196x128xf32>
    %26 = arith.addf %23, %25 : vector<196x128xf32>
    %c0_10 = arith.constant 0 : index
    %c0_11 = arith.constant 0 : index
    %27 = vector.load %arg2[%c0_10, %c0_11] : memref<256x196xf32, #tpu.memory_space<vmem>>, vector<256x196xf32>
    %cst_12 = arith.constant dense<0.000000e+00> : vector<256x128xf32>
    %28 = tpu.matmul %27, %26, %cst_12 {dimension_numbers = #tpu.dot_dimension_numbers<[1], [0], [0], [1], [0, 0, 1, 1], [], []>} : vector<256x196xf32>, vector<196x128xf32>, vector<256x128xf32> -> vector<256x128xf32>
    %29 = vector.extract_strided_slice %28 {offsets = [0, 0], sizes = [128, 128], strides = [1, 1]} : vector<256x128xf32> to vector<128x128xf32>
    %30 = vector.extract_strided_slice %28 {offsets = [128, 0], sizes = [128, 128], strides = [1, 1]} : vector<256x128xf32> to vector<128x128xf32>
    %c0_13 = arith.constant 0 : index
    %c0_14 = arith.constant 0 : index
    %31 = vector.load %arg4[%c0_13, %c0_14] : memref<256x128xf32, #tpu.memory_space<vmem>>, vector<256x128xf32>
    %32 = vector.extract_strided_slice %31 {offsets = [0, 0], sizes = [128, 128], strides = [1, 1]} : vector<256x128xf32> to vector<128x128xf32>
    %33 = vector.extract_strided_slice %31 {offsets = [128, 0], sizes = [128, 128], strides = [1, 1]} : vector<256x128xf32> to vector<128x128xf32>
    %34 = arith.mulf %29, %32 : vector<128x128xf32>
    %35 = arith.mulf %30, %33 : vector<128x128xf32>
    %36 = arith.subf %34, %35 : vector<128x128xf32>
    %37 = arith.mulf %29, %33 : vector<128x128xf32>
    %38 = arith.mulf %30, %32 : vector<128x128xf32>
    %39 = arith.addf %37, %38 : vector<128x128xf32>
    %40 = tpu.concatenate %36, %39 in 0 : vector<128x128xf32>, vector<128x128xf32> -> vector<256x128xf32>
    %c0_15 = arith.constant 0 : index
    %c0_16 = arith.constant 0 : index
    %41 = vector.load %arg3[%c0_15, %c0_16] : memref<196x256xf32, #tpu.memory_space<vmem>>, vector<196x256xf32>
    %cst_17 = arith.constant dense<0.000000e+00> : vector<196x128xf32>
    %42 = tpu.matmul %41, %40, %cst_17 {dimension_numbers = #tpu.dot_dimension_numbers<[1], [0], [0], [1], [0, 0, 1, 1], [], []>} : vector<196x256xf32>, vector<256x128xf32>, vector<196x128xf32> -> vector<196x128xf32>
    %c2 = arith.constant 2 : index
    %c0_18 = arith.constant 0 : index
    %43 = vector.load %arg9[%c2, %c0_18] : memref<5x128xf32, #tpu.memory_space<vmem>>, vector<1x128xf32>
    %44 = vector.shape_cast %43 : vector<1x128xf32> to vector<128xf32>
    %c3 = arith.constant 3 : index
    %c0_19 = arith.constant 0 : index
    %45 = vector.load %arg9[%c3, %c0_19] : memref<5x128xf32, #tpu.memory_space<vmem>>, vector<1x128xf32>
    %46 = vector.shape_cast %45 : vector<1x128xf32> to vector<128xf32>
    %47 = arith.truncf %42 : vector<196x128xf32> to vector<196x128xbf16>
    %48 = arith.mulf %42, %42 : vector<196x128xf32>
    %49 = arith.truncf %48 : vector<196x128xf32> to vector<196x128xbf16>
    %cst_20 = arith.constant dense<0.000000e+00> : vector<196x128xf32>
    %50 = tpu.matmul %47, %2, %cst_20 {dimension_numbers = #tpu.dot_dimension_numbers<[1], [0], [0], [1], [0, 0, 1, 1], [], []>} : vector<196x128xbf16>, vector<128x128xbf16>, vector<196x128xf32> -> vector<196x128xf32>
    %cst_21 = arith.constant dense<0.000000e+00> : vector<196x128xf32>
    %51 = tpu.matmul %49, %2, %cst_21 {dimension_numbers = #tpu.dot_dimension_numbers<[1], [0], [0], [1], [0, 0, 1, 1], [], []>} : vector<196x128xbf16>, vector<128x128xbf16>, vector<196x128xf32> -> vector<196x128xf32>
    %52 = arith.mulf %50, %50 : vector<196x128xf32>
    %53 = arith.subf %51, %52 : vector<196x128xf32>
    %cst_22 = arith.constant 0.000000e+00 : f32
    %54 = vector.broadcast %cst_22 : f32 to vector<196x128xf32>
    %55 = arith.maximumf %53, %54 : vector<196x128xf32>
    %56 = arith.subf %42, %50 : vector<196x128xf32>
    %cst_23 = arith.constant 9.99999974E-6 : f32
    %57 = vector.broadcast %cst_23 : f32 to vector<196x128xf32>
    %58 = arith.addf %55, %57 : vector<196x128xf32>
    %59 = math.rsqrt %58 : vector<196x128xf32>
    %60 = arith.mulf %56, %59 : vector<196x128xf32>
    %61 = vector.shape_cast %44 : vector<128xf32> to vector<1x128xf32>
    %62 = vector.broadcast %61 : vector<1x128xf32> to vector<196x128xf32>
    %63 = arith.mulf %60, %62 : vector<196x128xf32>
    %64 = vector.shape_cast %46 : vector<128xf32> to vector<1x128xf32>
    %65 = vector.broadcast %64 : vector<1x128xf32> to vector<196x128xf32>
    %66 = arith.addf %63, %65 : vector<196x128xf32>
    %67 = arith.truncf %66 : vector<196x128xf32> to vector<196x128xbf16>
    %c0_24 = arith.constant 0 : index
    %c0_25 = arith.constant 0 : index
    %68 = vector.load %arg6[%c0_24, %c0_25] : memref<128x512xbf16, #tpu.memory_space<vmem>>, vector<128x512xbf16>
    %cst_26 = arith.constant dense<0.000000e+00> : vector<196x512xf32>
    %69 = tpu.matmul %67, %68, %cst_26 {dimension_numbers = #tpu.dot_dimension_numbers<[1], [0], [0], [1], [0, 0, 1, 1], [], []>} : vector<196x128xbf16>, vector<128x512xbf16>, vector<196x512xf32> -> vector<196x512xf32>
    %c0_27 = arith.constant 0 : index
    %c0_28 = arith.constant 0 : index
    %70 = vector.load %arg7[%c0_27, %c0_28] : memref<1x512xf32, #tpu.memory_space<vmem>>, vector<1x512xf32>
    %71 = vector.broadcast %70 : vector<1x512xf32> to vector<196x512xf32>
    %72 = arith.addf %69, %71 : vector<196x512xf32>
    %cst_29 = arith.constant 5.000000e-01 : f32
    %73 = vector.broadcast %cst_29 : f32 to vector<196x512xf32>
    %74 = arith.mulf %73, %72 : vector<196x512xf32>
    %cst_30 = arith.constant 4.471500e-02 : f32
    %75 = vector.broadcast %cst_30 : f32 to vector<196x512xf32>
    %76 = arith.mulf %75, %72 : vector<196x512xf32>
    %77 = arith.mulf %76, %72 : vector<196x512xf32>
    %78 = arith.mulf %77, %72 : vector<196x512xf32>
    %79 = arith.addf %72, %78 : vector<196x512xf32>
    %cst_31 = arith.constant 0.797884583 : f32
    %80 = vector.broadcast %cst_31 : f32 to vector<196x512xf32>
    %81 = arith.mulf %80, %79 : vector<196x512xf32>
    %82 = math.tanh %81 : vector<196x512xf32>
    %cst_32 = arith.constant 1.000000e+00 : f32
    %83 = vector.broadcast %cst_32 : f32 to vector<196x512xf32>
    %84 = arith.addf %83, %82 : vector<196x512xf32>
    %85 = arith.mulf %74, %84 : vector<196x512xf32>
    %86 = arith.truncf %85 : vector<196x512xf32> to vector<196x512xbf16>
    %c0_33 = arith.constant 0 : index
    %c0_34 = arith.constant 0 : index
    %87 = vector.load %arg8[%c0_33, %c0_34] : memref<512x128xbf16, #tpu.memory_space<vmem>>, vector<512x128xbf16>
    %cst_35 = arith.constant dense<0.000000e+00> : vector<196x128xf32>
    %88 = tpu.matmul %86, %87, %cst_35 {dimension_numbers = #tpu.dot_dimension_numbers<[1], [0], [0], [1], [0, 0, 1, 1], [], []>} : vector<196x512xbf16>, vector<512x128xbf16>, vector<196x128xf32> -> vector<196x128xf32>
    %c4 = arith.constant 4 : index
    %c0_36 = arith.constant 0 : index
    %89 = vector.load %arg9[%c4, %c0_36] : memref<5x128xf32, #tpu.memory_space<vmem>>, vector<1x128xf32>
    %90 = vector.shape_cast %89 : vector<1x128xf32> to vector<128xf32>
    %91 = vector.shape_cast %90 : vector<128xf32> to vector<1x128xf32>
    %92 = vector.broadcast %91 : vector<1x128xf32> to vector<196x128xf32>
    %93 = arith.addf %88, %92 : vector<196x128xf32>
    %94 = arith.addf %1, %93 : vector<196x128xf32>
    %c0_37 = arith.constant 0 : index
    %c0_38 = arith.constant 0 : index
    %c0_39 = arith.constant 0 : index
    %95 = vector.load %arg10[%c0_37, %c0_38, %c0_39] : memref<1x196x128xf32, #tpu.memory_space<vmem>>, vector<1x196x128xf32>
    %96 = vector.shape_cast %95 : vector<1x196x128xf32> to vector<196x128xf32>
    %97 = vector.shape_cast %94 : vector<196x128xf32> to vector<1x196x128xf32>
    tpu.vector_store %arg10[%c0_37, %c0_38, %c0_39], %97 {strides = array<i32>} : memref<1x196x128xf32, #tpu.memory_space<vmem>>, vector<1x196x128xf32>,
    return
  }
  func.func @transform_0(%arg0: i32) -> (i32, i32, i32) {
    %c0_i32 = arith.constant 0 : i32
    %c0_i32_0 = arith.constant 0 : i32
    %c0_i32_1 = arith.constant 0 : i32
    return %arg0, %c0_i32, %c0_i32_0 : i32, i32, i32
  }
  func.func @transform_1(%arg0: i32) -> (i32, i32) {
    %c0_i32 = arith.constant 0 : i32
    %c0_i32_0 = arith.constant 0 : i32
    %c0_i32_1 = arith.constant 0 : i32
    return %c0_i32, %c0_i32_0 : i32, i32
  }
  func.func @transform_2(%arg0: i32) -> (i32, i32) {
    %c0_i32 = arith.constant 0 : i32
    %c0_i32_0 = arith.constant 0 : i32
    %c0_i32_1 = arith.constant 0 : i32
    return %c0_i32, %c0_i32_0 : i32, i32
  }
  func.func @transform_3(%arg0: i32) -> (i32, i32) {
    %c0_i32 = arith.constant 0 : i32
    %c0_i32_0 = arith.constant 0 : i32
    %c0_i32_1 = arith.constant 0 : i32
    return %c0_i32, %c0_i32_0 : i32, i32
  }
  func.func @transform_4(%arg0: i32) -> (i32, i32) {
    %c0_i32 = arith.constant 0 : i32
    %c0_i32_0 = arith.constant 0 : i32
    %c0_i32_1 = arith.constant 0 : i32
    return %c0_i32, %c0_i32_0 : i32, i32
  }
  func.func @transform_5(%arg0: i32) -> (i32, i32) {
    %c0_i32 = arith.constant 0 : i32
    %c0_i32_0 = arith.constant 0 : i32
    %c0_i32_1 = arith.constant 0 : i32
    return %c0_i32, %c0_i32_0 : i32, i32
  }
  func.func @transform_6(%arg0: i32) -> (i32, i32) {
    %c0_i32 = arith.constant 0 : i32
    %c0_i32_0 = arith.constant 0 : i32
    %c0_i32_1 = arith.constant 0 : i32
    return %c0_i32, %c0_i32_0 : i32, i32
  }
  func.func @transform_7(%arg0: i32) -> (i32, i32) {
    %c0_i32 = arith.constant 0 : i32
    %c0_i32_0 = arith.constant 0 : i32
    %c0_i32_1 = arith.constant 0 : i32
    return %c0_i32, %c0_i32_0 : i32, i32
  }
  func.func @transform_8(%arg0: i32) -> (i32, i32) {
    %c0_i32 = arith.constant 0 : i32
    %c0_i32_0 = arith.constant 0 : i32
    %c0_i32_1 = arith.constant 0 : i32
    return %c0_i32, %c0_i32_0 : i32, i32
  }
  func.func @transform_9(%arg0: i32) -> (i32, i32, i32) {
    %c0_i32 = arith.constant 0 : i32
    %c0_i32_0 = arith.constant 0 : i32
    %c0_i32_1 = arith.constant 0 : i32
    return %arg0, %c0_i32, %c0_i32_0 : i32, i32, i32
  }
}

</mosaic_0001>

<bundles_post_ra>
// kernel: forward.1
= control target key start
LH: loop header
LB: loop body
LE: loop exit
PB: predicated region body
PF: predicated region fallthrough
CT: control target
= control target key end

     0   :  { %s5622_s30 = smov 0   ;;  %s9218_s0 = inlined_call_operand.vmem [shape: f32[2,196,128], index: 0, kind: input, shape index: {}]   ;;  %s9219_s1 = inlined_call_operand.vmem [shape: f32[256,196], index: 1, kind: input, shape index: {}]   ;;  %s9220_s2 = inlined_call_operand.vmem [shape: f32[196,256], index: 2, kind: input, shape index: {}]   ;;  %s9221_s3 = inlined_call_operand.vmem [shape: f32[256,128], index: 3, kind: input, shape index: {}]   ;;  %s9222_s4 = inlined_call_operand.vmem [shape: bf16[128,128], index: 4, kind: input, shape index: {}]   ;;  %s9223_s5 = inlined_call_operand.vmem [shape: bf16[128,512], index: 5, kind: input, shape index: {}]   ;;  %s9224_s6 = inlined_call_operand.vmem [shape: f32[1,512], index: 6, kind: input, shape index: {}]   ;;  %s9225_s7 = inlined_call_operand.vmem [shape: bf16[512,128], index: 7, kind: input, shape index: {}]   ;;  %s9226_s8 = inlined_call_operand.vmem [shape: f32[5,128], index: 8, kind: input, shape index: {}]   ;;  %s9227_s9 = inlined_call_operand.vmem [shape: f32[2,196,128], index: 9, kind: output, shape index: {}]  }
   0x1 LB: > { %s4436_s10 = sadd.s32 4294967295, %s5567_s30   ;;  %p4440_p0 = scmp.ge.s32.totalorder %s5567_s30, 1  ;;  %s5567_s30 = sphi %s5622_s30, %s19_s30  }
   0x2   : > { %p287_p1 = scmp.lt.s32.totalorder %s5567_s30, 3 }
   0x4   : > { %p288_p2 = pnand %p4440_p0, %p287_p1 }
   0x6   : > { %291 = sbr.rel (%p288_p2) target bundleno = 1873 (0x751), region = 56 }
   0xb   : > { %v5127_v0 = vld [vmem:[%s9222_s4 + $0x38] sm:$0xff]   ;;  %v9228_v1 = vmov 0.0   ;;  %v5128_v2 = vld [vmem:[%s9222_s4 + $0x30] sm:$0xff]   ;;  %vm5570_vm0 = vmmov 0   ;;  %p323_p3 = scmp.lt.s32.totalorder %s4436_s10, 1  ;;  %v5129_v3 = vld [vmem:[%s9222_s4 + $0x28] sm:$0xff]  }
   0xc   : > { %4827 = vmatprep.subr.bf16.mxu0 %v9228_v1  ;;  %4895 = vmatprep.subr.bf16.mxu1 %v9228_v1  ;;  %v5130_v4 = vld [vmem:[%s9222_s4 + $0x20] sm:$0xff]   ;;  %v5131_v5 = vld [vmem:[%s9222_s4 + $0x18] sm:$0xff]   ;;  %v5132_v6 = vld [vmem:[%s9222_s4 + $0x10] sm:$0xff]   ;;  %vm1045_vm1 = vcmask 556032   ;;  %vm1142_vm2 = vcmask 1043456  }
   0xd   : > { %4828 = vmatpush3.bf16.msra.mxu0 %v5127_v0  ;;  %4896 = vmatpush3.bf16.msra.mxu1 %v5127_v0  ;;  %s9698_s10 = smov (!%p323_p3, %s4436_s10), 1  ;;  %v5133_v7 = vld [vmem:[%s9222_s4 + $0x8] sm:$0xff]   ;;  %v5134_v10 = vld [vmem:[%s9222_s4] sm:$0xff]  }
   0xe   : > { %4829 = vmatprep.subr.bf16.mxu0 %v9228_v1  ;;  %4897 = vmatprep.subr.bf16.mxu1 %v9228_v1  ;;  %s5115_s19 = smul.u32 200, %s9698_s10 }
   0xf   : > { %4843 = vmatprep.mubr.msk.bf16.mxu0 %vm5570_vm0, %v9228_v1  ;;  %4911 = vmatprep.mubr.msk.bf16.mxu1 %vm5570_vm0, %v9228_v1 }
  0x10   : > { %s5670_s26 = scalar_lea.vmem %s9218_s0, %s5115_s19  ;;  %s9140_s12 = scalar_lea.vmem %s9227_s9, %s5115_s19 }
  0x11   : > { %4830 = vmatpush3.bf16.msra.mxu0 %v5128_v2  ;;  %4898 = vmatpush3.bf16.msra.mxu1 %v5128_v2  ;;  %v5678_v8 = vld [vmem:[%s5670_s26] sm:$0xff]  ;;  %v5681_v9 = vld [vmem:[%s5670_s26 + $0x8] sm:$0xff]  ;;  %v5695_v13 = vld [vmem:[%s5670_s26 + $0x10] sm:$0xff] }
  0x12   : > { %4831 = vmatprep.subr.bf16.mxu0 %v9228_v1  ;;  %4899 = vmatprep.subr.bf16.mxu1 %v9228_v1  ;;  %v390_v11 = vmul.f32 %v5678_v8, %v5678_v8  ;;  %v391_v12 = vmul.f32 %v5681_v9, %v5681_v9  ;;  %v5698_v14 = vld [vmem:[%s5670_s26 + $0x18] sm:$0xff]  ;;  %v377_v15 = vpack.c.bf16 %v5681_v9, %v5678_v8  ;;  %v5713_v19 = vld [vmem:[%s5670_s26 + $0x20] sm:$0xff]  ;;  %v5716_v20 = vld [vmem:[%s5670_s26 + $0x28] sm:$0xff] }
  0x13   : > { %v392_v17 = vmul.f32 %v5695_v13, %v5695_v13  ;;  %v393_v18 = vmul.f32 %v5698_v14, %v5698_v14  ;;  %v378_v21 = vpack.c.bf16 %v5698_v14, %v5695_v13  ;;  %v394_v23 = vmul.f32 %v5713_v19, %v5713_v19  ;;  %v5729_v25 = vld [vmem:[%s5670_s26 + $0x30] sm:$0xff]  ;;  %v5732_v26 = vld [vmem:[%s5670_s26 + $0x38] sm:$0xff]  ;;  %v5747_v33 = vld [vmem:[%s5670_s26 + $0x40] sm:$0xff] }
  0x14   : > { %v415_v16 = vpack.c.bf16 %v391_v12, %v390_v11  ;;  %v395_v24 = vmul.f32 %v5716_v20, %v5716_v20  ;;  %v379_v27 = vpack.c.bf16 %v5716_v20, %v5713_v19  ;;  %v396_v29 = vmul.f32 %v5729_v25, %v5729_v25  ;;  %v5750_v34 = vld [vmem:[%s5670_s26 + $0x48] sm:$0xff]  ;;  %v5763_v39 = vld [vmem:[%s5670_s26 + $0x50] sm:$0xff]  ;;  %v5766_v40 = vld [vmem:[%s5670_s26 + $0x58] sm:$0xff] }
  0x15   : > { %4832 = vmatpush3.bf16.msra.mxu0 %v5129_v3  ;;  %4900 = vmatpush3.bf16.msra.mxu1 %v5129_v3  ;;  %v416_v22 = vpack.c.bf16 %v393_v18, %v392_v17  ;;  %v397_v30 = vmul.f32 %v5732_v26, %v5732_v26  ;;  %v380_v31 = vpack.c.bf16 %v5732_v26, %v5729_v25  ;;  %v5779_v45 = vld [vmem:[%s5670_s26 + $0x60] sm:$0xff]  ;;  %v5782_v46 = vld [vmem:[%s5670_s26 + $0x68] sm:$0xff]  ;;  %v5795_v51 = vld [vmem:[%s5670_s26 + $0x70] sm:$0xff] }
  0x16   : > { %4833 = vmatprep.subr.bf16.mxu0 %v9228_v1  ;;  %4901 = vmatprep.subr.bf16.mxu1 %v9228_v1  ;;  %v417_v28 = vpack.c.bf16 %v395_v24, %v394_v23  ;;  %v398_v35 = vmul.f32 %v5747_v33, %v5747_v33  ;;  %v399_v36 = vmul.f32 %v5750_v34, %v5750_v34  ;;  %v5798_v52 = vld [vmem:[%s5670_s26 + $0x78] sm:$0xff]  ;;  %v5811_v57 = vld [vmem:[%s5670_s26 + $0x80] sm:$0xff]  ;;  %v5814_v58 = vld [vmem:[%s5670_s26 + $0x88] sm:$0xff] }
  0x17   : > { %v418_v32 = vpack.c.bf16 %v397_v30, %v396_v29  ;;  %v381_v37 = vpack.c.bf16 %v5750_v34, %v5747_v33  ;;  %v400_v41 = vmul.f32 %v5763_v39, %v5763_v39  ;;  %v401_v42 = vmul.f32 %v5766_v40, %v5766_v40  ;;  %9330 = vst [vmem:[#allocation2_spill] sm:$0xff] %v5811_v57  ;;  %v5827_v63 = vld [vmem:[%s5670_s26 + $0x90] sm:$0xff]  ;;  %v5830_v0 = vld [vmem:[%s5670_s26 + $0x98] sm:$0xff]  ;;  %v5875_v24 = vld [vmem:[%s5670_s26 + $0xc0] sm:$0xf] }
  0x18   : > { %v419_v38 = vpack.c.bf16 %v399_v36, %v398_v35  ;;  %v382_v43 = vpack.c.bf16 %v5766_v40, %v5763_v39  ;;  %v402_v47 = vmul.f32 %v5779_v45, %v5779_v45  ;;  %v403_v48 = vmul.f32 %v5782_v46, %v5782_v46  ;;  %v5862_v17 = vld [vmem:[%s5670_s26 + $0xb8] sm:$0xff] }
  0x19   : > { %4834 = vmatpush3.bf16.msra.mxu0 %v5130_v4  ;;  %4902 = vmatpush3.bf16.msra.mxu1 %v5130_v4  ;;  %v420_v44 = vpack.c.bf16 %v401_v42, %v400_v41  ;;  %v383_v49 = vpack.c.bf16 %v5782_v46, %v5779_v45  ;;  %v404_v53 = vmul.f32 %v5795_v51, %v5795_v51 }
  0x1a   : > { %4835 = vmatprep.subr.bf16.mxu0 %v9228_v1  ;;  %4903 = vmatprep.subr.bf16.mxu1 %v9228_v1  ;;  %v421_v50 = vpack.c.bf16 %v403_v48, %v402_v47  ;;  %v405_v54 = vmul.f32 %v5798_v52, %v5798_v52  ;;  %v384_v55 = vpack.c.bf16 %v5798_v52, %v5795_v51 }
  0x1b   : > { %v406_v59 = vmul.f32 %v5811_v57, %v5811_v57  ;;  %v407_v60 = vmul.f32 %v5814_v58, %v5814_v58  ;;  %v385_v61 = vpack.c.bf16 %v5814_v58, %v5811_v57  ;;  %v408_v2 = vmul.f32 %v5827_v63, %v5827_v63 }
  0x1c   : > { %v422_v56 = vpack.c.bf16 %v405_v54, %v404_v53  ;;  %v409_v3 = vmul.f32 %v5830_v0, %v5830_v0  ;;  %v386_v4 = vpack.c.bf16 %v5830_v0, %v5827_v63 }
  0x1d   : > { %4836 = vmatpush3.bf16.msra.mxu0 %v5131_v5  ;;  %4904 = vmatpush3.bf16.msra.mxu1 %v5131_v5  ;;  %v423_v62 = vpack.c.bf16 %v407_v60, %v406_v59 }
  0x1e   : > { %4837 = vmatprep.subr.bf16.mxu0 %v9228_v1  ;;  %4905 = vmatprep.subr.bf16.mxu1 %v9228_v1  ;;  %v424_v5 = vpack.c.bf16 %v409_v3, %v408_v2 }
  0x21   : > { %4838 = vmatpush3.bf16.msra.mxu0 %v5132_v6  ;;  %4906 = vmatpush3.bf16.msra.mxu1 %v5132_v6  ;;  %v5843_v6 = vld [vmem:[%s5670_s26 + $0xa0] sm:$0xff] }
  0x22   : > { %4839 = vmatprep.subr.bf16.mxu0 %v9228_v1  ;;  %4907 = vmatprep.subr.bf16.mxu1 %v9228_v1 }
  0x25   : > { %4840 = vmatpush3.bf16.msra.mxu0 %v5133_v7  ;;  %4908 = vmatpush3.bf16.msra.mxu1 %v5133_v7  ;;  %v5846_v7 = vld [vmem:[%s5670_s26 + $0xa8] sm:$0xff] }
  0x26   : > { %4841 = vmatprep.subr.bf16.mxu0 %v9228_v1  ;;  %4909 = vmatprep.subr.bf16.mxu1 %v9228_v1  ;;  %v411_v11 = vmul.f32 %v5846_v7, %v5846_v7  ;;  %v387_v12 = vpack.c.bf16 %v5846_v7, %v5843_v6 }
  0x29   : > { %4842 = vmatpush3.bf16.msra.mxu0 %v5134_v10  ;;  %4910 = vmatpush3.bf16.msra.mxu1 %v5134_v10  ;;  %v410_v10 = vmul.f32 %v5843_v6, %v5843_v6 }
  0x2a   : > { %1146 = vmatprep.subr.mxu0 %v9228_v1  ;;  %1549 = vmatprep.subr.mxu1 %v9228_v1 }
  0x2c   : > { %4844 = vmatmul.mubr.bf16.vlgmr.msra.gmra.mxu0 %v377_v15  ;;  %4912 = vmatmul.mubr.bf16.vlgmr.msra.gmra.mxu1 %v415_v16  ;;  %v425_v15 = vpack.c.bf16 %v411_v11, %v410_v10  ;;  %v5859_v16 = vld [vmem:[%s5670_s26 + $0xb0] sm:$0xff] }
  0x2d   : > { %4847 = vmatprep.mubr.msk.bf16.mxu0 %vm5570_vm0, %v9228_v1  ;;  %4915 = vmatprep.mubr.msk.bf16.mxu1 %vm5570_vm0, %v9228_v1  ;;  %v412_v18 = vmul.f32 %v5859_v16, %v5859_v16 }
  0x34   : > { %4848 = vmatmul.mubr.bf16.gmra.mxu0 %v378_v21  ;;  %4916 = vmatmul.mubr.bf16.gmra.mxu1 %v416_v22  ;;  %v413_v21 = vmul.f32 %v5862_v17, %v5862_v17  ;;  %v388_v22 = vpack.c.bf16 %v5862_v17, %v5859_v16 }
  0x35   : > { %4851 = vmatprep.mubr.msk.bf16.mxu0 %vm5570_vm0, %v9228_v1  ;;  %4919 = vmatprep.mubr.msk.bf16.mxu1 %vm5570_vm0, %v9228_v1 }
  0x36   : > { %v426_v23 = vpack.c.bf16 %v413_v21, %v412_v18 }
  0x3c   : > { %4852 = vmatmul.mubr.bf16.gmra.mxu0 %v379_v27  ;;  %4920 = vmatmul.mubr.bf16.gmra.mxu1 %v417_v28  ;;  %v414_v27 = vmul.f32 %v5875_v24, %v5875_v24  ;;  %v389_v28 = vpack.c.bf16 %v5875_v24, %v5875_v24 }
  0x3d   : > { %4855 = vmatprep.mubr.msk.bf16.mxu0 %vm5570_vm0, %v9228_v1  ;;  %4923 = vmatprep.mubr.msk.bf16.mxu1 %vm5570_vm0, %v9228_v1 }
  0x3e   : > { %v427_v29 = vpack.c.bf16 %v414_v27, %v414_v27 }
  0x44   : > { %4856 = vmatmul.mubr.bf16.gmra.mxu0 %v380_v31  ;;  %4924 = vmatmul.mubr.bf16.gmra.mxu1 %v418_v32 }
  0x45   : > { %4859 = vmatprep.mubr.msk.bf16.mxu0 %vm5570_vm0, %v9228_v1  ;;  %4927 = vmatprep.mubr.msk.bf16.mxu1 %vm5570_vm0, %v9228_v1 }
  0x4c   : > { %4860 = vmatmul.mubr.bf16.gmra.mxu0 %v381_v37  ;;  %4928 = vmatmul.mubr.bf16.gmra.mxu1 %v419_v38 }
  0x4d   : > { %4863 = vmatprep.mubr.msk.bf16.mxu0 %vm5570_vm0, %v9228_v1  ;;  %4931 = vmatprep.mubr.msk.bf16.mxu1 %vm5570_vm0, %v9228_v1 }
  0x54   : > { %4864 = vmatmul.mubr.bf16.gmra.mxu0 %v382_v43  ;;  %4932 = vmatmul.mubr.bf16.gmra.mxu1 %v420_v44 }
  0x55   : > { %4867 = vmatprep.mubr.msk.bf16.mxu0 %vm5570_vm0, %v9228_v1  ;;  %4935 = vmatprep.mubr.msk.bf16.mxu1 %vm5570_vm0, %v9228_v1 }
  0x5c   : > { %4868 = vmatmul.mubr.bf16.gmra.mxu0 %v383_v49  ;;  %4936 = vmatmul.mubr.bf16.gmra.mxu1 %v421_v50 }
  0x5d   : > { %4871 = vmatprep.mubr.msk.bf16.mxu0 %vm5570_vm0, %v9228_v1  ;;  %4939 = vmatprep.mubr.msk.bf16.mxu1 %vm5570_vm0, %v9228_v1 }
  0x64   : > { %4872 = vmatmul.mubr.bf16.gmra.mxu0 %v384_v55  ;;  %4940 = vmatmul.mubr.bf16.gmra.mxu1 %v422_v56 }
  0x65   : > { %4875 = vmatprep.mubr.msk.bf16.mxu0 %vm5570_vm0, %v9228_v1  ;;  %4943 = vmatprep.mubr.msk.bf16.mxu1 %vm5570_vm0, %v9228_v1 }
  0x6c   : > { %4876 = vmatmul.mubr.bf16.gmra.mxu0 %v385_v61  ;;  %4944 = vmatmul.mubr.bf16.gmra.mxu1 %v423_v62 }
  0x6d   : > { %4879 = vmatprep.mubr.msk.bf16.mxu0 %vm5570_vm0, %v9228_v1  ;;  %4947 = vmatprep.mubr.msk.bf16.mxu1 %vm5570_vm0, %v9228_v1 }
  0x74   : > { %4880 = vmatmul.mubr.bf16.gmra.mxu0 %v386_v4  ;;  %4948 = vmatmul.mubr.bf16.gmra.mxu1 %v424_v5  ;;  %v982_v5 = vld [vmem:[%s9219_s1 + $0x8] sm:$0xff] }
  0x75   : > { %4883 = vmatprep.mubr.msk.bf16.mxu0 %vm5570_vm0, %v9228_v1  ;;  %4951 = vmatprep.mubr.msk.bf16.mxu1 %vm5570_vm0, %v9228_v1 }
  0x7c   : > { %4884 = vmatmul.mubr.bf16.gmra.mxu0 %v387_v12  ;;  %4952 = vmatmul.mubr.bf16.gmra.mxu1 %v425_v15 }
  0x7d   : > { %4887 = vmatprep.mubr.msk.bf16.mxu0 %vm5570_vm0, %v9228_v1  ;;  %4955 = vmatprep.mubr.msk.bf16.mxu1 %vm5570_vm0, %v9228_v1 }
  0x84   : > { %4888 = vmatmul.mubr.bf16.gmra.mxu0 %v388_v22  ;;  %4956 = vmatmul.mubr.bf16.gmra.mxu1 %v426_v23 }
  0x85   : > { %4891 = vmatprep.mubr.msk.bf16.mxu0 %vm5570_vm0, %v9228_v1  ;;  %4959 = vmatprep.mubr.msk.bf16.mxu1 %vm5570_vm0, %v9228_v1 }
  0x8c   : > { %4892 = vmatmul.mubr.bf16.gmra.mxu0 %v389_v28  ;;  %4960 = vmatmul.mubr.bf16.gmra.mxu1 %v427_v29 }
  0x8d   : > { %4454 = vmatprep.mubr.msk.f32.mxu0 %vm1045_vm1, %v982_v5 }
  0xec   : > { %v510_v30 = vpop.f32.mrf.mxu0  ;;  %v646_v31 = vpop.f32.mrf.mxu1 }
  0xed   : > { %v748_v32 = vmul.f32 %v510_v30, %v510_v30 }
  0xee   : > { %v4845_v35 = vpop.f32.mrf.mxu0  ;;  %v4913_v36 = vpop.f32.mrf.mxu1 }
  0xef   : > { %v773_v37 = vsub.f32 %v646_v31, %v748_v32  ;;  %v823_v36 = vsub.f32 %v5678_v8, %v510_v30 }
  0xf0   : > { %v513_v38 = vpop.f32.mrf.mxu0  ;;  %v649_v41 = vpop.f32.mrf.mxu1 }
  0xf1   : > { %v798_v42 = vmax.f32 %v773_v37, 0.0  ;;  %v749_v43 = vmul.f32 %v513_v38, %v513_v38 }
  0xf2   : > { %v4846_v44 = vpop.f32.mrf.mxu0  ;;  %v4914_v47 = vpop.f32.mrf.mxu1 }
  0xf3   : > { %v848_v48 = vadd.f32 1e-05, %v798_v42  ;;  %v774_v49 = vsub.f32 %v649_v41, %v749_v43 }
  0xf4   : > { %v518_v50 = vpop.f32.mrf.mxu0  ;;  %v654_v53 = vpop.f32.mrf.mxu1 }
  0xf5   : > { %5215 = vrsqrt.f32 %v848_v48  ;;  %v799_v54 = vmax.f32 %v774_v49, 0.0  ;;  %v750_v55 = vmul.f32 %v518_v50, %v518_v50 }
  0xf6   : > { %v4849_v56 = vpop.f32.mrf.mxu0  ;;  %v4917_v59 = vpop.f32.mrf.mxu1 }
  0xf7   : > { %v849_v60 = vadd.f32 1e-05, %v799_v54  ;;  %v775_v61 = vsub.f32 %v654_v53, %v750_v55  ;;  %v824_v53 = vsub.f32 %v5681_v9, %v513_v38 }
  0xf8   : > { %v521_v62 = vpop.f32.mrf.mxu0  ;;  %v657_v2 = vpop.f32.mrf.mxu1 }
  0xf9   : > { %5217 = vrsqrt.f32 %v849_v60  ;;  %v800_v3 = vmax.f32 %v775_v61, 0.0  ;;  %v751_v4 = vmul.f32 %v521_v62, %v521_v62  ;;  %v825_v60 = vsub.f32 %v5695_v13, %v518_v50 }
  0xfa   : > { %v4850_v10 = vpop.f32.mrf.mxu0  ;;  %v4918_v11 = vpop.f32.mrf.mxu1  ;;  %v826_v38 = vsub.f32 %v5698_v14, %v521_v62 }
  0xfb   : > { %v850_v12 = vadd.f32 1e-05, %v800_v3  ;;  %v776_v15 = vsub.f32 %v657_v2, %v751_v4 }
  0xfc   : > { %v526_v18 = vpop.f32.mrf.mxu0  ;;  %v662_v21 = vpop.f32.mrf.mxu1 }
  0xfd   : > { %5219 = vrsqrt.f32 %v850_v12  ;;  %v801_v22 = vmax.f32 %v776_v15, 0.0  ;;  %v752_v23 = vmul.f32 %v526_v18, %v526_v18  ;;  %v827_v13 = vsub.f32 %v5713_v19, %v526_v18 }
  0xfe   : > { %v4853_v27 = vpop.f32.mrf.mxu0  ;;  %v4921_v28 = vpop.f32.mrf.mxu1 }
  0xff   : > { %v851_v29 = vadd.f32 1e-05, %v801_v22  ;;  %v777_v31 = vsub.f32 %v662_v21, %v752_v23 }
 0x100   : > { %v5889_v32 = vpop.f32.mrf.mxu0  ;;  %v5891_v35 = vpop.f32.mrf.mxu1 }
 0x101   : > { %5221 = vrsqrt.f32 %v851_v29  ;;  %v802_v37 = vmax.f32 %v777_v31, 0.0 }
 0x102   : > { %v5216_v41 = vpop.eup %5215  ;;  %v4854_v42 = vpop.f32.mrf.mxu0 }
 0x103   : > { %v4922_v43 = vpop.f32.mrf.mxu1  ;;  %v852_v44 = vadd.f32 1e-05, %v802_v37  ;;  %v5894_v47 = vmul.f32 %v5216_v41, %v823_v36 }
 0x104   : > { %v5896_v48 = vpop.f32.mrf.mxu0 }
 0x105   : > { %v5898_v49 = vpop.f32.mrf.mxu1  ;;  %5223 = vrsqrt.f32 %v852_v44 }
 0x106   : > { %v5218_v54 = vpop.eup %5217  ;;  %v4857_v55 = vpop.f32.mrf.mxu0 }
 0x107   : > { %v4925_v56 = vpop.f32.mrf.mxu1  ;;  %v5901_v59 = vmul.f32 %v5218_v54, %v824_v53 }
 0x108   : > { %v5903_v8 = vpop.f32.mrf.mxu0 }
 0x109   : > { %v5905_v30 = vpop.f32.mrf.mxu1 }
 0x10a   : > { %v5220_v61 = vpop.eup %5219  ;;  %v4858_v2 = vpop.f32.mrf.mxu0 }
 0x10b   : > { %v4926_v3 = vpop.f32.mrf.mxu1  ;;  %v5908_v4 = vmul.f32 %v5220_v61, %v825_v60 }
 0x10c   : > { %v5910_v5 = vpop.f32.mrf.mxu0 }
 0x10d   : > { %v5912_v9 = vpop.f32.mrf.mxu1 }
 0x10e   : > { %v5222_v10 = vpop.eup %5221  ;;  %v4861_v11 = vpop.f32.mrf.mxu0 }
 0x10f   : > { %v4929_v12 = vpop.f32.mrf.mxu1  ;;  %v5915_v15 = vmul.f32 %v5222_v10, %v826_v38 }
 0x110   : > { %v5917_v21 = vpop.f32.mrf.mxu0 }
 0x111   : > { %v5919_v22 = vpop.f32.mrf.mxu1 }
 0x112   : > { %v5224_v50 = vpop.eup %5223  ;;  %v4862_v23 = vpop.f32.mrf.mxu0 }
 0x113   : > { %v4930_v27 = vpop.f32.mrf.mxu1  ;;  %v5922_v28 = vmul.f32 %v5224_v50, %v827_v13 }
 0x114   : > { %v5924_v29 = vpop.f32.mrf.mxu0 }
 0x115   : > { %v686_v31 = vpop.f32.mrf.mxu1  ;;  %v758_v12 = vmul.f32 %v5924_v29, %v5924_v29 }
 0x116   : > { %v4865_v14 = vpop.f32.mrf.mxu0 }
 0x117   : > { %v4933_v62 = vpop.f32.mrf.mxu1  ;;  %v757_v14 = vmul.f32 %v5917_v21, %v5917_v21 }
 0x118   : > { %v5926_v36 = vpop.f32.mrf.mxu0 }
 0x119   : > { %v689_v37 = vpop.f32.mrf.mxu1  ;;  %v759_v2 = vmul.f32 %v5926_v36, %v5926_v36 }
 0x11a   : > { %v4866_v41 = vpop.f32.mrf.mxu0 }
 0x11b   : > { %v4934_v42 = vpop.f32.mrf.mxu1  ;;  %v784_v62 = vsub.f32 %v689_v37, %v759_v2  ;;  %v755_v2 = vmul.f32 %v5903_v8, %v5903_v8 }
 0x11c   : > { %v5928_v43 = vpop.f32.mrf.mxu0 }
 0x11d   : > { %v694_v44 = vpop.f32.mrf.mxu1  ;;  %v760_v56 = vmul.f32 %v5928_v43, %v5928_v43 }
 0x11e   : > { %v4869_v53 = vpop.f32.mrf.mxu0 }
 0x11f   : > { %v4937_v19 = vpop.f32.mrf.mxu1  ;;  %v785_v13 = vsub.f32 %v694_v44, %v760_v56 }
 0x120   : > { %v5930_v18 = vpop.f32.mrf.mxu0 }
 0x121   : > { %v697_v54 = vpop.f32.mrf.mxu1  ;;  %v761_v55 = vmul.f32 %v5930_v18, %v5930_v18  ;;  %v810_v44 = vmax.f32 %v785_v13, 0.0 }
 0x122   : > { %v4870_v60 = vpop.f32.mrf.mxu0 }
 0x123   : > { %v4938_v61 = vpop.f32.mrf.mxu1  ;;  %v786_v3 = vsub.f32 %v697_v54, %v761_v55  ;;  %v756_v55 = vmul.f32 %v5910_v5, %v5910_v5  ;;  %v783_v60 = vsub.f32 %v686_v31, %v758_v12 }
 0x124   : > { %v5938_v38 = vpop.f32.mrf.mxu0 }
 0x125   : > { %v702_v10 = vpop.f32.mrf.mxu1  ;;  %v762_v11 = vmul.f32 %v5938_v38, %v5938_v38  ;;  %v811_v41 = vmax.f32 %v786_v3, 0.0  ;;  %v782_v3 = vsub.f32 %v5919_v22, %v757_v14  ;;  %v781_v12 = vsub.f32 %v5912_v9, %v756_v55 }
 0x126   : > { %v4873_v50 = vpop.f32.mrf.mxu0  ;;  %v808_v13 = vmax.f32 %v783_v60, 0.0  ;;  %v780_v14 = vsub.f32 %v5905_v30, %v755_v2 }
 0x127   : > { %v4941_v23 = vpop.f32.mrf.mxu1  ;;  %v787_v27 = vsub.f32 %v702_v10, %v762_v11  ;;  %v754_v10 = vmul.f32 %v5896_v48, %v5896_v48  ;;  %v809_v50 = vmax.f32 %v784_v62, 0.0  ;;  %v807_v62 = vmax.f32 %v782_v3, 0.0 }
 0x128   : > { %v5946_v42 = vpop.f32.mrf.mxu0  ;;  %v861_v23 = vadd.f32 1e-05, %v811_v41  ;;  %v806_v9 = vmax.f32 %v781_v12, 0.0  ;;  %v858_v55 = vadd.f32 1e-05, %v808_v13 }
 0x129   : > { %v705_v53 = vpop.f32.mrf.mxu1  ;;  %v812_v19 = vmax.f32 %v787_v27, 0.0  ;;  %v763_v54 = vmul.f32 %v5946_v42, %v5946_v42  ;;  %v859_v41 = vadd.f32 1e-05, %v809_v50 }
 0x12a   : > { %v4874_v56 = vpop.f32.mrf.mxu0  ;;  %v856_v3 = vadd.f32 1e-05, %v806_v9 }
 0x12b   : > { %v4942_v61 = vpop.f32.mrf.mxu1  ;;  %v862_v11 = vadd.f32 1e-05, %v812_v19  ;;  %v788_v37 = vsub.f32 %v705_v53, %v763_v54  ;;  %v860_v56 = vadd.f32 1e-05, %v810_v44  ;;  %v753_v53 = vmul.f32 %v5889_v32, %v5889_v32 }
 0x12c   : > { %v5957_v27 = vpop.f32.mrf.mxu0  ;;  %v779_v54 = vsub.f32 %v5898_v49, %v754_v10  ;;  %v805_v49 = vmax.f32 %v780_v14, 0.0  ;;  %v857_v10 = vadd.f32 1e-05, %v807_v62  ;;  %v837_v14 = vsub.f32 %v5795_v51, %v5938_v38 }
 0x12d   : > { %v5959_v1 = vpop.f32.mrf.mxu1  ;;  %v813_v31 = vmax.f32 %v788_v37, 0.0  ;;  %5225 = vrsqrt.f32 %v862_v11  ;;  %v835_v51 = vsub.f32 %v5779_v45, %v5928_v43 }
 0x12e   : > { %v4877_v61 = vpop.f32.mrf.mxu0  ;;  %5227 = vrsqrt.f32 %v861_v23  ;;  %v804_v11 = vmax.f32 %v779_v54, 0.0  ;;  %v855_v13 = vadd.f32 1e-05, %v805_v49 }
 0x12f   : > { %v4945_v19 = vpop.f32.mrf.mxu1  ;;  %v863_v22 = vadd.f32 1e-05, %v813_v31  ;;  %v778_v61 = vsub.f32 %v5891_v35, %v753_v53 }
 0x130   : > { %v5966_v57 = vpop.f32.mrf.mxu0  ;;  %v854_v31 = vadd.f32 1e-05, %v804_v11 }
 0x131   : > { %v5968_v37 = vpop.f32.mrf.mxu1  ;;  %5229 = vrsqrt.f32 %v863_v22  ;;  %v803_v12 = vmax.f32 %v778_v61, 0.0 }
 0x132   : > { %5231 = vrsqrt.f32 %v860_v56  ;;  %v4878_v60 = vpop.f32.mrf.mxu0 }
 0x133   : > { %v4946_v44 = vpop.f32.mrf.mxu1  ;;  %5233 = vrsqrt.f32 %v859_v41  ;;  %v853_v22 = vadd.f32 1e-05, %v803_v12 }
 0x134   : > { %v5971_v30 = vpop.f32.mrf.mxu0  ;;  %5235 = vrsqrt.f32 %v858_v55  ;;  %v838_v55 = vsub.f32 %v5798_v52, %v5946_v42  ;;  %v836_v44 = vsub.f32 %v5782_v46, %v5930_v18  ;;  %v5996_v52 = vld [vmem:[%s9226_s8] ss:$0 sm:$0xff]  ;;  %v834_v46 = vsub.f32 %v5766_v40, %v5926_v36 }
 0x135   : > { %v5973_v2 = vpop.f32.mrf.mxu1  ;;  %5237 = vrsqrt.f32 %v857_v10 }
 0x136   : > { %v4881_v50 = vpop.f32.mrf.mxu0  ;;  %5239 = vrsqrt.f32 %v856_v3 }
 0x137   : > { %v4949_v23 = vpop.f32.mrf.mxu1  ;;  %5241 = vrsqrt.f32 %v854_v31 }
 0x138   : > { %v5975_v56 = vpop.f32.mrf.mxu0  ;;  %5243 = vrsqrt.f32 %v855_v13 }
 0x139   : > { %v5977_v19 = vpop.f32.mrf.mxu1  ;;  %5245 = vrsqrt.f32 %v853_v22 }
 0x13a   : > { %v4882_v35 = vpop.f32.mrf.mxu0  ;;  %v5226_v54 = vpop.eup %5225 }
 0x13b   : > { %v4950_v53 = vpop.f32.mrf.mxu1  ;;  %v5228_v9 = vpop.eup %5227  ;;  %v912_v49 = vmul.f32 %v5226_v54, %v837_v14  ;;  %v833_v35 = vsub.f32 %v5763_v39, %v5924_v29  ;;  %v832_v29 = vsub.f32 %v5750_v34, %v5917_v21  ;;  %v9331_v34 = vmov 0.0  }
 0x13c   : > { %v5981_v62 = vpop.f32.mrf.mxu0  ;;  %v911_v23 = vmul.f32 %v5228_v9, %v836_v44  ;;  %v6007_v53 = vld [vmem:[%s9226_s8 + $0x1] ss:$0 sm:$0xff] }
 0x13d   : > { %v5983_v41 = vpop.f32.mrf.mxu1  ;;  %v941_v13 = vmul.f32 %v5996_v52, %v912_v49 }
 0x13e   : > { %v5230_v60 = vpop.eup %5229  ;;  %v4885_v11 = vpop.f32.mrf.mxu0  ;;  %v940_v14 = vmul.f32 %v5996_v52, %v911_v23  ;;  %v768_v23 = vmul.f32 %v5981_v62, %v5981_v62 }
 0x13f   : > { %v4953_v61 = vpop.f32.mrf.mxu1  ;;  %v5232_v10 = vpop.eup %5231  ;;  %v913_v3 = vmul.f32 %v5230_v60, %v838_v55  ;;  %v970_v44 = vadd.f32 %v6007_v53, %v941_v13 }
 0x140   : > { %v5991_v38 = vpop.f32.mrf.mxu0  ;;  %v5234_v31 = vpop.eup %5233  ;;  %v910_v45 = vmul.f32 %v5232_v10, %v835_v51  ;;  %v831_v51 = vsub.f32 %v5747_v33, %v5910_v5  ;;  %v829_v33 = vsub.f32 %v5729_v25, %v5896_v48  ;;  %v830_v5 = vsub.f32 %v5732_v26, %v5903_v8 }
 0x141   : > { %v729_v50 = vpop.f32.mrf.mxu1  ;;  %v942_v12 = vmul.f32 %v5996_v52, %v913_v3  ;;  %v5236_v43 = vpop.eup %5235  ;;  %v769_v54 = vmul.f32 %v5991_v38, %v5991_v38  ;;  %v909_v9 = vmul.f32 %v5234_v31, %v834_v46  ;;  %v828_v3 = vsub.f32 %v5716_v20, %v5889_v32 }
 0x142   : > { %v4886_v18 = vpop.f32.mrf.mxu0  ;;  %v5238_v55 = vpop.eup %5237  ;;  %v939_v61 = vmul.f32 %v5996_v52, %v910_v45  ;;  %v908_v49 = vmul.f32 %v5236_v43, %v833_v35  ;;  %v767_v45 = vmul.f32 %v5975_v56, %v5975_v56  ;;  %v766_v43 = vmul.f32 %v5971_v30, %v5971_v30 }
 0x143   : > { %v4954_v42 = vpop.f32.mrf.mxu1  ;;  %v971_v36 = vadd.f32 %v6007_v53, %v942_v12  ;;  %v5240_v10 = vpop.eup %5239  ;;  %v794_v46 = vsub.f32 %v729_v50, %v769_v54  ;;  %v938_v13 = vmul.f32 %v5996_v52, %v909_v9  ;;  %v907_v20 = vmul.f32 %v5238_v55, %v832_v29 }
 0x144   : > { %v6011_v40 = vpop.f32.mrf.mxu0  ;;  %v5242_v21 = vpop.eup %5241  ;;  %v969_v42 = vadd.f32 %v6007_v53, %v940_v14  ;;  %v968_v54 = vadd.f32 %v6007_v53, %v939_v61  ;;  %v937_v25 = vmul.f32 %v5996_v52, %v908_v49  ;;  %v906_v48 = vmul.f32 %v5240_v10, %v831_v51 }
 0x145   : > { %v734_v22 = vpop.f32.mrf.mxu1  ;;  %v770_v39 = vmul.f32 %v6011_v40, %v6011_v40  ;;  %1147 = vmatpush1.msra.mxu0 %v971_v36  ;;  %v5244_v32 = vpop.eup %5243  ;;  %v793_v26 = vsub.f32 %v5983_v41, %v768_v23  ;;  %v904_v14 = vmul.f32 %v5242_v21, %v829_v33  ;;  %v819_v9 = vmax.f32 %v794_v46, 0.0 }
 0x146   : > { %v4889_v60 = vpop.f32.mrf.mxu0  ;;  %1148 = vmatprep.subr.mxu0 %v9331_v34  ;;  %v765_v61 = vmul.f32 %v5966_v57, %v5966_v57  ;;  %v792_v41 = vsub.f32 %v5977_v19, %v767_v45  ;;  %v764_v51 = vmul.f32 %v5957_v27, %v5957_v27  ;;  %v791_v23 = vsub.f32 %v5973_v2, %v766_v43 }
 0x147   : > { %v4957_v11 = vpop.f32.mrf.mxu1  ;;  %v795_v31 = vsub.f32 %v734_v22, %v770_v39  ;;  %1149 = vmatpush1.msra.mxu0 %v970_v44  ;;  %v967_v39 = vadd.f32 %v6007_v53, %v938_v13  ;;  %v936_v60 = vmul.f32 %v5996_v52, %v907_v20  ;;  %v905_v44 = vmul.f32 %v5244_v32, %v830_v5 }
 0x148   : > { %v6028_v18 = vpop.f32.mrf.mxu0  ;;  %1150 = vmatprep.subr.mxu0 %v9331_v34  ;;  %v5246_v11 = vpop.eup %5245  ;;  %v935_v46 = vmul.f32 %v5996_v52, %v906_v48  ;;  %v869_v32 = vadd.f32 1e-05, %v819_v9  ;;  %v790_v43 = vsub.f32 %v5968_v37, %v765_v61 }
 0x149   : > { %v737_v12 = vpop.f32.mrf.mxu1  ;;  %v771_v50 = vmul.f32 %v6028_v18, %v6028_v18  ;;  %1151 = vmatpush1.msra.mxu0 %v969_v42  ;;  %v820_v8 = vmax.f32 %v795_v31, 0.0  ;;  %v966_v31 = vadd.f32 %v6007_v53, %v937_v25  ;;  %v965_v33 = vadd.f32 %v6007_v53, %v936_v60 }
 0x14a   : > { %v4890_v35 = vpop.f32.mrf.mxu0  ;;  %1152 = vmatprep.subr.mxu0 %v9331_v34  ;;  %v934_v2 = vmul.f32 %v5996_v52, %v905_v44  ;;  %v964_v25 = vadd.f32 %v6007_v53, %v935_v46  ;;  %v931_v60 = vmul.f32 %v5996_v52, %v5922_v28  ;;  %v929_v28 = vmul.f32 %v5996_v52, %v5908_v4 }
 0x14b   : > { %v4958_v36 = vpop.f32.mrf.mxu1  ;;  %v796_v22 = vsub.f32 %v737_v12, %v771_v50  ;;  %1153 = vmatpush1.msra.mxu0 %v968_v54  ;;  %v818_v12 = vmax.f32 %v793_v26, 0.0  ;;  %v870_v19 = vadd.f32 1e-05, %v820_v8  ;;  %v903_v50 = vmul.f32 %v5246_v11, %v828_v3 }
 0x14c   : > { %v6047_v55 = vpop.f32.mrf.mxu0  ;;  %1154 = vmatprep.subr.mxu0 %v9331_v34  ;;  %v817_v35 = vmax.f32 %v792_v41, 0.0  ;;  %v789_v36 = vsub.f32 %v5959_v1, %v764_v51  ;;  %v933_v26 = vmul.f32 %v5996_v52, %v904_v14  ;;  %v963_v37 = vadd.f32 %v6007_v53, %v934_v2 }
 0x14d   : > { %v742_v29 = vpop.f32.mrf.mxu1  ;;  %v821_v49 = vmax.f32 %v796_v22, 0.0  ;;  %v772_v10 = vmul.f32 %v6047_v55, %v6047_v55  ;;  %1155 = vmatpush1.msra.mxu0 %v967_v39  ;;  %v816_v22 = vmax.f32 %v791_v23, 0.0  ;;  %v868_v9 = vadd.f32 1e-05, %v818_v12 }
 0x14e   : > { %v4893_v21 = vpop.f32.mrf.mxu0  ;;  %1156 = vmatprep.subr.mxu0 %v9331_v34  ;;  %v932_v39 = vmul.f32 %v5996_v52, %v903_v50  ;;  %v815_v1 = vmax.f32 %v790_v43, 0.0  ;;  %v962_v14 = vadd.f32 %v6007_v53, %v933_v26  ;;  %v814_v44 = vmax.f32 %v789_v36, 0.0 }
 0x14f   : > { %v4961_v42 = vpop.f32.mrf.mxu1  ;;  %v871_v13 = vadd.f32 1e-05, %v821_v49  ;;  %v797_v20 = vsub.f32 %v742_v29, %v772_v10  ;;  %1157 = vmatpush1.msra.mxu0 %v966_v31  ;;  %v867_v29 = vadd.f32 1e-05, %v817_v35  ;;  %v866_v11 = vadd.f32 1e-05, %v816_v22 }
 0x150   : > { %v609_v5 = vpop.f32.mrf.mxu0  ;;  %1158 = vmatprep.subr.mxu0 %v9331_v34  ;;  %v961_v61 = vadd.f32 %v6007_v53, %v932_v39  ;;  %v930_v41 = vmul.f32 %v5996_v52, %v5915_v15  ;;  %v865_v49 = vadd.f32 1e-05, %v815_v1  ;;  %v960_v10 = vadd.f32 %v6007_v53, %v931_v60  ;;  %v981_v60 = vld [vmem:[%s9219_s1] sm:$0xff] }
 0x151   : > { %v745_v45 = vpop.f32.mrf.mxu1  ;;  %5247 = vrsqrt.f32 %v871_v13  ;;  %v822_v54 = vmax.f32 %v797_v20, 0.0  ;;  %1159 = vmatpush1.msra.mxu0 %v965_v33  ;;  %v864_v51 = vadd.f32 1e-05, %v814_v44  ;;  %v928_v15 = vmul.f32 %v5996_v52, %v5901_v59  ;;  %v6157_v44 = vld [vmem:[%s9222_s4 + $0x38] sm:$0xff]  }
 0x152   : > { %v4894_v48 = vpop.f32.mrf.mxu0  ;;  %5249 = vrsqrt.f32 %v870_v19  ;;  %1160 = vmatprep.subr.mxu0 %v9331_v34  ;;  %v959_v23 = vadd.f32 %v6007_v53, %v930_v41  ;;  %v958_v21 = vadd.f32 %v6007_v53, %v929_v28  ;;  %v927_v4 = vmul.f32 %v5996_v52, %v5894_v47  ;;  %v6171_v41 = vld [vmem:[%s9222_s4 + $0x30] sm:$0xff]   ;;  %v6185_v28 = vld [vmem:[%s9222_s4 + $0x28] sm:$0xff]  }
 0x153   : > { %v4962_v8 = vpop.f32.mrf.mxu1  ;;  %v872_v3 = vadd.f32 1e-05, %v822_v54  ;;  %5251 = vrsqrt.f32 %v869_v32  ;;  %1161 = vmatpush1.msra.mxu0 %v964_v25  ;;  %v846_v46 = vsub.f32 %v5862_v17, %v6028_v18  ;;  %v957_v59 = vadd.f32 %v6007_v53, %v928_v15  ;;  %9334 = vst [vmem:[#allocation3_spill] sm:$0xff] %v6171_v41  ;;  %9335 = vst [vmem:[#allocation4_spill] sm:$0xff] %v6185_v28  ;;  %v6199_v15 = vld [vmem:[%s9222_s4 + $0x20] sm:$0xff]  }
 0x154   : > { %1162 = vmatprep.subr.mxu0 %v9331_v34  ;;  %v845_v19 = vsub.f32 %v5859_v16, %v6011_v40  ;;  %v847_v13 = vsub.f32 %v5875_v24, %v6047_v55  ;;  %v956_v17 = vadd.f32 %v6007_v53, %v927_v4  ;;  %v844_v18 = vsub.f32 %v5846_v7, %v5991_v38  ;;  %v6213_v4 = vld [vmem:[%s9222_s4 + $0x18] sm:$0xff]  }
 0x155   : > { %5253 = vrsqrt.f32 %v872_v3  ;;  %1163 = vmatpush1.msra.mxu0 %v963_v37  ;;  %v843_v16 = vsub.f32 %v5843_v6, %v5981_v62  ;;  %v842_v7 = vsub.f32 %v5830_v0, %v5975_v56  ;;  %v841_v6 = vsub.f32 %v5827_v63, %v5971_v30  ;;  %v9332_v63 = vld [vmem:[#allocation2_spill] sm:$0xff]  ;;  %9336 = vst [vmem:[#allocation5_spill] sm:$0xff] %v6199_v15 }
 0x156   : > { %5255 = vrsqrt.f32 %v868_v9  ;;  %1164 = vmatprep.subr.mxu0 %v9331_v34  ;;  %v840_v0 = vsub.f32 %v5814_v58, %v5966_v57  ;;  %v839_v30 = vsub.f32 %v9332_v63, %v5957_v27  ;;  %9333 = vst [vmem:[#allocation2_spill] sm:$0xff] %v6157_v44  ;;  %9337 = vst [vmem:[#allocation6_spill] sm:$0xff] %v6213_v4  ;;  %v1024_v63 = vld [vmem:[%s9219_s1 + $0x158] sm:$0xff] }
 0x157   : > { %1165 = vmatpush1.msra.mxu0 %v962_v14  ;;  %5257 = vrsqrt.f32 %v867_v29 }
 0x158   : > { %1166 = vmatprep.subr.mxu0 %v9331_v34  ;;  %5259 = vrsqrt.f32 %v866_v11  ;;  %v986_v11 = vld [vmem:[%s9219_s1 + $0x28] sm:$0xff] }
 0x159   : > { %1167 = vmatpush1.msra.mxu0 %v961_v61  ;;  %5261 = vrsqrt.f32 %v865_v49  ;;  %v985_v61 = vld [vmem:[%s9219_s1 + $0x20] sm:$0xff]  ;;  %v988_v49 = vld [vmem:[%s9219_s1 + $0x38] sm:$0xff] }
 0x15a   : > { %1168 = vmatprep.subr.mxu0 %v9331_v34  ;;  %5263 = vrsqrt.f32 %v864_v51  ;;  %v990_v51 = vld [vmem:[%s9219_s1 + $0x48] sm:$0xff] }
 0x15b   : > { %1169 = vmatpush1.msra.mxu0 %v960_v10  ;;  %v987_v10 = vld [vmem:[%s9219_s1 + $0x30] sm:$0xff] }
 0x15c   : > { %1170 = vmatprep.subr.mxu0 %v9331_v34 }
 0x15d   : > { %1171 = vmatpush1.msra.mxu0 %v959_v23  ;;  %v989_v23 = vld [vmem:[%s9219_s1 + $0x40] sm:$0xff] }
 0x15e   : > { %v5248_v31 = vpop.eup %5247  ;;  %1172 = vmatprep.subr.mxu0 %v9331_v34 }
 0x15f   : > { %v5250_v42 = vpop.eup %5249  ;;  %1173 = vmatpush1.msra.mxu0 %v958_v21  ;;  %v921_v47 = vmul.f32 %v5248_v31, %v846_v46  ;;  %v992_v31 = vld [vmem:[%s9219_s1 + $0x58] sm:$0xff]  ;;  %v991_v21 = vld [vmem:[%s9219_s1 + $0x50] sm:$0xff]  ;;  %v994_v46 = vld [vmem:[%s9219_s1 + $0x68] sm:$0xff] }
 0x160   : > { %v5252_v12 = vpop.eup %5251  ;;  %1174 = vmatprep.subr.mxu0 %v9331_v34  ;;  %v920_v33 = vmul.f32 %v5250_v42, %v845_v19  ;;  %v993_v42 = vld [vmem:[%s9219_s1 + $0x60] sm:$0xff]  ;;  %v995_v19 = vld [vmem:[%s9219_s1 + $0x70] sm:$0xff] }
 0x161   : > { %1175 = vmatpush1.msra.mxu0 %v957_v59  ;;  %v950_v40 = vmul.f32 %v5996_v52, %v921_v47  ;;  %v919_v55 = vmul.f32 %v5252_v12, %v844_v18  ;;  %v6227_v59 = vld [vmem:[%s9222_s4 + $0x10] sm:$0xff]   ;;  %v996_v12 = vld [vmem:[%s9219_s1 + $0x78] sm:$0xff]  ;;  %v998_v47 = vld [vmem:[%s9219_s1 + $0x88] sm:$0xff] }
 0x162   : > { %v5254_v20 = vpop.eup %5253  ;;  %1176 = vmatprep.subr.mxu0 %v9331_v34  ;;  %v949_v45 = vmul.f32 %v5996_v52, %v920_v33  ;;  %9338 = vst [vmem:[#allocation7_spill] sm:$0xff] %v6227_v59  ;;  %v1000_v18 = vld [vmem:[%s9219_s1 + $0x98] sm:$0xff]  ;;  %v1002_v33 = vld [vmem:[%s9219_s1 + $0xa8] sm:$0xff] }
 0x163   : > { %v922_v32 = vmul.f32 %v5254_v20, %v847_v13  ;;  %v5256_v5 = vpop.eup %5255  ;;  %1177 = vmatpush1.msra.mxu0 %v956_v17  ;;  %v979_v62 = vadd.f32 %v6007_v53, %v950_v40  ;;  %v948_v35 = vmul.f32 %v5996_v52, %v919_v55  ;;  %v6241_v13 = vld [vmem:[%s9222_s4 + $0x8] sm:$0xff]   ;;  %v997_v20 = vld [vmem:[%s9219_s1 + $0x80] sm:$0xff] }
 0x164   : > { %1192 = vmatprep.subr.mxu0 %v9331_v34  ;;  %v5258_v2 = vpop.eup %5257  ;;  %v918_v50 = vmul.f32 %v5256_v5, %v843_v16  ;;  %v978_v56 = vadd.f32 %v6007_v53, %v949_v45  ;;  %9339 = vst [vmem:[#allocation8_spill] sm:$0xff] %v6241_v13  ;;  %v6255_v17 = vld [vmem:[%s9222_s4] sm:$0xff]   ;;  %v1004_v16 = vld [vmem:[%s9219_s1 + $0xb8] sm:$0xff]  ;;  %v1006_v40 = vld [vmem:[%s9219_s1 + $0xc8] sm:$0xff] }
 0x165   : > { %v951_v24 = vmul.f32 %v5996_v52, %v922_v32  ;;  %v5260_v43 = vpop.eup %5259  ;;  %v917_v54 = vmul.f32 %v5258_v2, %v842_v7  ;;  %v977_v8 = vadd.f32 %v6007_v53, %v948_v35  ;;  %9340 = vst [vmem:[#allocation9_spill] sm:$0xff] %v6255_v17  ;;  %v999_v32 = vld [vmem:[%s9219_s1 + $0x90] sm:$0xff]  ;;  %v1001_v5 = vld [vmem:[%s9219_s1 + $0xa0] sm:$0xff]  ;;  %v1008_v2 = vld [vmem:[%s9219_s1 + $0xd8] sm:$0xff] }
 0x166   : > { %v5262_v36 = vpop.eup %5261  ;;  %v947_v25 = vmul.f32 %v5996_v52, %v918_v50  ;;  %v916_v48 = vmul.f32 %v5260_v43, %v841_v6  ;;  %v1005_v55 = vld [vmem:[%s9219_s1 + $0xc0] sm:$0xff]  ;;  %v1007_v7 = vld [vmem:[%s9219_s1 + $0xd0] sm:$0xff]  ;;  %v1012_v50 = vld [vmem:[%s9219_s1 + $0xf8] sm:$0xff] }
 0x167   : > { %v980_v38 = vadd.f32 %v6007_v53, %v951_v24  ;;  %v5264_v26 = vpop.eup %5263  ;;  %v946_v22 = vmul.f32 %v5996_v52, %v917_v54  ;;  %v915_v9 = vmul.f32 %v5262_v36, %v840_v0  ;;  %v1003_v24 = vld [vmem:[%s9219_s1 + $0xb0] sm:$0xff]  ;;  %v1009_v45 = vld [vmem:[%s9219_s1 + $0xe0] sm:$0xff]  ;;  %v1014_v6 = vld [vmem:[%s9219_s1 + $0x108] sm:$0xff] }
 0x168   : > { %v976_v57 = vadd.f32 %v6007_v53, %v947_v25  ;;  %v945_v58 = vmul.f32 %v5996_v52, %v916_v48  ;;  %v914_v3 = vmul.f32 %v5264_v26, %v839_v30  ;;  %v1011_v43 = vld [vmem:[%s9219_s1 + $0xf0] sm:$0xff]  ;;  %v1016_v35 = vld [vmem:[%s9219_s1 + $0x118] sm:$0xff]  ;;  %v1018_v36 = vld [vmem:[%s9219_s1 + $0x128] sm:$0xff] }
 0x169   : > { %4453 = vmatpush2.msk.msra.mxu0 %vm1142_vm2, %v980_v38  ;;  %v975_v37 = vadd.f32 %v6007_v53, %v946_v22  ;;  %v944_v27 = vmul.f32 %v5996_v52, %v915_v9  ;;  %v1010_v38 = vld [vmem:[%s9219_s1 + $0xe8] sm:$0xff]  ;;  %v1015_v54 = vld [vmem:[%s9219_s1 + $0x110] sm:$0xff]  ;;  %v1017_v0 = vld [vmem:[%s9219_s1 + $0x120] sm:$0xff] }
 0x16a   : > { %1194 = vmatprep.subr.mxu0 %v9331_v34  ;;  %v974_v39 = vadd.f32 %v6007_v53, %v945_v58  ;;  %v943_v1 = vmul.f32 %v5996_v52, %v914_v3  ;;  %v984_v52 = vld [vmem:[%s9219_s1 + $0x18] sm:$0xff]  ;;  %v1019_v25 = vld [vmem:[%s9219_s1 + $0x130] sm:$0xff]  ;;  %v1022_v48 = vld [vmem:[%s9219_s1 + $0x148] sm:$0xff] }
 0x16b   : > { %1195 = vmatpush2.msra.mxu0 %v979_v62  ;;  %v973_v29 = vadd.f32 %v6007_v53, %v944_v27  ;;  %v1013_v62 = vld [vmem:[%s9219_s1 + $0x100] sm:$0xff]  ;;  %v1023_v30 = vld [vmem:[%s9219_s1 + $0x150] sm:$0xff]  ;;  %v1028_v9 = vld [vmem:[%s9219_s1 + $0x178] sm:$0xff] }
 0x16c   : > { %1196 = vmatprep.subr.mxu0 %v9331_v34  ;;  %v972_v14 = vadd.f32 %v6007_v53, %v943_v1  ;;  %v983_v53 = vld [vmem:[%s9219_s1 + $0x10] sm:$0xff]  ;;  %v1021_v26 = vld [vmem:[%s9219_s1 + $0x140] sm:$0xff]  ;;  %v1030_v58 = vld [vmem:[%s9219_s1 + $0x188] sm:$0xff] }
 0x16d   : > { %1197 = vmatpush2.msra.mxu0 %v978_v56  ;;  %v1020_v56 = vld [vmem:[%s9219_s1 + $0x138] sm:$0xff]  ;;  %v1025_v22 = vld [vmem:[%s9219_s1 + $0x160] sm:$0xff]  ;;  %v1031_v27 = vld [vmem:[%s9219_s1 + $0x190] sm:$0xff] }
 0x16e   : > { %1198 = vmatprep.subr.mxu0 %v9331_v34  ;;  %v1029_v3 = vld [vmem:[%s9219_s1 + $0x180] sm:$0xff] }
 0x16f   : > { %1199 = vmatpush2.msra.mxu0 %v977_v8  ;;  %v1026_v8 = vld [vmem:[%s9219_s1 + $0x168] sm:$0xff]  ;;  %v1033_v1 = vld [vmem:[%s9219_s1 + $0x1a0] sm:$0xff] }
 0x170   : > { %1200 = vmatprep.subr.mxu0 %v9331_v34 }
 0x171   : > { %1201 = vmatpush2.msra.mxu0 %v976_v57  ;;  %v1027_v57 = vld [vmem:[%s9219_s1 + $0x170] sm:$0xff] }
 0x172   : > { %1202 = vmatprep.subr.mxu0 %v9331_v34 }
 0x173   : > { %1203 = vmatpush2.msra.mxu0 %v975_v37  ;;  %v1032_v37 = vld [vmem:[%s9219_s1 + $0x198] sm:$0xff] }
 0x174   : > { %1204 = vmatprep.subr.mxu0 %v9331_v34 }
 0x175   : > { %1205 = vmatpush2.msra.mxu0 %v974_v39  ;;  %v1034_v39 = vld [vmem:[%s9219_s1 + $0x1a8] sm:$0xff] }
 0x176   : > { %1206 = vmatprep.subr.mxu0 %v9331_v34 }
 0x177   : > { %1207 = vmatpush2.msra.mxu0 %v973_v29  ;;  %v1036_v29 = vld [vmem:[%s9219_s1 + $0x1b8] sm:$0xff] }
 0x178   : > { %1208 = vmatprep.subr.mxu0 %v9331_v34 }
 0x179   : > { %1209 = vmatpush2.msra.mxu0 %v972_v14  ;;  %v1035_v14 = vld [vmem:[%s9219_s1 + $0x1b0] sm:$0xff] }
 0x17a   : > { %1211 = vmatmul.mubr.f32.vlgmr.msra.gmra.mxu0 %v981_v60  ;;  %5031 = vmatprep.subr.bf16.mxu0 %v9331_v34  ;;  %v1038_v60 = vld [vmem:[%s9219_s1 + $0x1c8] sm:$0xff] }
 0x17b   : > { %4455 = vmatprep.mubr.msk.f32.mxu0 %vm1045_vm1, %v984_v52  ;;  %5032 = vmatpush3.bf16.msra.mxu0 %v6157_v44  ;;  %v1037_v52 = vld [vmem:[%s9219_s1 + $0x1c0] sm:$0xff] }
 0x17c   : > { %5033 = vmatprep.subr.bf16.mxu0 %v9331_v34 }
 0x17e   : > { %1216 = vmatmul.mubr.f32.gmra.mxu0 %v983_v53  ;;  %v1040_v53 = vld [vmem:[%s9219_s1 + $0x1d8] sm:$0xff] }
 0x17f   : > { %4456 = vmatprep.mubr.msk.f32.mxu0 %vm1045_vm1, %v986_v11  ;;  %5034 = vmatpush3.bf16.msra.mxu0 %v6171_v41  ;;  %v1039_v11 = vld [vmem:[%s9219_s1 + $0x1d0] sm:$0xff] }
 0x180   : > { %5035 = vmatprep.subr.bf16.mxu0 %v9331_v34 }
 0x182   : > { %1221 = vmatmul.mubr.f32.gmra.mxu0 %v985_v61  ;;  %v1042_v61 = vld [vmem:[%s9219_s1 + $0x1e8] sm:$0xff] }
 0x183   : > { %4457 = vmatprep.mubr.msk.f32.mxu0 %vm1045_vm1, %v988_v49  ;;  %5036 = vmatpush3.bf16.msra.mxu0 %v6185_v28  ;;  %v1041_v49 = vld [vmem:[%s9219_s1 + $0x1e0] sm:$0xff]  ;;  %v6647_v28 = vld [vmem:[%s9221_s3 + $0xe8] sm:$0xff] }
 0x184   : > { %5037 = vmatprep.subr.bf16.mxu0 %v9331_v34 }
 0x186   : > { %1226 = vmatmul.mubr.f32.gmra.mxu0 %v987_v10  ;;  %v1044_v10 = vld [vmem:[%s9219_s1 + $0x1f8] sm:$0xff] }
 0x187   : > { %4458 = vmatprep.mubr.msk.f32.mxu0 %vm1045_vm1, %v990_v51  ;;  %5038 = vmatpush3.bf16.msra.mxu0 %v6199_v15  ;;  %v1043_v51 = vld [vmem:[%s9219_s1 + $0x1f0] sm:$0xff]  ;;  %v6642_v15 = vld [vmem:[%s9221_s3 + $0x68] sm:$0xff] }
 0x188   : > { %5039 = vmatprep.subr.bf16.mxu0 %v9331_v34 }
 0x18a   : > { %1231 = vmatmul.mubr.f32.gmra.mxu0 %v989_v23 }
 0x18b   : > { %4459 = vmatprep.mubr.msk.f32.mxu0 %vm1045_vm1, %v992_v31  ;;  %5040 = vmatpush3.bf16.msra.mxu0 %v6213_v4 }
 0x18c   : > { %5041 = vmatprep.subr.bf16.mxu0 %v9331_v34 }
 0x18e   : > { %1236 = vmatmul.mubr.f32.gmra.mxu0 %v991_v21 }
 0x18f   : > { %4460 = vmatprep.mubr.msk.f32.mxu0 %vm1045_vm1, %v994_v46  ;;  %5042 = vmatpush3.bf16.msra.mxu0 %v6227_v59 }
 0x190   : > { %5043 = vmatprep.subr.bf16.mxu0 %v9331_v34 }
 0x192   : > { %1241 = vmatmul.mubr.f32.gmra.mxu0 %v993_v42 }
 0x193   : > { %4461 = vmatprep.mubr.msk.f32.mxu0 %vm1045_vm1, %v996_v12  ;;  %5044 = vmatpush3.bf16.msra.mxu0 %v6241_v13 }
 0x194   : > { %5045 = vmatprep.subr.bf16.mxu0 %v9331_v34 }
 0x196   : > { %1246 = vmatmul.mubr.f32.gmra.mxu0 %v995_v19 }
 0x197   : > { %4462 = vmatprep.mubr.msk.f32.mxu0 %vm1045_vm1, %v998_v47  ;;  %5046 = vmatpush3.bf16.msra.mxu0 %v6255_v17 }
 0x19a   : > { %1251 = vmatmul.mubr.f32.gmra.mxu0 %v997_v20 }
 0x19b   : > { %4463 = vmatprep.mubr.msk.f32.mxu0 %vm1045_vm1, %v1000_v18 }
 0x19e   : > { %1256 = vmatmul.mubr.f32.gmra.mxu0 %v999_v32 }
 0x19f   : > { %4464 = vmatprep.mubr.msk.f32.mxu0 %vm1045_vm1, %v1002_v33 }
 0x1a2   : > { %1261 = vmatmul.mubr.f32.gmra.mxu0 %v1001_v5 }
 0x1a3   : > { %4465 = vmatprep.mubr.msk.f32.mxu0 %vm1045_vm1, %v1004_v16 }
 0x1a6   : > { %1266 = vmatmul.mubr.f32.gmra.mxu0 %v1003_v24 }
 0x1a7   : > { %4466 = vmatprep.mubr.msk.f32.mxu0 %vm1045_vm1, %v1006_v40 }
 0x1aa   : > { %1271 = vmatmul.mubr.f32.gmra.mxu0 %v1005_v55 }
 0x1ab   : > { %4467 = vmatprep.mubr.msk.f32.mxu0 %vm1045_vm1, %v1008_v2 }
 0x1ae   : > { %1276 = vmatmul.mubr.f32.gmra.mxu0 %v1007_v7 }
 0x1af   : > { %4468 = vmatprep.mubr.msk.f32.mxu0 %vm1045_vm1, %v1010_v38 }
 0x1b2   : > { %1281 = vmatmul.mubr.f32.gmra.mxu0 %v1009_v45 }
 0x1b3   : > { %4469 = vmatprep.mubr.msk.f32.mxu0 %vm1045_vm1, %v1012_v50 }
 0x1b6   : > { %1286 = vmatmul.mubr.f32.gmra.mxu0 %v1011_v43 }
 0x1b7   : > { %4470 = vmatprep.mubr.msk.f32.mxu0 %vm1045_vm1, %v1014_v6 }
 0x1ba   : > { %1291 = vmatmul.mubr.f32.gmra.mxu0 %v1013_v62 }
 0x1bb   : > { %4471 = vmatprep.mubr.msk.f32.mxu0 %vm1045_vm1, %v1016_v35 }
 0x1be   : > { %1296 = vmatmul.mubr.f32.gmra.mxu0 %v1015_v54 }
 0x1bf   : > { %4472 = vmatprep.mubr.msk.f32.mxu0 %vm1045_vm1, %v1018_v36 }
 0x1c2   : > { %1301 = vmatmul.mubr.f32.gmra.mxu0 %v1017_v0 }
 0x1c3   : > { %4473 = vmatprep.mubr.msk.f32.mxu0 %vm1045_vm1, %v1020_v56 }
 0x1c6   : > { %1306 = vmatmul.mubr.f32.gmra.mxu0 %v1019_v25 }
 0x1c7   : > { %4474 = vmatprep.mubr.msk.f32.mxu0 %vm1045_vm1, %v1022_v48  ;;  %v1371_v48 = vld [vmem:[%s9221_s3] sm:$0xff] }
 0x1ca   : > { %1311 = vmatmul.mubr.f32.gmra.mxu0 %v1021_v26  ;;  %v1387_v26 = vld [vmem:[%s9221_s3 + $0x80] sm:$0xff] }
 0x1cb   : > { %4475 = vmatprep.mubr.msk.f32.mxu0 %vm1045_vm1, %v1024_v63 }
 0x1ce   : > { %1316 = vmatmul.mubr.f32.gmra.mxu0 %v1023_v30  ;;  %v1500_v30 = vld [vmem:[%s9220_s2 + $0x8] sm:$0xff] }
 0x1cf   : > { %4476 = vmatprep.mubr.msk.f32.mxu0 %vm1045_vm1, %v1026_v8  ;;  %1613 = vmatprep.mubr.f32.mxu1 %v1500_v30 }
 0x1d2   : > { %1321 = vmatmul.mubr.f32.gmra.mxu0 %v1025_v22 }
 0x1d3   : > { %4477 = vmatprep.mubr.msk.f32.mxu0 %vm1045_vm1, %v1028_v9 }
 0x1d6   : > { %1326 = vmatmul.mubr.f32.gmra.mxu0 %v1027_v57 }
 0x1d7   : > { %4478 = vmatprep.mubr.msk.f32.mxu0 %vm1045_vm1, %v1030_v58 }
 0x1da   : > { %1331 = vmatmul.mubr.f32.gmra.mxu0 %v1029_v3  ;;  %v1372_v3 = vld [vmem:[%s9221_s3 + $0x8] sm:$0xff] }
 0x1db   : > { %4479 = vmatprep.mubr.msk.f32.mxu0 %vm1045_vm1, %v1032_v37  ;;  %v1388_v37 = vld [vmem:[%s9221_s3 + $0x88] sm:$0xff] }
 0x1de   : > { %1336 = vmatmul.mubr.f32.gmra.mxu0 %v1031_v27 }
 0x1df   : > { %4480 = vmatprep.mubr.msk.f32.mxu0 %vm1045_vm1, %v1034_v39 }
 0x1e2   : > { %1341 = vmatmul.mubr.f32.gmra.mxu0 %v1033_v1 }
 0x1e3   : > { %4481 = vmatprep.mubr.msk.f32.mxu0 %vm1045_vm1, %v1036_v29 }
 0x1e6   : > { %1346 = vmatmul.mubr.f32.gmra.mxu0 %v1035_v14 }
 0x1e7   : > { %4482 = vmatprep.mubr.msk.f32.mxu0 %vm1045_vm1, %v1038_v60 }
 0x1ea   : > { %1351 = vmatmul.mubr.f32.gmra.mxu0 %v1037_v52 }
 0x1eb   : > { %4483 = vmatprep.mubr.msk.f32.mxu0 %vm1045_vm1, %v1040_v53 }
 0x1ee   : > { %1356 = vmatmul.mubr.f32.gmra.mxu0 %v1039_v11  ;;  %v1373_v11 = vld [vmem:[%s9221_s3 + $0x10] sm:$0xff] }
 0x1ef   : > { %4484 = vmatprep.mubr.msk.f32.mxu0 %vm1045_vm1, %v1042_v61  ;;  %v1389_v61 = vld [vmem:[%s9221_s3 + $0x90] sm:$0xff] }
 0x1f2   : > { %1361 = vmatmul.mubr.f32.gmra.mxu0 %v1041_v49 }
 0x1f3   : > { %4485 = vmatprep.mubr.msk.f32.mxu0 %vm1045_vm1, %v1044_v10 }
 0x1f6   : > { %1366 = vmatmul.mubr.f32.gmra.mxu0 %v1043_v51 }
 0x1f7   : > { %5047 = vmatprep.mubr.msk.bf16.mxu0 %vm5570_vm0, %v9331_v34 }
 0x23a   : > { %v1212_v23 = vpop.f32.mrf.mxu0 }
 0x23b   : > { %v6454_v22 = vmul.f32 %v1371_v48, %v1212_v23  ;;  %v1451_v9 = vmul.f32 %v1387_v26, %v1212_v23 }
 0x23c   : > { %v1214_v31 = vpop.f32.mrf.mxu0 }
 0x23e   : > { %v1217_v21 = vpop.f32.mrf.mxu0 }
 0x23f   : > { %v6468_v14 = vmul.f32 %v1372_v3, %v1217_v21  ;;  %v1452_v60 = vmul.f32 %v1388_v37, %v1217_v21 }
 0x240   : > { %v1219_v46 = vpop.f32.mrf.mxu0 }
 0x242   : > { %v1222_v42 = vpop.f32.mrf.mxu0 }
 0x243   : > { %v6482_v31 = vmul.f32 %v1373_v11, %v1222_v42  ;;  %v1453_v21 = vmul.f32 %v1389_v61, %v1222_v42 }
 0x244   : > { %v1224_v12 = vpop.f32.mrf.mxu0 }
 0x246   : > { %v1227_v19 = vpop.f32.mrf.mxu0 }
 0x248   : > { %v1229_v47 = vpop.f32.mrf.mxu0 }
 0x249   : > { %v1374_v47 = vld [vmem:[%s9221_s3 + $0x18] sm:$0xff] }
 0x24a   : > { %v6421_v20 = vpop.f32.mrf.mxu0 }
 0x24c   : > { %v1234_v18 = vpop.f32.mrf.mxu0 }
 0x24d   : > { %v1390_v18 = vld [vmem:[%s9221_s3 + $0x98] sm:$0xff] }
 0x24e   : > { %v6423_v32 = vpop.f32.mrf.mxu0  ;;  %v1454_v42 = vmul.f32 %v1390_v18, %v1227_v19 }
 0x250   : > { %v1239_v33 = vpop.f32.mrf.mxu0 }
 0x252   : > { %v6425_v5 = vpop.f32.mrf.mxu0 }
 0x254   : > { %v1244_v16 = vpop.f32.mrf.mxu0 }
 0x256   : > { %v6427_v24 = vpop.f32.mrf.mxu0 }
 0x258   : > { %v1249_v40 = vpop.f32.mrf.mxu0 }
 0x25a   : > { %v6429_v55 = vpop.f32.mrf.mxu0 }
 0x25c   : > { %v1254_v2 = vpop.f32.mrf.mxu0 }
 0x25e   : > { %v6431_v7 = vpop.f32.mrf.mxu0 }
 0x260   : > { %v1259_v38 = vpop.f32.mrf.mxu0 }
 0x261   : > { %v6496_v38 = vmul.f32 %v1374_v47, %v1227_v19 }
 0x262   : > { %v6433_v45 = vpop.f32.mrf.mxu0 }
 0x264   : > { %v1264_v50 = vpop.f32.mrf.mxu0 }
 0x266   : > { %v6435_v43 = vpop.f32.mrf.mxu0 }
 0x267   : > { %9341 = vst [vmem:[#allocation10_spill] sm:$0xff] %v6435_v43 }
 0x268   : > { %v1269_v6 = vpop.f32.mrf.mxu0 }
 0x26a   : > { %v6437_v62 = vpop.f32.mrf.mxu0 }
 0x26c   : > { %v1274_v35 = vpop.f32.mrf.mxu0 }
 0x26d   : > { %v1375_v35 = vld [vmem:[%s9221_s3 + $0x20] sm:$0xff] }
 0x26e   : > { %v6439_v54 = vpop.f32.mrf.mxu0  ;;  %v6511_v19 = vmul.f32 %v1375_v35, %v6421_v20 }
 0x270   : > { %v1279_v36 = vpop.f32.mrf.mxu0 }
 0x271   : > { %v1391_v36 = vld [vmem:[%s9221_s3 + $0xa0] sm:$0xff] }
 0x272   : > { %v6441_v0 = vpop.f32.mrf.mxu0  ;;  %v1455_v30 = vmul.f32 %v1391_v36, %v6421_v20 }
 0x274   : > { %v1284_v56 = vpop.f32.mrf.mxu0 }
 0x276   : > { %v6443_v25 = vpop.f32.mrf.mxu0 }
 0x278   : > { %v1289_v63 = vpop.f32.mrf.mxu0 }
 0x27a   : > { %v1292_v8 = vpop.f32.mrf.mxu0 }
 0x27b   : > { %v6456_v57 = vmul.f32 %v1387_v26, %v1292_v8  ;;  %v1467_v58 = vmul.f32 %v1371_v48, %v1292_v8 }
 0x27c   : > { %v1294_v27 = vpop.f32.mrf.mxu0 }
 0x27d   : > { %v6466_v1 = vadd.f32 %v1467_v58, %v1451_v9  ;;  %v6519_v58 = vld [vmem:[%s9221_s3 + $0xa8] sm:$0xff] }
 0x27e   : > { %v1297_v29 = vpop.f32.mrf.mxu0 }
 0x27f   : > { %9342 = vst [vmem:[#allocation11_spill] sm:$0xff] %v6466_v1  ;;  %v6470_v52 = vmul.f32 %v1388_v37, %v1297_v29  ;;  %v1468_v53 = vmul.f32 %v1372_v3, %v1297_v29  ;;  %v6528_v29 = vld [vmem:[%s9221_s3 + $0x28] sm:$0xff] }
 0x280   : > { %v1299_v49 = vpop.f32.mrf.mxu0 }
 0x281   : > { %v6480_v51 = vadd.f32 %v1468_v53, %v1452_v60  ;;  %v1456_v60 = vmul.f32 %v6519_v58, %v6423_v32 }
 0x282   : > { %v1302_v23 = vpop.f32.mrf.mxu0 }
 0x283   : > { %9343 = vst [vmem:[#allocation12_spill] sm:$0xff] %v6480_v51  ;;  %v6484_v46 = vmul.f32 %v1389_v61, %v1302_v23  ;;  %v1469_v12 = vmul.f32 %v1373_v11, %v1302_v23  ;;  %v6539_v11 = vld [vmem:[%s9221_s3 + $0xb0] sm:$0xff] }
 0x284   : > { %v1304_v33 = vpop.f32.mrf.mxu0  ;;  %v6546_v23 = vld [vmem:[%s9221_s3 + $0x30] sm:$0xff] }
 0x285   : > { %v6494_v40 = vadd.f32 %v1469_v12, %v1453_v21  ;;  %v1457_v12 = vmul.f32 %v6539_v11, %v6425_v5 }
 0x286   : > { %v1307_v2 = vpop.f32.mrf.mxu0 }
 0x287   : > { %9344 = vst [vmem:[#allocation13_spill] sm:$0xff] %v6494_v40  ;;  %v6498_v50 = vmul.f32 %v1390_v18, %v1307_v2  ;;  %v1470_v6 = vmul.f32 %v1374_v47, %v1307_v2  ;;  %v6557_v18 = vld [vmem:[%s9221_s3 + $0xb8] sm:$0xff]  ;;  %v6656_v40 = vld [vmem:[%s9221_s3 + $0x60] sm:$0xff] }
 0x288   : > { %v1309_v56 = vpop.f32.mrf.mxu0 }
 0x289   : > { %v6508_v26 = vadd.f32 %v1470_v6, %v1454_v42  ;;  %v6564_v42 = vld [vmem:[%s9221_s3 + $0x38] sm:$0xff]  ;;  %v6575_v56 = vld [vmem:[%s9221_s3 + $0xc0] sm:$0xff] }
 0x28a   : > { %v1312_v63 = vpop.f32.mrf.mxu0 }
 0x28b   : > { %9345 = vst [vmem:[#allocation14_spill] sm:$0xff] %v6508_v26  ;;  %v6514_v8 = vmul.f32 %v1391_v36, %v1312_v63  ;;  %v1471_v9 = vmul.f32 %v1375_v35, %v1312_v63  ;;  %v1458_v35 = vmul.f32 %v6557_v18, %v6427_v24  ;;  %v6661_v26 = vld [vmem:[%s9221_s3 + $0xe0] sm:$0xff] }
 0x28c   : > { %v1314_v3 = vpop.f32.mrf.mxu0 }
 0x28d   : > { %v6523_v27 = vadd.f32 %v1471_v9, %v1455_v30  ;;  %v6582_v9 = vld [vmem:[%s9221_s3 + $0x40] sm:$0xff] }
 0x28e   : > { %v6530_v20 = vpop.f32.mrf.mxu0 }
 0x28f   : > { %9346 = vst [vmem:[#allocation15_spill] sm:$0xff] %v6523_v27  ;;  %v1472_v53 = vmul.f32 %v6528_v29, %v6530_v20 }
 0x290   : > { %v1319_v61 = vpop.f32.mrf.mxu0 }
 0x291   : > { %v6541_v49 = vadd.f32 %v1472_v53, %v1456_v60  ;;  %v1459_v60 = vmul.f32 %v6575_v56, %v6429_v55  ;;  %v1396_v61 = vld [vmem:[%s9221_s3 + $0xc8] sm:$0xff] }
 0x292   : > { %v6548_v21 = vpop.f32.mrf.mxu0 }
 0x293   : > { %9347 = vst [vmem:[#allocation16_spill] sm:$0xff] %v6541_v49  ;;  %v1473_v47 = vmul.f32 %v6546_v23, %v6548_v21 }
 0x294   : > { %v1324_v33 = vpop.f32.mrf.mxu0 }
 0x295   : > { %v6559_v2 = vadd.f32 %v1473_v47, %v1457_v12  ;;  %v1380_v33 = vld [vmem:[%s9221_s3 + $0x48] sm:$0xff] }
 0x296   : > { %v6566_v6 = vpop.f32.mrf.mxu0 }
 0x297   : > { %9348 = vst [vmem:[#allocation17_spill] sm:$0xff] %v6559_v2  ;;  %v1474_v36 = vmul.f32 %v6564_v42, %v6566_v6  ;;  %v1415_v2 = vmul.f32 %v6656_v40, %v6437_v62 }
 0x298   : > { %v1329_v63 = vpop.f32.mrf.mxu0 }
 0x299   : > { %v6577_v30 = vadd.f32 %v1474_v36, %v1458_v35  ;;  %v1460_v36 = vmul.f32 %v1396_v61, %v6431_v7 }
 0x29a   : > { %v6584_v3 = vpop.f32.mrf.mxu0 }
 0x29b   : > { %9349 = vst [vmem:[#allocation18_spill] sm:$0xff] %v6577_v30  ;;  %v1475_v53 = vmul.f32 %v6582_v9, %v6584_v3 }
 0x29c   : > { %v1334_v12 = vpop.f32.mrf.mxu0 }
 0x29d   : > { %v6593_v47 = vadd.f32 %v1475_v53, %v1459_v60 }
 0x29e   : > { %v1337_v35 = vpop.f32.mrf.mxu0 }
 0x29f   : > { %9350 = vst [vmem:[#allocation19_spill] sm:$0xff] %v6593_v47  ;;  %v1476_v63 = vmul.f32 %v1380_v33, %v1337_v35 }
 0x2a0   : > { %v1339_v39 = vpop.f32.mrf.mxu0 }
 0x2a1   : > { %v6599_v10 = vadd.f32 %v1476_v63, %v1460_v36  ;;  %v6614_v39 = vld [vmem:[%s9221_s3 + $0x78] sm:$0xff] }
 0x2a2   : > { %v6601_v16 = vpop.f32.mrf.mxu0 }
 0x2a3   : > { %9351 = vst [vmem:[#allocation20_spill] sm:$0xff] %v6599_v10 }
 0x2a4   : > { %v1344_v48 = vpop.f32.mrf.mxu0 }
 0x2a5   : > { %v6619_v48 = vld [vmem:[%s9221_s3 + $0x70] sm:$0xff] }
 0x2a6   : > { %v6603_v37 = vpop.f32.mrf.mxu0  ;;  %v1417_v44 = vmul.f32 %v6619_v48, %v6441_v0 }
 0x2a7   : > { %9352 = vst [vmem:[#allocation21_spill] sm:$0xff] %v6603_v37 }
 0x2a8   : > { %v1349_v17 = vpop.f32.mrf.mxu0 }
 0x2a9   : > { %v6624_v17 = vld [vmem:[%s9221_s3 + $0xf0] sm:$0xff] }
 0x2aa   : > { %v6605_v12 = vpop.f32.mrf.mxu0 }
 0x2ab   : > { %v1431_v27 = vmul.f32 %v6661_v26, %v6605_v12 }
 0x2ac   : > { %v1354_v60 = vpop.f32.mrf.mxu0 }
 0x2ad   : > { %v1418_v60 = vmul.f32 %v6614_v39, %v6443_v25 }
 0x2ae   : > { %v6607_v53 = vpop.f32.mrf.mxu0 }
 0x2af   : > { %v1432_v1 = vmul.f32 %v6647_v28, %v6607_v53 }
 0x2b0   : > { %v1359_v13 = vpop.f32.mrf.mxu0 }
 0x2b1   : > { %v6629_v13 = vld [vmem:[%s9221_s3 + $0xf8] sm:$0xff] }
 0x2b2   : > { %v6609_v59 = vpop.f32.mrf.mxu0 }
 0x2b4   : > { %v1364_v36 = vpop.f32.mrf.mxu0 }
 0x2b5   : > { %v1433_v36 = vmul.f32 %v6624_v17, %v6609_v59 }
 0x2b6   : > { %v6631_v63 = vpop.f32.mrf.mxu0 }
 0x2b7   : > { %v1434_v4 = vmul.f32 %v6629_v13, %v6631_v63  ;;  %v1449_v49 = vsub.f32 %v1417_v44, %v1433_v36  ;;  %v6690_v36 = vld [vmem:[%s9221_s3 + $0xd0] sm:$0xff] }
 0x2b8   : > { %v1369_v41 = vpop.f32.mrf.mxu0  ;;  %v1429_v10 = vmul.f32 %v6690_v36, %v6601_v16 }
 0x2b9   : > { %v1450_v51 = vsub.f32 %v1418_v60, %v1434_v4  ;;  %v1416_v41 = vmul.f32 %v6642_v15, %v6439_v54  ;;  %v6670_v4 = vld [vmem:[%s9221_s3 + $0x58] sm:$0xff] }
 0x2ba   : > { %9353 = vst [vmem:[#allocation22_spill] sm:$0xff] %v6670_v4  ;;  %v6675_v60 = vld [vmem:[%s9221_s3 + $0xd8] sm:$0xff]  ;;  %v1414_v47 = vmul.f32 %v6670_v4, %v6435_v43  ;;  %v1427_v43 = vmul.f32 %v6575_v56, %v6584_v3  ;;  %v1425_v56 = vmul.f32 %v6539_v11, %v6548_v21  ;;  %v9369_v3 = vld [vmem:[#allocation15_spill] sm:$0xff] }
 0x2bb   : > { %1550 = vmatpush1.msra.mxu1 %v1450_v51  ;;  %9354 = vst [vmem:[#allocation23_spill] sm:$0xff] %v6675_v60  ;;  %v1430_v30 = vmul.f32 %v6675_v60, %v6603_v37  ;;  %v1448_v44 = vsub.f32 %v1416_v41, %v1432_v1  ;;  %v6685_v51 = vld [vmem:[%s9221_s3 + $0x50] sm:$0xff]  ;;  %v1447_v1 = vsub.f32 %v1415_v2, %v1431_v27 }
 0x2bc   : > { %1551 = vmatprep.subr.mxu1 %v9331_v34  ;;  %v1428_v41 = vmul.f32 %v1396_v61, %v1337_v35  ;;  %v1412_v37 = vmul.f32 %v1380_v33, %v6431_v7  ;;  %v1411_v27 = vmul.f32 %v6582_v9, %v6429_v55  ;;  %v1426_v2 = vmul.f32 %v6557_v18, %v6566_v6  ;;  %v9364_v6 = vld [vmem:[#allocation20_spill] sm:$0xff]  ;;  %v9371_v33 = vld [vmem:[#allocation13_spill] sm:$0xff] }
 0x2bd   : > { %1552 = vmatpush1.msra.mxu1 %v1449_v49  ;;  %v1413_v49 = vmul.f32 %v6685_v51, %v6433_v45  ;;  %v1446_v60 = vsub.f32 %v1414_v47, %v1430_v30  ;;  %v1410_v7 = vmul.f32 %v6564_v42, %v6427_v24  ;;  %v1409_v55 = vmul.f32 %v6546_v23, %v6425_v5  ;;  %v9367_v30 = vld [vmem:[#allocation17_spill] sm:$0xff]  ;;  %v9368_v9 = vld [vmem:[#allocation16_spill] sm:$0xff]  ;;  %v9370_v47 = vld [vmem:[#allocation14_spill] sm:$0xff] }
 0x2be   : > { %1553 = vmatprep.subr.mxu1 %v9331_v34  ;;  %v1444_v61 = vsub.f32 %v1412_v37, %v1428_v41  ;;  %v1424_v18 = vmul.f32 %v6519_v58, %v6530_v20  ;;  %v1408_v24 = vmul.f32 %v6528_v29, %v6423_v32  ;;  %v9355_v5 = vsub.f32 %v6511_v19, %v6514_v8  ;;  %v9372_v35 = vld [vmem:[#allocation12_spill] sm:$0xff]  ;;  %v1510_v41 = vld [vmem:[%s9220_s2 + $0x58] sm:$0xff] }
 0x2bf   : > { %1554 = vmatpush1.msra.mxu1 %v1448_v44  ;;  %v1445_v4 = vsub.f32 %v1413_v49, %v1429_v10  ;;  %v1443_v10 = vsub.f32 %v1411_v27, %v1427_v43  ;;  %v1442_v37 = vsub.f32 %v1410_v7, %v1426_v2  ;;  %v1441_v42 = vsub.f32 %v1409_v55, %v1425_v56  ;;  %v1505_v44 = vld [vmem:[%s9220_s2 + $0x30] sm:$0xff]  ;;  %v9377_v49 = vld [vmem:[#allocation5_spill] sm:$0xff]  ;;  %v9378_v2 = vld [vmem:[#allocation6_spill] sm:$0xff] }
 0x2c0   : > { %1555 = vmatprep.subr.mxu1 %v9331_v34  ;;  %v1440_v43 = vsub.f32 %v1408_v24, %v1424_v18  ;;  %v9356_v32 = vsub.f32 %v6496_v38, %v6498_v50  ;;  %v1482_v58 = vmul.f32 %v6614_v39, %v6631_v63  ;;  %v9357_v29 = vsub.f32 %v6482_v31, %v6484_v46  ;;  %v9373_v39 = vld [vmem:[#allocation11_spill] sm:$0xff]  ;;  %v1503_v63 = vld [vmem:[%s9220_s2 + $0x20] sm:$0xff]  ;;  %v1509_v27 = vld [vmem:[%s9220_s2 + $0x50] sm:$0xff] }
 0x2c1   : > { %1556 = vmatpush1.msra.mxu1 %v1447_v1  ;;  %v1466_v19 = vmul.f32 %v6629_v13, %v6443_v25  ;;  %v1481_v8 = vmul.f32 %v6619_v48, %v6609_v59  ;;  %v9358_v38 = vsub.f32 %v6468_v14, %v6470_v52  ;;  %v1465_v50 = vmul.f32 %v6624_v17, %v6441_v0  ;;  %v9360_v0 = vld [vmem:[#allocation21_spill] sm:$0xff]  ;;  %v9361_v52 = vld [vmem:[#allocation22_spill] sm:$0xff]  ;;  %v1501_v48 = vld [vmem:[%s9220_s2 + $0x10] sm:$0xff] }
 0x2c2   : > { %1557 = vmatprep.subr.mxu1 %v9331_v34  ;;  %v1480_v31 = vmul.f32 %v6642_v15, %v6607_v53  ;;  %v9359_v20 = vsub.f32 %v6454_v22, %v6456_v57  ;;  %v1464_v59 = vmul.f32 %v6647_v28, %v6439_v54  ;;  %v1479_v25 = vmul.f32 %v6656_v40, %v6605_v12  ;;  %v9362_v57 = vld [vmem:[#allocation10_spill] sm:$0xff]  ;;  %v9363_v23 = vld [vmem:[#allocation23_spill] sm:$0xff]  ;;  %v1502_v53 = vld [vmem:[%s9220_s2 + $0x18] sm:$0xff] }
 0x2c3   : > { %1558 = vmatpush1.msra.mxu1 %v1446_v60  ;;  %v1498_v46 = vadd.f32 %v1482_v58, %v1466_v19  ;;  %v1497_v14 = vadd.f32 %v1481_v8, %v1465_v50  ;;  %v1463_v15 = vmul.f32 %v6661_v26, %v6437_v62  ;;  %v1478_v11 = vmul.f32 %v9361_v52, %v9360_v0  ;;  %v1499_v12 = vld [vmem:[%s9220_s2] sm:$0xff]  ;;  %v1504_v13 = vld [vmem:[%s9220_s2 + $0x28] sm:$0xff]  ;;  %v1506_v60 = vld [vmem:[%s9220_s2 + $0x38] sm:$0xff] }
 0x2c4   : > { %1559 = vmatprep.subr.mxu1 %v9331_v34  ;;  %v1496_v22 = vadd.f32 %v1480_v31, %v1464_v59  ;;  %v1462_v28 = vmul.f32 %v9363_v23, %v9362_v57  ;;  %v1477_v54 = vmul.f32 %v6685_v51, %v6601_v16  ;;  %v1461_v62 = vmul.f32 %v6690_v36, %v6433_v45  ;;  %v9365_v16 = vld [vmem:[#allocation19_spill] sm:$0xff]  ;;  %v9366_v45 = vld [vmem:[#allocation18_spill] sm:$0xff]  ;;  %v9376_v51 = vld [vmem:[#allocation4_spill] sm:$0xff] }
 0x2c5   : > { %1560 = vmatpush1.msra.mxu1 %v1445_v4  ;;  %v1495_v40 = vadd.f32 %v1479_v25, %v1463_v15  ;;  %v9374_v17 = vld [vmem:[#allocation2_spill] sm:$0xff]  ;;  %v9375_v4 = vld [vmem:[#allocation3_spill] sm:$0xff]  ;;  %v1513_v55 = vld [vmem:[%s9220_s2 + $0x70] sm:$0xff] }
 0x2c6   : > { %1561 = vmatprep.subr.mxu1 %v9331_v34  ;;  %v1494_v26 = vadd.f32 %v1478_v11, %v1462_v28  ;;  %v1493_v21 = vadd.f32 %v1477_v54, %v1461_v62  ;;  %v1508_v36 = vld [vmem:[%s9220_s2 + $0x48] sm:$0xff]  ;;  %v1507_v1 = vld [vmem:[%s9220_s2 + $0x40] sm:$0xff]  ;;  %v9380_v18 = vld [vmem:[#allocation8_spill] sm:$0xff] }
 0x2c7   : > { %1562 = vmatpush1.msra.mxu1 %v1444_v61  ;;  %v1512_v61 = vld [vmem:[%s9220_s2 + $0x68] sm:$0xff]  ;;  %v1511_v7 = vld [vmem:[%s9220_s2 + $0x60] sm:$0xff]  ;;  %v1521_v19 = vld [vmem:[%s9220_s2 + $0xb0] sm:$0xff] }
 0x2c8   : > { %1563 = vmatprep.subr.mxu1 %v9331_v34  ;;  %v9379_v56 = vld [vmem:[#allocation7_spill] sm:$0xff]  ;;  %v1515_v24 = vld [vmem:[%s9220_s2 + $0x80] sm:$0xff]  ;;  %v1526_v50 = vld [vmem:[%s9220_s2 + $0xd8] sm:$0xff] }
 0x2c9   : > { %1564 = vmatpush1.msra.mxu1 %v1443_v10  ;;  %v1514_v10 = vld [vmem:[%s9220_s2 + $0x78] sm:$0xff]  ;;  %v1519_v58 = vld [vmem:[%s9220_s2 + $0xa0] sm:$0xff]  ;;  %v1524_v8 = vld [vmem:[%s9220_s2 + $0xc8] sm:$0xff] }
 0x2ca   : > { %1565 = vmatprep.subr.mxu1 %v9331_v34  ;;  %v1525_v31 = vld [vmem:[%s9220_s2 + $0xd0] sm:$0xff]  ;;  %v1530_v59 = vld [vmem:[%s9220_s2 + $0xf8] sm:$0xff]  ;;  %v1531_v15 = vld [vmem:[%s9220_s2 + $0x100] sm:$0xff] }
 0x2cb   : > { %1566 = vmatpush1.msra.mxu1 %v1442_v37  ;;  %v1516_v37 = vld [vmem:[%s9220_s2 + $0x88] sm:$0xff]  ;;  %v1529_v25 = vld [vmem:[%s9220_s2 + $0xf0] sm:$0xff]  ;;  %v1534_v0 = vld [vmem:[%s9220_s2 + $0x118] sm:$0xff] }
 0x2cc   : > { %1567 = vmatprep.subr.mxu1 %v9331_v34  ;;  %v1533_v52 = vld [vmem:[%s9220_s2 + $0x110] sm:$0xff]  ;;  %v1536_v11 = vld [vmem:[%s9220_s2 + $0x128] sm:$0xff]  ;;  %v1538_v57 = vld [vmem:[%s9220_s2 + $0x138] sm:$0xff] }
 0x2cd   : > { %1568 = vmatpush1.msra.mxu1 %v1441_v42  ;;  %v9381_v42 = vld [vmem:[#allocation9_spill] sm:$0xff]  ;;  %v1537_v23 = vld [vmem:[%s9220_s2 + $0x130] sm:$0xff]  ;;  %v1540_v28 = vld [vmem:[%s9220_s2 + $0x148] sm:$0xff] }
 0x2ce   : > { %1569 = vmatprep.subr.mxu1 %v9331_v34  ;;  %v1539_v54 = vld [vmem:[%s9220_s2 + $0x140] sm:$0xff]  ;;  %v1541_v62 = vld [vmem:[%s9220_s2 + $0x150] sm:$0xff] }
 0x2cf   : > { %1570 = vmatpush1.msra.mxu1 %v1440_v43  ;;  %v1518_v43 = vld [vmem:[%s9220_s2 + $0x98] sm:$0xff] }
 0x2d0   : > { %1571 = vmatprep.subr.mxu1 %v9331_v34 }
 0x2d1   : > { %1572 = vmatpush1.msra.mxu1 %v9355_v5  ;;  %v1517_v5 = vld [vmem:[%s9220_s2 + $0x90] sm:$0xff] }
 0x2d2   : > { %1573 = vmatprep.subr.mxu1 %v9331_v34 }
 0x2d3   : > { %1574 = vmatpush1.msra.mxu1 %v9356_v32  ;;  %v1520_v32 = vld [vmem:[%s9220_s2 + $0xa8] sm:$0xff] }
 0x2d4   : > { %1575 = vmatprep.subr.mxu1 %v9331_v34 }
 0x2d5   : > { %1576 = vmatpush1.msra.mxu1 %v9357_v29  ;;  %v1522_v29 = vld [vmem:[%s9220_s2 + $0xb8] sm:$0xff] }
 0x2d6   : > { %1577 = vmatprep.subr.mxu1 %v9331_v34 }
 0x2d7   : > { %1578 = vmatpush1.msra.mxu1 %v9358_v38  ;;  %v1523_v38 = vld [vmem:[%s9220_s2 + $0xc0] sm:$0xff] }
 0x2d8   : > { %1579 = vmatprep.subr.mxu1 %v9331_v34 }
 0x2d9   : > { %1580 = vmatpush1.msra.mxu1 %v9359_v20  ;;  %v1527_v20 = vld [vmem:[%s9220_s2 + $0xe0] sm:$0xff] }
 0x2da   : > { %1581 = vmatprep.subr.mxu1 %v9331_v34 }
 0x2db   : > { %1582 = vmatpush2.msra.mxu1 %v1498_v46  ;;  %v1528_v46 = vld [vmem:[%s9220_s2 + $0xe8] sm:$0xff] }
 0x2dc   : > { %1583 = vmatprep.subr.mxu1 %v9331_v34 }
 0x2dd   : > { %1584 = vmatpush2.msra.mxu1 %v1497_v14  ;;  %v1532_v14 = vld [vmem:[%s9220_s2 + $0x108] sm:$0xff] }
 0x2de   : > { %1585 = vmatprep.subr.mxu1 %v9331_v34 }
 0x2df   : > { %1586 = vmatpush2.msra.mxu1 %v1496_v22  ;;  %v1535_v22 = vld [vmem:[%s9220_s2 + $0x120] sm:$0xff] }
 0x2e0   : > { %1587 = vmatprep.subr.mxu1 %v9331_v34 }
 0x2e1   : > { %1588 = vmatpush2.msra.mxu1 %v1495_v40  ;;  %v1542_v40 = vld [vmem:[%s9220_s2 + $0x158] sm:$0xff] }
 0x2e2   : > { %1589 = vmatprep.subr.mxu1 %v9331_v34 }
 0x2e3   : > { %1590 = vmatpush2.msra.mxu1 %v1494_v26  ;;  %v1544_v26 = vld [vmem:[%s9220_s2 + $0x168] sm:$0xff] }
 0x2e4   : > { %1591 = vmatprep.subr.mxu1 %v9331_v34 }
 0x2e5   : > { %1592 = vmatpush2.msra.mxu1 %v1493_v21  ;;  %v1543_v21 = vld [vmem:[%s9220_s2 + $0x160] sm:$0xff] }
 0x2e6   : > { %1593 = vmatprep.subr.mxu1 %v9331_v34 }
 0x2e7   : > { %1594 = vmatpush2.msra.mxu1 %v9364_v6  ;;  %v1546_v6 = vld [vmem:[%s9220_s2 + $0x178] sm:$0xff] }
 0x2e8   : > { %1595 = vmatprep.subr.mxu1 %v9331_v34 }
 0x2e9   : > { %1596 = vmatpush2.msra.mxu1 %v9365_v16  ;;  %v1545_v16 = vld [vmem:[%s9220_s2 + $0x170] sm:$0xff] }
 0x2ea   : > { %1597 = vmatprep.subr.mxu1 %v9331_v34 }
 0x2eb   : > { %1598 = vmatpush2.msra.mxu1 %v9366_v45  ;;  %v1548_v45 = vld [vmem:[%s9220_s2 + $0x188] sm:$0xf] }
 0x2ec   : > { %1599 = vmatprep.subr.mxu1 %v9331_v34 }
 0x2ed   : > { %1600 = vmatpush2.msra.mxu1 %v9367_v30  ;;  %v1547_v30 = vld [vmem:[%s9220_s2 + $0x180] sm:$0xf] }
 0x2ee   : > { %1601 = vmatprep.subr.mxu1 %v9331_v34 }
 0x2ef   : > { %1602 = vmatpush2.msra.mxu1 %v9368_v9  ;;  %v5137_v9 = vld [vmem:[%s9223_s5 + $0xe4] ss:$16 sps:$4 sm:$0xff]  }
 0x2f0   : > { %1603 = vmatprep.subr.mxu1 %v9331_v34 }
 0x2f1   : > { %1604 = vmatpush2.msra.mxu1 %v9369_v3  ;;  %v5140_v3 = vld [vmem:[%s9223_s5 + $0xec] ss:$16 sps:$4 sm:$0xff]  }
 0x2f2   : > { %1605 = vmatprep.subr.mxu1 %v9331_v34  ;;  %2685 = vmatprep.subr.bf16.mxu0 %v5140_v3 }
 0x2f3   : > { %1606 = vmatpush2.msra.mxu1 %v9370_v47 }
 0x2f4   : > { %1607 = vmatprep.subr.mxu1 %v9331_v34 }
 0x2f5   : > { %1608 = vmatpush2.msra.mxu1 %v9371_v33 }
 0x2f6   : > { %1609 = vmatprep.subr.mxu1 %v9331_v34 }
 0x2f7   : > { %1610 = vmatpush2.msra.mxu1 %v9372_v35 }
 0x2f8   : > { %1611 = vmatprep.subr.mxu1 %v9331_v34 }
 0x2f9   : > { %1612 = vmatpush2.msra.mxu1 %v9373_v39 }
 0x2fa   : > { %1614 = vmatmul.mubr.f32.vlgmr.msra.gmra.mxu1 %v1499_v12  ;;  %4963 = vmatprep.subr.bf16.mxu1 %v9331_v34  ;;  %v5135_v12 = vld [vmem:[%s9223_s5 + $0xe0] ss:$16 sps:$4 sm:$0xff]  }
 0x2fb   : > { %1618 = vmatprep.mubr.f32.mxu1 %v1502_v53  ;;  %4964 = vmatpush3.bf16.msra.mxu1 %v9374_v17  ;;  %v5143_v17 = vld [vmem:[%s9223_s5 + $0xc4] ss:$16 sps:$4 sm:$0xff]  }
 0x2fc   : > { %4965 = vmatprep.subr.bf16.mxu1 %v9331_v34 }
 0x2fe   : > { %1619 = vmatmul.mubr.f32.gmra.mxu1 %v1501_v48 }
 0x2ff   : > { %1623 = vmatprep.mubr.f32.mxu1 %v1504_v13  ;;  %4966 = vmatpush3.bf16.msra.mxu1 %v9375_v4 }
 0x300   : > { %4967 = vmatprep.subr.bf16.mxu1 %v9331_v34 }
 0x302   : > { %1624 = vmatmul.mubr.f32.gmra.mxu1 %v1503_v63  ;;  %v5138_v63 = vld [vmem:[%s9223_s5 + $0xe8] ss:$16 sps:$4 sm:$0xff]  }
 0x303   : > { %1628 = vmatprep.mubr.f32.mxu1 %v1506_v60  ;;  %4968 = vmatpush3.bf16.msra.mxu1 %v9376_v51 }
 0x304   : > { %4969 = vmatprep.subr.bf16.mxu1 %v9331_v34 }
 0x306   : > { %1629 = vmatmul.mubr.f32.gmra.mxu1 %v1505_v44  ;;  %v5141_v44 = vld [vmem:[%s9223_s5 + $0xc0] ss:$16 sps:$4 sm:$0xff]  }
 0x307   : > { %1633 = vmatprep.mubr.f32.mxu1 %v1508_v36  ;;  %4970 = vmatpush3.bf16.msra.mxu1 %v9377_v49 }
 0x308   : > { %4971 = vmatprep.subr.bf16.mxu1 %v9331_v34 }
 0x30a   : > { %1634 = vmatmul.mubr.f32.gmra.mxu1 %v1507_v1 }
 0x30b   : > { %1638 = vmatprep.mubr.f32.mxu1 %v1510_v41  ;;  %4972 = vmatpush3.bf16.msra.mxu1 %v9378_v2 }
 0x30c   : > { %4973 = vmatprep.subr.bf16.mxu1 %v9331_v34 }
 0x30e   : > { %1639 = vmatmul.mubr.f32.gmra.mxu1 %v1509_v27 }
 0x30f   : > { %1643 = vmatprep.mubr.f32.mxu1 %v1512_v61  ;;  %4974 = vmatpush3.bf16.msra.mxu1 %v9379_v56 }
 0x310   : > { %4975 = vmatprep.subr.bf16.mxu1 %v9331_v34 }
 0x312   : > { %1644 = vmatmul.mubr.f32.gmra.mxu1 %v1511_v7 }
 0x313   : > { %1648 = vmatprep.mubr.f32.mxu1 %v1514_v10  ;;  %4976 = vmatpush3.bf16.msra.mxu1 %v9380_v18 }
 0x314   : > { %4977 = vmatprep.subr.bf16.mxu1 %v9331_v34 }
 0x316   : > { %1649 = vmatmul.mubr.f32.gmra.mxu1 %v1513_v55 }
 0x317   : > { %1653 = vmatprep.mubr.f32.mxu1 %v1516_v37  ;;  %4978 = vmatpush3.bf16.msra.mxu1 %v9381_v42 }
 0x318   : > { %2524 = vmatprep.subr.bf16.mxu1 %v5137_v9 }
 0x31a   : > { %1654 = vmatmul.mubr.f32.gmra.mxu1 %v1515_v24 }
 0x31b   : > { %1658 = vmatprep.mubr.f32.mxu1 %v1518_v43 }
 0x31e   : > { %1659 = vmatmul.mubr.f32.gmra.mxu1 %v1517_v5 }
 0x31f   : > { %1663 = vmatprep.mubr.f32.mxu1 %v1520_v32 }
 0x322   : > { %1664 = vmatmul.mubr.f32.gmra.mxu1 %v1519_v58 }
 0x323   : > { %1668 = vmatprep.mubr.f32.mxu1 %v1522_v29 }
 0x326   : > { %1669 = vmatmul.mubr.f32.gmra.mxu1 %v1521_v19 }
 0x327   : > { %1673 = vmatprep.mubr.f32.mxu1 %v1524_v8 }
 0x32a   : > { %1674 = vmatmul.mubr.f32.gmra.mxu1 %v1523_v38 }
 0x32b   : > { %1678 = vmatprep.mubr.f32.mxu1 %v1526_v50 }
 0x32e   : > { %1679 = vmatmul.mubr.f32.gmra.mxu1 %v1525_v31 }
 0x32f   : > { %1683 = vmatprep.mubr.f32.mxu1 %v1528_v46 }
 0x332   : > { %1684 = vmatmul.mubr.f32.gmra.mxu1 %v1527_v20 }
 0x333   : > { %1688 = vmatprep.mubr.f32.mxu1 %v1530_v59 }
 0x336   : > { %1689 = vmatmul.mubr.f32.gmra.mxu1 %v1529_v25 }
 0x337   : > { %1693 = vmatprep.mubr.f32.mxu1 %v1532_v14 }
 0x33a   : > { %1694 = vmatmul.mubr.f32.gmra.mxu1 %v1531_v15 }
 0x33b   : > { %1698 = vmatprep.mubr.f32.mxu1 %v1534_v0 }
 0x33e   : > { %1699 = vmatmul.mubr.f32.gmra.mxu1 %v1533_v52 }
 0x33f   : > { %1703 = vmatprep.mubr.f32.mxu1 %v1536_v11 }
 0x342   : > { %1704 = vmatmul.mubr.f32.gmra.mxu1 %v1535_v22 }
 0x343   : > { %1708 = vmatprep.mubr.f32.mxu1 %v1538_v57 }
 0x346   : > { %1709 = vmatmul.mubr.f32.gmra.mxu1 %v1537_v23 }
 0x347   : > { %1713 = vmatprep.mubr.f32.mxu1 %v1540_v28 }
 0x34a   : > { %1714 = vmatmul.mubr.f32.gmra.mxu1 %v1539_v54 }
 0x34b   : > { %1718 = vmatprep.mubr.f32.mxu1 %v1542_v40 }
 0x34e   : > { %1719 = vmatmul.mubr.f32.gmra.mxu1 %v1541_v62 }
 0x34f   : > { %1723 = vmatprep.mubr.f32.mxu1 %v1544_v26 }
 0x352   : > { %1724 = vmatmul.mubr.f32.gmra.mxu1 %v1543_v21 }
 0x353   : > { %1728 = vmatprep.mubr.f32.mxu1 %v1546_v6 }
 0x356   : > { %1729 = vmatmul.mubr.f32.gmra.mxu1 %v1545_v16 }
 0x357   : > { %1733 = vmatprep.mubr.f32.mxu1 %v1548_v45 }
 0x35a   : > { %1734 = vmatmul.mubr.f32.gmra.mxu1 %v1547_v30 }
 0x35b   : > { %4979 = vmatprep.mubr.msk.bf16.mxu1 %vm5570_vm0, %v9331_v34 }
 0x3ba   : > { %v6965_v47 = vpop.f32.mrf.mxu1 }
 0x3bb   : > { %v1754_v53 = vmul.f32 %v6965_v47, %v6965_v47 }
 0x3bc   : > { %v1617_v33 = vpop.f32.mrf.mxu1 }
 0x3be   : > { %v6967_v35 = vpop.f32.mrf.mxu1 }
 0x3bf   : > { %v1741_v39 = vpack.c.bf16 %v6967_v35, %v6965_v47  ;;  %v1755_v48 = vmul.f32 %v6967_v35, %v6967_v35 }
 0x3c0   : > { %v1622_v13 = vpop.f32.mrf.mxu1 }
 0x3c1   : > { %v1779_v4 = vpack.c.bf16 %v1755_v48, %v1754_v53  ;;  %4980 = vmatmul.mubr.bf16.vlgmr.msra.gmra.mxu1 %v1741_v39 }
 0x3c2   : > { %v6984_v60 = vpop.f32.mrf.mxu1  ;;  %4983 = vmatprep.mubr.msk.bf16.mxu1 %vm5570_vm0, %v9331_v34  ;;  %2525 = vmatpush1.bf16.msra.mxu1 %v5135_v12 }
 0x3c3   : > { %5048 = vmatmul.mubr.bf16.vlgmr.msra.gmra.mxu0 %v1779_v4  ;;  %2526 = vmatprep.subr.bf16.mxu1 %v5143_v17  ;;  %v1756_v1 = vmul.f32 %v6984_v60, %v6984_v60 }
 0x3c4   : > { %v1627_v51 = vpop.f32.mrf.mxu1  ;;  %5051 = vmatprep.mubr.msk.bf16.mxu0 %vm5570_vm0, %v9331_v34  ;;  %2686 = vmatpush1.bf16.msra.mxu0 %v5138_v63 }
 0x3c6   : > { %v6993_v36 = vpop.f32.mrf.mxu1  ;;  %2527 = vmatpush1.bf16.msra.mxu1 %v5141_v44 }
 0x3c7   : > { %v1742_v49 = vpack.c.bf16 %v6993_v36, %v6984_v60  ;;  %v1757_v41 = vmul.f32 %v6993_v36, %v6993_v36 }
 0x3c8   : > { %v1632_v27 = vpop.f32.mrf.mxu1 }
 0x3c9   : > { %v1780_v2 = vpack.c.bf16 %v1757_v41, %v1756_v1  ;;  %4984 = vmatmul.mubr.bf16.gmra.mxu1 %v1742_v49 }
 0x3ca   : > { %v7001_v61 = vpop.f32.mrf.mxu1  ;;  %4987 = vmatprep.mubr.msk.bf16.mxu1 %vm5570_vm0, %v9331_v34 }
 0x3cb   : > { %5052 = vmatmul.mubr.bf16.gmra.mxu0 %v1780_v2  ;;  %v1758_v10 = vmul.f32 %v7001_v61, %v7001_v61 }
 0x3cc   : > { %v1637_v7 = vpop.f32.mrf.mxu1  ;;  %5055 = vmatprep.mubr.msk.bf16.mxu0 %vm5570_vm0, %v9331_v34 }
 0x3ce   : > { %v7007_v56 = vpop.f32.mrf.mxu1 }
 0x3cf   : > { %v1743_v55 = vpack.c.bf16 %v7007_v56, %v7001_v61  ;;  %v1759_v18 = vmul.f32 %v7007_v56, %v7007_v56 }
 0x3d0   : > { %v1642_v37 = vpop.f32.mrf.mxu1 }
 0x3d1   : > { %v1781_v24 = vpack.c.bf16 %v1759_v18, %v1758_v10  ;;  %4988 = vmatmul.mubr.bf16.gmra.mxu1 %v1743_v55  ;;  %v5146_v18 = vld [vmem:[%s9223_s5 + $0xcc] ss:$16 sps:$4 sm:$0xff]  }
 0x3d2   : > { %v7015_v42 = vpop.f32.mrf.mxu1  ;;  %4991 = vmatprep.mubr.msk.bf16.mxu1 %vm5570_vm0, %v9331_v34  ;;  %2687 = vmatprep.subr.bf16.mxu0 %v5146_v18 }
 0x3d3   : > { %5056 = vmatmul.mubr.bf16.gmra.mxu0 %v1781_v24  ;;  %v1760_v32 = vmul.f32 %v7015_v42, %v7015_v42  ;;  %v5144_v24 = vld [vmem:[%s9223_s5 + $0xc8] ss:$16 sps:$4 sm:$0xff]  }
 0x3d4   : > { %v1647_v43 = vpop.f32.mrf.mxu1  ;;  %5059 = vmatprep.mubr.msk.bf16.mxu0 %vm5570_vm0, %v9331_v34  ;;  %2688 = vmatpush1.bf16.msra.mxu0 %v5144_v24  ;;  %v5182_v24 = vld [vmem:[%s9223_s5 + $0xc] ss:$16 sps:$4 sm:$0xff]  }
 0x3d6   : > { %v7021_v5 = vpop.f32.mrf.mxu1 }
 0x3d7   : > { %v1744_v58 = vpack.c.bf16 %v7021_v5, %v7015_v42  ;;  %v1761_v29 = vmul.f32 %v7021_v5, %v7021_v5 }
 0x3d8   : > { %v1652_v19 = vpop.f32.mrf.mxu1 }
 0x3d9   : > { %v1782_v8 = vpack.c.bf16 %v1761_v29, %v1760_v32  ;;  %4992 = vmatmul.mubr.bf16.gmra.mxu1 %v1744_v58  ;;  %v5149_v58 = vld [vmem:[%s9223_s5 + $0xa4] ss:$16 sps:$4 sm:$0xff]   ;;  %v5152_v29 = vld [vmem:[%s9223_s5 + $0xac] ss:$16 sps:$4 sm:$0xff]  }
 0x3da   : > { %v7029_v38 = vpop.f32.mrf.mxu1  ;;  %4995 = vmatprep.mubr.msk.bf16.mxu1 %vm5570_vm0, %v9331_v34  ;;  %2528 = vmatprep.subr.bf16.mxu1 %v5149_v58  ;;  %v5180_v58 = vld [vmem:[%s9223_s5 + $0x8] ss:$16 sps:$4 sm:$0xff]  }
 0x3db   : > { %5060 = vmatmul.mubr.bf16.gmra.mxu0 %v1782_v8  ;;  %v1762_v46 = vmul.f32 %v7029_v38, %v7029_v38  ;;  %v5147_v8 = vld [vmem:[%s9223_s5 + $0xa0] ss:$16 sps:$4 sm:$0xff]   ;;  %2689 = vmatprep.subr.bf16.mxu0 %v5152_v29  ;;  %v5571_v29 = vmov 0  }
 0x3dc   : > { %v1657_v50 = vpop.f32.mrf.mxu1  ;;  %5063 = vmatprep.mubr.msk.bf16.mxu0 %vm5570_vm0, %v9331_v34  ;;  %2529 = vmatpush1.bf16.msra.mxu1 %v5147_v8 }
 0x3dd   : > { %v5150_v50 = vld [vmem:[%s9223_s5 + $0xa8] ss:$16 sps:$4 sm:$0xff]  }
 0x3de   : > { %v7035_v31 = vpop.f32.mrf.mxu1  ;;  %2690 = vmatpush1.bf16.msra.mxu0 %v5150_v50 }
 0x3df   : > { %v1745_v20 = vpack.c.bf16 %v7035_v31, %v7029_v38  ;;  %v1763_v59 = vmul.f32 %v7035_v31, %v7035_v31 }
 0x3e0   : > { %v1662_v25 = vpop.f32.mrf.mxu1 }
 0x3e1   : > { %v1783_v14 = vpack.c.bf16 %v1763_v59, %v1762_v46  ;;  %4996 = vmatmul.mubr.bf16.gmra.mxu1 %v1745_v20 }
 0x3e2   : > { %v7043_v15 = vpop.f32.mrf.mxu1  ;;  %4999 = vmatprep.mubr.msk.bf16.mxu1 %vm5570_vm0, %v9331_v34 }
 0x3e3   : > { %5064 = vmatmul.mubr.bf16.gmra.mxu0 %v1783_v14  ;;  %v1764_v11 = vmul.f32 %v7043_v15, %v7043_v15  ;;  %v5155_v14 = vld [vmem:[%s9223_s5 + $0x84] ss:$16 sps:$4 sm:$0xff]  }
 0x3e4   : > { %v1667_v0 = vpop.f32.mrf.mxu1  ;;  %5067 = vmatprep.mubr.msk.bf16.mxu0 %vm5570_vm0, %v9331_v34  ;;  %2530 = vmatprep.subr.bf16.mxu1 %v5155_v14 }
 0x3e5   : > { %v5158_v0 = vld [vmem:[%s9223_s5 + $0x8c] ss:$16 sps:$4 sm:$0xff]  }
 0x3e6   : > { %v7049_v52 = vpop.f32.mrf.mxu1  ;;  %2691 = vmatprep.subr.bf16.mxu0 %v5158_v0  ;;  %v5183_v0 = vld [vmem:[%s9225_s7 + $0x78] sm:$0xff]  }
 0x3e7   : > { %v1746_v22 = vpack.c.bf16 %v7049_v52, %v7043_v15  ;;  %v1765_v57 = vmul.f32 %v7049_v52, %v7049_v52 }
 0x3e8   : > { %v1672_v23 = vpop.f32.mrf.mxu1 }
 0x3e9   : > { %v1784_v28 = vpack.c.bf16 %v1765_v57, %v1764_v11  ;;  %5000 = vmatmul.mubr.bf16.gmra.mxu1 %v1746_v22  ;;  %v5153_v22 = vld [vmem:[%s9223_s5 + $0x80] ss:$16 sps:$4 sm:$0xff]   ;;  %v5156_v57 = vld [vmem:[%s9223_s5 + $0x88] ss:$16 sps:$4 sm:$0xff]  }
 0x3ea   : > { %v7057_v54 = vpop.f32.mrf.mxu1  ;;  %5003 = vmatprep.mubr.msk.bf16.mxu1 %vm5570_vm0, %v9331_v34  ;;  %2531 = vmatpush1.bf16.msra.mxu1 %v5153_v22 }
 0x3eb   : > { %5068 = vmatmul.mubr.bf16.gmra.mxu0 %v1784_v28  ;;  %v1766_v26 = vmul.f32 %v7057_v54, %v7057_v54 }
 0x3ec   : > { %v1677_v40 = vpop.f32.mrf.mxu1  ;;  %5071 = vmatprep.mubr.msk.bf16.mxu0 %vm5570_vm0, %v9331_v34  ;;  %2692 = vmatpush1.bf16.msra.mxu0 %v5156_v57 }
 0x3ed   : > { %v5161_v40 = vld [vmem:[%s9223_s5 + $0x64] ss:$16 sps:$4 sm:$0xff]  }
 0x3ee   : > { %v7063_v62 = vpop.f32.mrf.mxu1  ;;  %2532 = vmatprep.subr.bf16.mxu1 %v5161_v40 }
 0x3ef   : > { %v1747_v21 = vpack.c.bf16 %v7063_v62, %v7057_v54  ;;  %v1767_v6 = vmul.f32 %v7063_v62, %v7063_v62 }
 0x3f0   : > { %v1682_v16 = vpop.f32.mrf.mxu1 }
 0x3f1   : > { %v1785_v45 = vpack.c.bf16 %v1767_v6, %v1766_v26  ;;  %5004 = vmatmul.mubr.bf16.gmra.mxu1 %v1747_v21  ;;  %v5164_v26 = vld [vmem:[%s9223_s5 + $0x6c] ss:$16 sps:$4 sm:$0xff]   ;;  %v5159_v6 = vld [vmem:[%s9223_s5 + $0x60] ss:$16 sps:$4 sm:$0xff]   ;;  %v5162_v16 = vld [vmem:[%s9223_s5 + $0x68] ss:$16 sps:$4 sm:$0xff]  }
 0x3f2   : > { %v7071_v30 = vpop.f32.mrf.mxu1  ;;  %5007 = vmatprep.mubr.msk.bf16.mxu1 %vm5570_vm0, %v9331_v34  ;;  %2693 = vmatprep.subr.bf16.mxu0 %v5164_v26 }
 0x3f3   : > { %5072 = vmatmul.mubr.bf16.gmra.mxu0 %v1785_v45  ;;  %v1768_v33 = vmul.f32 %v7071_v30, %v7071_v30  ;;  %2533 = vmatpush1.bf16.msra.mxu1 %v5159_v6 }
 0x3f4   : > { %v1687_v9 = vpop.f32.mrf.mxu1  ;;  %5075 = vmatprep.mubr.msk.bf16.mxu0 %vm5570_vm0, %v9331_v34  ;;  %2694 = vmatpush1.bf16.msra.mxu0 %v5162_v16 }
 0x3f6   : > { %v7077_v3 = vpop.f32.mrf.mxu1 }
 0x3f7   : > { %v1748_v12 = vpack.c.bf16 %v7077_v3, %v7071_v30  ;;  %v1769_v53 = vmul.f32 %v7077_v3, %v7077_v3 }
 0x3f8   : > { %v1692_v39 = vpop.f32.mrf.mxu1 }
 0x3f9   : > { %v1786_v48 = vpack.c.bf16 %v1769_v53, %v1768_v33  ;;  %5008 = vmatmul.mubr.bf16.gmra.mxu1 %v1748_v12  ;;  %v5167_v53 = vld [vmem:[%s9223_s5 + $0x44] ss:$16 sps:$4 sm:$0xff]   ;;  %v5170_v39 = vld [vmem:[%s9223_s5 + $0x4c] ss:$16 sps:$4 sm:$0xff]  }
 0x3fa   : > { %v7085_v17 = vpop.f32.mrf.mxu1  ;;  %5011 = vmatprep.mubr.msk.bf16.mxu1 %vm5570_vm0, %v9331_v34  ;;  %2534 = vmatprep.subr.bf16.mxu1 %v5167_v53 }
 0x3fb   : > { %5076 = vmatmul.mubr.bf16.gmra.mxu0 %v1786_v48  ;;  %v1770_v4 = vmul.f32 %v7085_v17, %v7085_v17  ;;  %2695 = vmatprep.subr.bf16.mxu0 %v5170_v39 }
 0x3fc   : > { %v1697_v13 = vpop.f32.mrf.mxu1  ;;  %5079 = vmatprep.mubr.msk.bf16.mxu0 %vm5570_vm0, %v9331_v34 }
 0x3fd   : > { %v5165_v13 = vld [vmem:[%s9223_s5 + $0x40] ss:$16 sps:$4 sm:$0xff]  }
 0x3fe   : > { %v7091_v63 = vpop.f32.mrf.mxu1  ;;  %2535 = vmatpush1.bf16.msra.mxu1 %v5165_v13 }
 0x3ff   : > { %v1749_v44 = vpack.c.bf16 %v7091_v63, %v7085_v17  ;;  %v1771_v51 = vmul.f32 %v7091_v63, %v7091_v63 }
 0x400   : > { %v1702_v1 = vpop.f32.mrf.mxu1 }
 0x401   : > { %v1787_v49 = vpack.c.bf16 %v1771_v51, %v1770_v4  ;;  %5012 = vmatmul.mubr.bf16.gmra.mxu1 %v1749_v44  ;;  %v5168_v4 = vld [vmem:[%s9223_s5 + $0x48] ss:$16 sps:$4 sm:$0xff]  }
 0x402   : > { %v7099_v41 = vpop.f32.mrf.mxu1  ;;  %5015 = vmatprep.mubr.msk.bf16.mxu1 %vm5570_vm0, %v9331_v34  ;;  %2696 = vmatpush1.bf16.msra.mxu0 %v5168_v4 }
 0x403   : > { %5080 = vmatmul.mubr.bf16.gmra.mxu0 %v1787_v49  ;;  %v1772_v7 = vmul.f32 %v7099_v41, %v7099_v41  ;;  %v5173_v49 = vld [vmem:[%s9223_s5 + $0x24] ss:$16 sps:$4 sm:$0xff]  }
 0x404   : > { %v1707_v27 = vpop.f32.mrf.mxu1  ;;  %5083 = vmatprep.mubr.msk.bf16.mxu0 %vm5570_vm0, %v9331_v34  ;;  %2536 = vmatprep.subr.bf16.mxu1 %v5173_v49 }
 0x405   : > { %v5176_v27 = vld [vmem:[%s9223_s5 + $0x2c] ss:$16 sps:$4 sm:$0xff]  }
 0x406   : > { %v7105_v2 = vpop.f32.mrf.mxu1  ;;  %2697 = vmatprep.subr.bf16.mxu0 %v5176_v27 }
 0x407   : > { %v1750_v10 = vpack.c.bf16 %v7105_v2, %v7099_v41  ;;  %v1773_v55 = vmul.f32 %v7105_v2, %v7105_v2 }
 0x408   : > { %v1712_v37 = vpop.f32.mrf.mxu1 }
 0x409   : > { %v1788_v43 = vpack.c.bf16 %v1773_v55, %v1772_v7  ;;  %5016 = vmatmul.mubr.bf16.gmra.mxu1 %v1750_v10  ;;  %v5171_v10 = vld [vmem:[%s9223_s5 + $0x20] ss:$16 sps:$4 sm:$0xff]   ;;  %v5174_v55 = vld [vmem:[%s9223_s5 + $0x28] ss:$16 sps:$4 sm:$0xff]  }
 0x40a   : > { %v7119_v32 = vpop.f32.mrf.mxu1  ;;  %5019 = vmatprep.mubr.msk.bf16.mxu1 %vm5570_vm0, %v9331_v34  ;;  %2537 = vmatpush1.bf16.msra.mxu1 %v5171_v10 }
 0x40b   : > { %5084 = vmatmul.mubr.bf16.gmra.mxu0 %v1788_v43  ;;  %v1774_v20 = vmul.f32 %v7119_v32, %v7119_v32  ;;  %v5177_v43 = vld [vmem:[%s9223_s5] ss:$16 sps:$4 sm:$0xff]  }
 0x40c   : > { %v1717_v19 = vpop.f32.mrf.mxu1  ;;  %5087 = vmatprep.mubr.msk.bf16.mxu0 %vm5570_vm0, %v9331_v34  ;;  %2698 = vmatpush1.bf16.msra.mxu0 %v5174_v55 }
 0x40d   : > { %2699 = vmatprep.subr.bf16.mxu0 %v5182_v24 }
 0x40e   : > { %v7137_v46 = vpop.f32.mrf.mxu1 }
 0x40f   : > { %v1751_v59 = vpack.c.bf16 %v7137_v46, %v7119_v32  ;;  %v1775_v25 = vmul.f32 %v7137_v46, %v7137_v46 }
 0x410   : > { %v1722_v11 = vpop.f32.mrf.mxu1  ;;  %2700 = vmatpush1.bf16.msra.mxu0 %v5180_v58 }
 0x411   : > { %v1789_v23 = vpack.c.bf16 %v1775_v25, %v1774_v20  ;;  %5020 = vmatmul.mubr.bf16.gmra.mxu1 %v1751_v59  ;;  %v7237_v11 = vld [vmem:[%s9225_s7 + $0xf8] sm:$0xff]  }
 0x412   : > { %v7157_v28 = vpop.f32.mrf.mxu1  ;;  %5023 = vmatprep.mubr.msk.bf16.mxu1 %vm5570_vm0, %v9331_v34  ;;  %4733 = vmatprep.subr.bf16.mxu0 %v7237_v11 }
 0x413   : > { %5088 = vmatmul.mubr.bf16.gmra.mxu0 %v1789_v23  ;;  %v1776_v9 = vmul.f32 %v7157_v28, %v7157_v28 }
 0x414   : > { %v1727_v21 = vpop.f32.mrf.mxu1  ;;  %5091 = vmatprep.mubr.msk.bf16.mxu0 %vm5570_vm0, %v9331_v34 }
 0x416   : > { %v7175_v45 = vpop.f32.mrf.mxu1 }
 0x417   : > { %v1752_v33 = vpack.c.bf16 %v7175_v45, %v7157_v28  ;;  %v1777_v12 = vmul.f32 %v7175_v45, %v7175_v45 }
 0x418   : > { %v1732_v48 = vpop.f32.mrf.mxu1 }
 0x419   : > { %v1790_v44 = vpack.c.bf16 %v1777_v12, %v1776_v9  ;;  %5024 = vmatmul.mubr.bf16.gmra.mxu1 %v1752_v33 }
 0x41a   : > { %v7195_v51 = vpop.f32.mrf.mxu1  ;;  %5027 = vmatprep.mubr.msk.bf16.mxu1 %vm5570_vm0, %v9331_v34 }
 0x41b   : > { %5092 = vmatmul.mubr.bf16.gmra.mxu0 %v1790_v44  ;;  %v1778_v1 = vmul.f32 %v7195_v51, %v7195_v51  ;;  %v1753_v18 = vpack.c.bf16 %v7195_v51, %v7195_v51 }
 0x41c   : > { %5095 = vmatprep.mubr.msk.bf16.mxu0 %vm5570_vm0, %v9331_v34  ;;  %v1737_v7 = vpop.f32.mrf.mxu1  ;;  %v5179_v34 = vld [vmem:[%s9223_s5 + $0x4] ss:$16 sps:$4 sm:$0xff]  }
 0x41d   : > { %v1791_v37 = vpack.c.bf16 %v1778_v1, %v1778_v1  ;;  %2538 = vmatprep.subr.bf16.mxu1 %v5179_v34 }
 0x41e   : > { %2539 = vmatpush1.bf16.msra.mxu1 %v5177_v43 }
 0x41f   : > { %4639 = vmatprep.subr.bf16.mxu1 %v5183_v0 }
 0x421   : > { %5028 = vmatmul.mubr.bf16.gmra.mxu1 %v1753_v18 }
 0x422   : > { %2556 = vmatprep.mubr.bf16.mxu1 %v5571_v29 }
 0x423   : > { %5096 = vmatmul.mubr.bf16.gmra.mxu0 %v1791_v37 }
 0x424   : > { %2717 = vmatprep.mubr.bf16.mxu0 %v5571_v29 }
 0x481   : > { %v1826_v19 = vpop.f32.mrf.mxu1 }
 0x482   : > { %v2064_v8 = vmul.f32 %v1826_v19, %v1826_v19 }
 0x483   : > { %v4981_v50 = vpop.f32.mrf.mxu1  ;;  %v1962_v20 = vpop.f32.mrf.mxu0 }
 0x484   : > { %v2089_v59 = vsub.f32 %v1962_v20, %v2064_v8 }
 0x485   : > { %v1829_v25 = vpop.f32.mrf.mxu1  ;;  %v5049_v14 = vpop.f32.mrf.mxu0 }
 0x486   : > { %v2114_v22 = vmax.f32 %v2089_v59, 0.0  ;;  %v2065_v57 = vmul.f32 %v1829_v25, %v1829_v25 }
 0x487   : > { %v4982_v23 = vpop.f32.mrf.mxu1  ;;  %v1965_v40 = vpop.f32.mrf.mxu0 }
 0x488   : > { %v2164_v26 = vadd.f32 1e-05, %v2114_v22  ;;  %v2090_v21 = vsub.f32 %v1965_v40, %v2065_v57  ;;  %v2139_v22 = vsub.f32 %v6965_v47, %v1826_v19 }
 0x489   : > { %v7240_v6 = vpop.f32.mrf.mxu1  ;;  %v5050_v16 = vpop.f32.mrf.mxu0 }
 0x48a   : > { %5265 = vrsqrt.f32 %v2164_v26  ;;  %v2115_v9 = vmax.f32 %v2090_v21, 0.0  ;;  %v2066_v33 = vmul.f32 %v7240_v6, %v7240_v6 }
 0x48b   : > { %v4985_v12 = vpop.f32.mrf.mxu1  ;;  %v1970_v53 = vpop.f32.mrf.mxu0 }
 0x48c   : > { %v2165_v39 = vadd.f32 1e-05, %v2115_v9  ;;  %v2091_v48 = vsub.f32 %v1970_v53, %v2066_v33  ;;  %v7262_v33 = vld [vmem:[%s9226_s8 + $0x2] ss:$0 sm:$0xff]  ;;  %v2140_v12 = vsub.f32 %v6967_v35, %v1829_v25 }
 0x48d   : > { %v7244_v13 = vpop.f32.mrf.mxu1  ;;  %v5053_v4 = vpop.f32.mrf.mxu0 }
 0x48e   : > { %5267 = vrsqrt.f32 %v2165_v39  ;;  %v2116_v44 = vmax.f32 %v2091_v48, 0.0  ;;  %v2067_v1 = vmul.f32 %v7244_v13, %v7244_v13 }
 0x48f   : > { %v4986_v49 = vpop.f32.mrf.mxu1  ;;  %v1973_v27 = vpop.f32.mrf.mxu0 }
 0x490   : > { %v2166_v7 = vadd.f32 1e-05, %v2116_v44  ;;  %v2092_v10 = vsub.f32 %v1973_v27, %v2067_v1 }
 0x491   : > { %v7248_v55 = vpop.f32.mrf.mxu1  ;;  %v5054_v18 = vpop.f32.mrf.mxu0 }
 0x492   : > { %5269 = vrsqrt.f32 %v2166_v7  ;;  %v2117_v37 = vmax.f32 %v2092_v10, 0.0  ;;  %v2068_v34 = vmul.f32 %v7248_v55, %v7248_v55  ;;  %v7276_v18 = vld [vmem:[%s9226_s8 + $0x3] ss:$0 sm:$0xff] }
 0x493   : > { %v4989_v24 = vpop.f32.mrf.mxu1  ;;  %v1978_v43 = vpop.f32.mrf.mxu0 }
 0x494   : > { %v2167_v58 = vadd.f32 1e-05, %v2117_v37  ;;  %v2093_v8 = vsub.f32 %v1978_v43, %v2068_v34  ;;  %v2141_v34 = vsub.f32 %v6984_v60, %v7240_v6 }
 0x495   : > { %v7252_v50 = vpop.f32.mrf.mxu1  ;;  %v5057_v20 = vpop.f32.mrf.mxu0 }
 0x496   : > { %5271 = vrsqrt.f32 %v2167_v58  ;;  %v2118_v59 = vmax.f32 %v2093_v8, 0.0  ;;  %v2069_v14 = vmul.f32 %v7252_v50, %v7252_v50 }
 0x497   : > { %v5266_v0 = vpop.eup %5265  ;;  %v4990_v57 = vpop.f32.mrf.mxu1 }
 0x498   : > { %v1981_v23 = vpop.f32.mrf.mxu0  ;;  %v2168_v40 = vadd.f32 1e-05, %v2118_v59  ;;  %v2214_v21 = vmul.f32 %v5266_v0, %v2139_v22  ;;  %v2142_v57 = vsub.f32 %v6993_v36, %v7244_v13  ;;  %v5186_v13 = vld [vmem:[%s9225_s7 + $0x70] sm:$0xff]  }
 0x499   : > { %v2094_v26 = vsub.f32 %v1981_v23, %v2069_v14  ;;  %v7257_v16 = vpop.f32.mrf.mxu1 }
 0x49a   : > { %v5058_v9 = vpop.f32.mrf.mxu0  ;;  %5273 = vrsqrt.f32 %v2168_v40  ;;  %v2070_v47 = vmul.f32 %v7257_v16, %v7257_v16  ;;  %v2243_v49 = vmul.f32 %v7262_v33, %v2214_v21 }
 0x49b   : > { %v2119_v53 = vmax.f32 %v2094_v26, 0.0  ;;  %v5268_v19 = vpop.eup %5267  ;;  %v4993_v39 = vpop.f32.mrf.mxu1  ;;  %v5184_v9 = vld [vmem:[%s9225_s7 + $0x38] sm:$0xff]  }
 0x49c   : > { %v1986_v48 = vpop.f32.mrf.mxu0  ;;  %v2215_v4 = vmul.f32 %v5268_v19, %v2140_v12  ;;  %v2272_v0 = vadd.f32 %v7276_v18, %v2243_v49  ;;  %v5187_v12 = vld [vmem:[%s9225_s7 + $0xb8] sm:$0xff]   ;;  %v2143_v49 = vsub.f32 %v7001_v61, %v7248_v55  ;;  %v2144_v61 = vsub.f32 %v7007_v56, %v7252_v50 }
 0x49d   : > { %v2169_v44 = vadd.f32 1e-05, %v2119_v53  ;;  %v2095_v1 = vsub.f32 %v1986_v48, %v2070_v47  ;;  %v7268_v27 = vpop.f32.mrf.mxu1 }
 0x49e   : > { %v5061_v7 = vpop.f32.mrf.mxu0  ;;  %v2244_v10 = vmul.f32 %v7262_v33, %v2215_v4  ;;  %v2071_v25 = vmul.f32 %v7268_v27, %v7268_v27 }
 0x49f   : > { %5275 = vrsqrt.f32 %v2169_v44  ;;  %v2120_v35 = vmax.f32 %v2095_v1, 0.0  ;;  %v5270_v37 = vpop.eup %5269  ;;  %v4994_v24 = vpop.f32.mrf.mxu1 }
 0x4a0   : > { %v1989_v43 = vpop.f32.mrf.mxu0  ;;  %v2273_v20 = vadd.f32 %v7276_v18, %v2244_v10  ;;  %v2216_v22 = vmul.f32 %v5270_v37, %v2141_v34 }
 0x4a1   : > { %v2170_v58 = vadd.f32 1e-05, %v2120_v35  ;;  %v2096_v8 = vsub.f32 %v1989_v43, %v2071_v25  ;;  %v7281_v59 = vpop.f32.mrf.mxu1 }
 0x4a2   : > { %v5062_v14 = vpop.f32.mrf.mxu0  ;;  %v2072_v60 = vmul.f32 %v7281_v59, %v7281_v59  ;;  %v2297_v21 = vpack.c.bf16 %v2273_v20, %v2272_v0  ;;  %v2245_v48 = vmul.f32 %v7262_v33, %v2216_v22 }
 0x4a3   : > { %5277 = vrsqrt.f32 %v2170_v58  ;;  %v2121_v23 = vmax.f32 %v2096_v8, 0.0  ;;  %v5272_v6 = vpop.eup %5271  ;;  %v4997_v40 = vpop.f32.mrf.mxu1 }
 0x4a4   : > { %v1994_v26 = vpop.f32.mrf.mxu0  ;;  %v2217_v36 = vmul.f32 %v5272_v6, %v2142_v57  ;;  %2557 = vmatmul.mubr.bf16.vlgmr.msra.gmra.mxu1 %v2297_v21  ;;  %2718 = vmatmul.mubr.bf16.vlgmr.msra.gmra.mxu0 %v2297_v21  ;;  %v2274_v43 = vadd.f32 %v7276_v18, %v2245_v48 }
 0x4a5   : > { %v2171_v53 = vadd.f32 1e-05, %v2121_v23  ;;  %v2097_v47 = vsub.f32 %v1994_v26, %v2072_v60  ;;  %v7297_v19 = vpop.f32.mrf.mxu1  ;;  %2566 = vmatprep.mubr.bf16.mxu1 %v5571_v29  ;;  %2727 = vmatprep.mubr.bf16.mxu0 %v5571_v29 }
 0x4a6   : > { %v5065_v39 = vpop.f32.mrf.mxu0  ;;  %v2073_v44 = vmul.f32 %v7297_v19, %v7297_v19  ;;  %v2246_v35 = vmul.f32 %v7262_v33, %v2217_v36  ;;  %4640 = vmatpush3.bf16.msra.mxu1 %v5184_v9  ;;  %4734 = vmatpush3.bf16.msra.mxu0 %v5187_v12  ;;  %v2145_v12 = vsub.f32 %v7015_v42, %v7257_v16 }
 0x4a7   : > { %5279 = vrsqrt.f32 %v2171_v53  ;;  %v2122_v4 = vmax.f32 %v2097_v47, 0.0  ;;  %v5274_v1 = vpop.eup %5273  ;;  %v4998_v7 = vpop.f32.mrf.mxu1  ;;  %4641 = vmatprep.subr.bf16.mxu1 %v5186_v13 }
 0x4a8   : > { %v1997_v10 = vpop.f32.mrf.mxu0  ;;  %v2275_v58 = vadd.f32 %v7276_v18, %v2246_v35  ;;  %v2218_v8 = vmul.f32 %v5274_v1, %v2143_v49  ;;  %v2146_v7 = vsub.f32 %v7021_v5, %v7268_v27 }
 0x4a9   : > { %v2172_v25 = vadd.f32 1e-05, %v2122_v4  ;;  %v2098_v37 = vsub.f32 %v1997_v10, %v2073_v44  ;;  %v7307_v34 = vpop.f32.mrf.mxu1 }
 0x4aa   : > { %v5066_v24 = vpop.f32.mrf.mxu0  ;;  %v2074_v20 = vmul.f32 %v7307_v34, %v7307_v34  ;;  %v2298_v57 = vpack.c.bf16 %v2275_v58, %v2274_v43  ;;  %v2247_v21 = vmul.f32 %v7262_v33, %v2218_v8 }
 0x4ab   : > { %5281 = vrsqrt.f32 %v2172_v25  ;;  %v2123_v55 = vmax.f32 %v2098_v37, 0.0  ;;  %v5001_v0 = vpop.f32.mrf.mxu1 }
 0x4ac   : > { %v5276_v14 = vpop.eup %5275  ;;  %v2002_v22 = vpop.f32.mrf.mxu0  ;;  %2567 = vmatmul.mubr.bf16.gmra.mxu1 %v2298_v57  ;;  %2728 = vmatmul.mubr.bf16.gmra.mxu0 %v2298_v57  ;;  %v2276_v44 = vadd.f32 %v7276_v18, %v2247_v21 }
 0x4ad   : > { %v2173_v23 = vadd.f32 1e-05, %v2123_v55  ;;  %v2099_v60 = vsub.f32 %v2002_v22, %v2074_v20  ;;  %v2219_v6 = vmul.f32 %v5276_v14, %v2144_v61  ;;  %v7315_v40 = vpop.f32.mrf.mxu1  ;;  %2576 = vmatprep.mubr.bf16.mxu1 %v5571_v29  ;;  %2737 = vmatprep.mubr.bf16.mxu0 %v5571_v29  ;;  %v2147_v14 = vsub.f32 %v7029_v38, %v7281_v59 }
 0x4ae   : > { %v5069_v26 = vpop.f32.mrf.mxu0  ;;  %v2075_v50 = vmul.f32 %v7315_v40, %v7315_v40 }
 0x4af   : > { %5283 = vrsqrt.f32 %v2173_v23  ;;  %v2124_v56 = vmax.f32 %v2099_v60, 0.0  ;;  %v5002_v53 = vpop.f32.mrf.mxu1  ;;  %v2248_v36 = vmul.f32 %v7262_v33, %v2219_v6 }
 0x4b0   : > { %v5278_v9 = vpop.eup %5277  ;;  %v2005_v47 = vpop.f32.mrf.mxu0 }
 0x4b1   : > { %v2174_v13 = vadd.f32 1e-05, %v2124_v56  ;;  %v2100_v39 = vsub.f32 %v2005_v47, %v2075_v50  ;;  %v7325_v48 = vpop.f32.mrf.mxu1  ;;  %v2277_v1 = vadd.f32 %v7276_v18, %v2248_v36  ;;  %v2220_v49 = vmul.f32 %v5278_v9, %v2145_v12 }
 0x4b2   : > { %v5070_v4 = vpop.f32.mrf.mxu0  ;;  %v2076_v42 = vmul.f32 %v7325_v48, %v7325_v48  ;;  %v2148_v9 = vsub.f32 %v7035_v31, %v7297_v19 }
 0x4b3   : > { %5285 = vrsqrt.f32 %v2174_v13  ;;  %v2125_v10 = vmax.f32 %v2100_v39, 0.0  ;;  %v5005_v35 = vpop.f32.mrf.mxu1  ;;  %v2299_v37 = vpack.c.bf16 %v2277_v1, %v2276_v44  ;;  %v2249_v55 = vmul.f32 %v7262_v33, %v2220_v49 }
 0x4b4   : > { %v5280_v16 = vpop.eup %5279  ;;  %v2010_v25 = vpop.f32.mrf.mxu0 }
 0x4b5   : > { %v2175_v24 = vadd.f32 1e-05, %v2125_v10  ;;  %v2101_v43 = vsub.f32 %v2010_v25, %v2076_v42  ;;  %v2221_v58 = vmul.f32 %v5280_v16, %v2146_v7  ;;  %2577 = vmatmul.mubr.bf16.gmra.mxu1 %v2299_v37  ;;  %2738 = vmatmul.mubr.bf16.gmra.mxu0 %v2299_v37  ;;  %v7333_v8 = vpop.f32.mrf.mxu1  ;;  %v2278_v21 = vadd.f32 %v7276_v18, %v2249_v55 }
 0x4b6   : > { %v5073_v61 = vpop.f32.mrf.mxu0  ;;  %v2077_v27 = vmul.f32 %v7333_v8, %v7333_v8  ;;  %2586 = vmatprep.mubr.bf16.mxu1 %v5571_v29  ;;  %2747 = vmatprep.mubr.bf16.mxu0 %v5571_v29  ;;  %v2149_v10 = vsub.f32 %v7043_v15, %v7307_v34 }
 0x4b7   : > { %5287 = vrsqrt.f32 %v2175_v24  ;;  %v2126_v5 = vmax.f32 %v2101_v43, 0.0  ;;  %v5006_v0 = vpop.f32.mrf.mxu1  ;;  %v2250_v57 = vmul.f32 %v7262_v33, %v2221_v58 }
 0x4b8   : > { %v5282_v20 = vpop.eup %5281  ;;  %v2013_v22 = vpop.f32.mrf.mxu0 }
 0x4b9   : > { %v2176_v23 = vadd.f32 1e-05, %v2126_v5  ;;  %v2102_v60 = vsub.f32 %v2013_v22, %v2077_v27  ;;  %v7343_v6 = vpop.f32.mrf.mxu1  ;;  %v2279_v56 = vadd.f32 %v7276_v18, %v2250_v57  ;;  %v2222_v50 = vmul.f32 %v5282_v20, %v2147_v14 }
 0x4ba   : > { %v5074_v26 = vpop.f32.mrf.mxu0  ;;  %v2078_v38 = vmul.f32 %v7343_v6, %v7343_v6  ;;  %v2150_v5 = vsub.f32 %v7049_v52, %v7315_v40 }
 0x4bb   : > { %5289 = vrsqrt.f32 %v2176_v23  ;;  %v2127_v12 = vmax.f32 %v2102_v60, 0.0  ;;  %v5009_v53 = vpop.f32.mrf.mxu1  ;;  %v2300_v36 = vpack.c.bf16 %v2279_v56, %v2278_v21  ;;  %v2251_v49 = vmul.f32 %v7262_v33, %v2222_v50 }
 0x4bc   : > { %v5284_v59 = vpop.eup %5283  ;;  %v2018_v47 = vpop.f32.mrf.mxu0  ;;  %v2151_v50 = vsub.f32 %v7057_v54, %v7325_v48 }
 0x4bd   : > { %v2177_v13 = vadd.f32 1e-05, %v2127_v12  ;;  %v2103_v39 = vsub.f32 %v2018_v47, %v2078_v38  ;;  %v2223_v4 = vmul.f32 %v5284_v59, %v2148_v9  ;;  %2587 = vmatmul.mubr.bf16.gmra.mxu1 %v2300_v36  ;;  %2748 = vmatmul.mubr.bf16.gmra.mxu0 %v2300_v36  ;;  %v7351_v44 = vpop.f32.mrf.mxu1  ;;  %v2280_v58 = vadd.f32 %v7276_v18, %v2251_v49 }
 0x4be   : > { %v5077_v1 = vpop.f32.mrf.mxu0  ;;  %v2079_v19 = vmul.f32 %v7351_v44, %v7351_v44  ;;  %2596 = vmatprep.mubr.bf16.mxu1 %v5571_v29  ;;  %2757 = vmatprep.mubr.bf16.mxu0 %v5571_v29 }
 0x4bf   : > { %5291 = vrsqrt.f32 %v2177_v13  ;;  %v2128_v31 = vmax.f32 %v2103_v39, 0.0  ;;  %v5010_v42 = vpop.f32.mrf.mxu1  ;;  %v2252_v35 = vmul.f32 %v7262_v33, %v2223_v4  ;;  %v2152_v1 = vsub.f32 %v7063_v62, %v7333_v8 }
 0x4c0   : > { %v5286_v7 = vpop.eup %5285  ;;  %v2021_v16 = vpop.f32.mrf.mxu0 }
 0x4c1   : > { %v2178_v25 = vadd.f32 1e-05, %v2128_v31  ;;  %v2104_v37 = vsub.f32 %v2021_v16, %v2079_v19  ;;  %v7361_v24 = vpop.f32.mrf.mxu1  ;;  %v2281_v61 = vadd.f32 %v7276_v18, %v2252_v35  ;;  %v2224_v55 = vmul.f32 %v5286_v7, %v2149_v10 }
 0x4c2   : > { %v5078_v43 = vpop.f32.mrf.mxu0  ;;  %v2080_v15 = vmul.f32 %v7361_v24, %v7361_v24 }
 0x4c3   : > { %5293 = vrsqrt.f32 %v2178_v25  ;;  %v2129_v27 = vmax.f32 %v2104_v37, 0.0  ;;  %v5013_v20 = vpop.f32.mrf.mxu1  ;;  %v2301_v0 = vpack.c.bf16 %v2281_v61, %v2280_v58  ;;  %v2253_v21 = vmul.f32 %v7262_v33, %v2224_v55 }
 0x4c4   : > { %v5288_v34 = vpop.eup %5287  ;;  %v2026_v14 = vpop.f32.mrf.mxu0  ;;  %v2153_v58 = vsub.f32 %v7071_v30, %v7343_v6 }
 0x4c5   : > { %v2179_v22 = vadd.f32 1e-05, %v2129_v27  ;;  %v2105_v57 = vsub.f32 %v2026_v14, %v2080_v15  ;;  %v2225_v23 = vmul.f32 %v5288_v34, %v2150_v5  ;;  %2597 = vmatmul.mubr.bf16.gmra.mxu1 %v2301_v0  ;;  %2758 = vmatmul.mubr.bf16.gmra.mxu0 %v2301_v0  ;;  %v7369_v60 = vpop.f32.mrf.mxu1  ;;  %v2282_v13 = vadd.f32 %v7276_v18, %v2253_v21 }
 0x4c6   : > { %v5081_v26 = vpop.f32.mrf.mxu0  ;;  %v2081_v40 = vmul.f32 %v7369_v60, %v7369_v60  ;;  %2606 = vmatprep.mubr.bf16.mxu1 %v5571_v29  ;;  %2767 = vmatprep.mubr.bf16.mxu0 %v5571_v29 }
 0x4c7   : > { %5295 = vrsqrt.f32 %v2179_v22  ;;  %v2130_v52 = vmax.f32 %v2105_v57, 0.0  ;;  %v5014_v9 = vpop.f32.mrf.mxu1  ;;  %v2254_v38 = vmul.f32 %v7262_v33, %v2225_v23  ;;  %v2154_v57 = vsub.f32 %v7077_v3, %v7351_v44 }
 0x4c8   : > { %v5290_v56 = vpop.eup %5289  ;;  %v2029_v12 = vpop.f32.mrf.mxu0 }
 0x4c9   : > { %v2180_v59 = vadd.f32 1e-05, %v2130_v52  ;;  %v2106_v53 = vsub.f32 %v2029_v12, %v2081_v40  ;;  %v7379_v47 = vpop.f32.mrf.mxu1  ;;  %v2283_v39 = vadd.f32 %v7276_v18, %v2254_v38  ;;  %v2226_v4 = vmul.f32 %v5290_v56, %v2151_v50 }
 0x4ca   : > { %v5082_v36 = vpop.f32.mrf.mxu0  ;;  %v2082_v54 = vmul.f32 %v7379_v47, %v7379_v47 }
 0x4cb   : > { %5297 = vrsqrt.f32 %v2180_v59  ;;  %v2131_v49 = vmax.f32 %v2106_v53, 0.0  ;;  %v5017_v31 = vpop.f32.mrf.mxu1  ;;  %v2302_v7 = vpack.c.bf16 %v2283_v39, %v2282_v13  ;;  %v2255_v37 = vmul.f32 %v7262_v33, %v2226_v4 }
 0x4cc   : > { %v5292_v48 = vpop.eup %5291  ;;  %v2034_v19 = vpop.f32.mrf.mxu0  ;;  %v2155_v53 = vsub.f32 %v7085_v17, %v7361_v24 }
 0x4cd   : > { %v2181_v10 = vadd.f32 1e-05, %v2131_v49  ;;  %v2107_v42 = vsub.f32 %v2034_v19, %v2082_v54  ;;  %v2227_v16 = vmul.f32 %v5292_v48, %v2152_v1  ;;  %2607 = vmatmul.mubr.bf16.gmra.mxu1 %v2302_v7  ;;  %2768 = vmatmul.mubr.bf16.gmra.mxu0 %v2302_v7  ;;  %v7387_v35 = vpop.f32.mrf.mxu1  ;;  %v2284_v14 = vadd.f32 %v7276_v18, %v2255_v37 }
 0x4ce   : > { %v5085_v25 = vpop.f32.mrf.mxu0  ;;  %v2083_v8 = vmul.f32 %v7387_v35, %v7387_v35  ;;  %2616 = vmatprep.mubr.bf16.mxu1 %v5571_v29  ;;  %2777 = vmatprep.mubr.bf16.mxu0 %v5571_v29  ;;  %v2156_v7 = vsub.f32 %v7091_v63, %v7369_v60  ;;  %v2157_v63 = vsub.f32 %v7099_v41, %v7379_v47 }
 0x4cf   : > { %5299 = vrsqrt.f32 %v2181_v10  ;;  %v2132_v62 = vmax.f32 %v2107_v42, 0.0  ;;  %v5018_v61 = vpop.f32.mrf.mxu1  ;;  %v2256_v5 = vmul.f32 %v7262_v33, %v2227_v16 }
 0x4d0   : > { %v5294_v43 = vpop.eup %5293  ;;  %v2037_v55 = vpop.f32.mrf.mxu0 }
 0x4d1   : > { %v2182_v27 = vadd.f32 1e-05, %v2132_v62  ;;  %v2108_v15 = vsub.f32 %v2037_v55, %v2083_v8  ;;  %v7397_v34 = vpop.f32.mrf.mxu1  ;;  %v2285_v0 = vadd.f32 %v7276_v18, %v2256_v5  ;;  %v2228_v22 = vmul.f32 %v5294_v43, %v2153_v58 }
 0x4d2   : > { %v5086_v20 = vpop.f32.mrf.mxu0  ;;  %v2084_v30 = vmul.f32 %v7397_v34, %v7397_v34 }
 0x4d3   : > { %5301 = vrsqrt.f32 %v2182_v27  ;;  %v2133_v23 = vmax.f32 %v2108_v15, 0.0  ;;  %v5021_v26 = vpop.f32.mrf.mxu1  ;;  %v2303_v52 = vpack.c.bf16 %v2285_v0, %v2284_v14  ;;  %v2257_v38 = vmul.f32 %v7262_v33, %v2228_v22 }
 0x4d4   : > { %v5296_v6 = vpop.eup %5295  ;;  %v2042_v21 = vpop.f32.mrf.mxu0 }
 0x4d5   : > { %v2183_v40 = vadd.f32 1e-05, %v2133_v23  ;;  %v2109_v56 = vsub.f32 %v2042_v21, %v2084_v30  ;;  %v2229_v50 = vmul.f32 %v5296_v6, %v2154_v57  ;;  %2617 = vmatmul.mubr.bf16.gmra.mxu1 %v2303_v52  ;;  %2778 = vmatmul.mubr.bf16.gmra.mxu0 %v2303_v52  ;;  %v7405_v9 = vpop.f32.mrf.mxu1  ;;  %v2286_v48 = vadd.f32 %v7276_v18, %v2257_v38 }
 0x4d6   : > { %v5089_v12 = vpop.f32.mrf.mxu0  ;;  %v2085_v44 = vmul.f32 %v7405_v9, %v7405_v9  ;;  %2626 = vmatprep.mubr.bf16.mxu1 %v5571_v29  ;;  %2787 = vmatprep.mubr.bf16.mxu0 %v5571_v29  ;;  %v2158_v30 = vsub.f32 %v7105_v2, %v7387_v35  ;;  %v2159_v2 = vsub.f32 %v7119_v32, %v7397_v34 }
 0x4d7   : > { %5303 = vrsqrt.f32 %v2183_v40  ;;  %v2134_v3 = vmax.f32 %v2109_v56, 0.0  ;;  %v5022_v36 = vpop.f32.mrf.mxu1  ;;  %v2258_v39 = vmul.f32 %v7262_v33, %v2229_v50  ;;  %v2160_v32 = vsub.f32 %v7137_v46, %v7405_v9 }
 0x4d8   : > { %v5298_v59 = vpop.eup %5297  ;;  %v2045_v13 = vpop.f32.mrf.mxu0 }
 0x4d9   : > { %v2184_v4 = vadd.f32 1e-05, %v2134_v3  ;;  %v2110_v1 = vsub.f32 %v2045_v13, %v2085_v44  ;;  %v7415_v49 = vpop.f32.mrf.mxu1  ;;  %v2287_v31 = vadd.f32 %v7276_v18, %v2258_v39  ;;  %v2230_v19 = vmul.f32 %v5298_v59, %v2155_v53 }
 0x4da   : > { %v5090_v54 = vpop.f32.mrf.mxu0  ;;  %v2086_v17 = vmul.f32 %v7415_v49, %v7415_v49 }
 0x4db   : > { %5305 = vrsqrt.f32 %v2184_v4  ;;  %v2135_v10 = vmax.f32 %v2110_v1, 0.0  ;;  %v5025_v42 = vpop.f32.mrf.mxu1  ;;  %v2304_v25 = vpack.c.bf16 %v2287_v31, %v2286_v48  ;;  %v2259_v61 = vmul.f32 %v7262_v33, %v2230_v19 }
 0x4dc   : > { %v5300_v24 = vpop.eup %5299  ;;  %v2050_v16 = vpop.f32.mrf.mxu0 }
 0x4dd   : > { %v2185_v37 = vadd.f32 1e-05, %v2135_v10  ;;  %v2111_v62 = vsub.f32 %v2050_v16, %v2086_v17  ;;  %v2231_v8 = vmul.f32 %v5300_v24, %v2156_v7  ;;  %2627 = vmatmul.mubr.bf16.gmra.mxu1 %v2304_v25  ;;  %2788 = vmatmul.mubr.bf16.gmra.mxu0 %v2304_v25  ;;  %v7423_v43 = vpop.f32.mrf.mxu1  ;;  %v2288_v47 = vadd.f32 %v7276_v18, %v2259_v61  ;;  %v5188_v25 = vld [vmem:[%s9225_s7 + $0x30] sm:$0xff]  }
 0x4de   : > { %v5093_v58 = vpop.f32.mrf.mxu0  ;;  %v2087_v55 = vmul.f32 %v7423_v43, %v7423_v43  ;;  %2636 = vmatprep.mubr.bf16.mxu1 %v5571_v29  ;;  %2797 = vmatprep.mubr.bf16.mxu0 %v5571_v29  ;;  %v2161_v17 = vsub.f32 %v7157_v28, %v7415_v49  ;;  %v5191_v61 = vld [vmem:[%s9225_s7 + $0xb0] sm:$0xff]  }
 0x4df   : > { %5307 = vrsqrt.f32 %v2185_v37  ;;  %v2136_v60 = vmax.f32 %v2111_v62, 0.0  ;;  %v5026_v27 = vpop.f32.mrf.mxu1  ;;  %v2260_v20 = vmul.f32 %v7262_v33, %v2231_v8  ;;  %v2162_v37 = vsub.f32 %v7175_v45, %v7423_v43  ;;  %4642 = vmatpush3.bf16.msra.mxu1 %v5188_v25  ;;  %v7468_v58 = vld [vmem:[%s9225_s7 + $0xf0] sm:$0xff]  }
 0x4e0   : > { %v5302_v5 = vpop.eup %5301  ;;  %v2053_v15 = vpop.f32.mrf.mxu0  ;;  %9382 = vst [vmem:[#allocation21_spill] sm:$0xff] %v7468_v58  ;;  %4735 = vmatprep.subr.bf16.mxu0 %v7468_v58  ;;  %v5190_v27 = vld [vmem:[%s9225_s7 + $0x68] sm:$0xff]  }
 0x4e1   : > { %v2186_v14 = vadd.f32 1e-05, %v2136_v60  ;;  %v2112_v0 = vsub.f32 %v2053_v15, %v2087_v55  ;;  %v2232_v22 = vmul.f32 %v5302_v5, %v2157_v63  ;;  %v7433_v57 = vpop.f32.mrf.mxu1  ;;  %v2289_v23 = vadd.f32 %v7276_v18, %v2260_v20  ;;  %4736 = vmatpush3.bf16.msra.mxu0 %v5191_v61  ;;  %4643 = vmatprep.subr.bf16.mxu1 %v5190_v27  ;;  %v7490_v20 = vld [vmem:[%s9225_s7 + $0xe8] sm:$0xff]  }
 0x4e2   : > { %v5094_v41 = vpop.f32.mrf.mxu0  ;;  %v2088_v26 = vmul.f32 %v7433_v57, %v7433_v57  ;;  %v2163_v45 = vsub.f32 %v7195_v51, %v7433_v57  ;;  %v5192_v51 = vld [vmem:[%s9225_s7 + $0x28] sm:$0xff]   ;;  %9383 = vst [vmem:[#allocation22_spill] sm:$0xff] %v7490_v20  ;;  %4737 = vmatprep.subr.bf16.mxu0 %v7490_v20  ;;  %v5196_v57 = vld [vmem:[%s9225_s7 + $0xe0] sm:$0xff]  }
 0x4e3   : > { %5309 = vrsqrt.f32 %v2186_v14  ;;  %v2137_v6 = vmax.f32 %v2112_v0, 0.0  ;;  %v2305_v40 = vpack.c.bf16 %v2289_v23, %v2288_v47  ;;  %v5029_v56 = vpop.f32.mrf.mxu1  ;;  %v2261_v3 = vmul.f32 %v7262_v33, %v2232_v22  ;;  %4644 = vmatpush3.bf16.msra.mxu1 %v5192_v51  ;;  %v5194_v0 = vld [vmem:[%s9225_s7 + $0xa8] sm:$0xff]   ;;  %v5197_v47 = vld [vmem:[%s9225_s7 + $0x20] sm:$0xff]   ;;  %v5200_v23 = vld [vmem:[%s9225_s7 + $0xd8] sm:$0xff]  }
 0x4e4   : > { %v5304_v21 = vpop.eup %5303  ;;  %v2058_v52 = vpop.f32.mrf.mxu0  ;;  %v5207_v56 = vld [vmem:[%s9225_s7 + $0x48] sm:$0xff]  }
 0x4e5   : > { %v2187_v50 = vadd.f32 1e-05, %v2137_v6  ;;  %v2113_v12 = vsub.f32 %v2058_v52, %v2088_v26  ;;  %v2233_v38 = vmul.f32 %v5304_v21, %v2158_v30  ;;  %2637 = vmatmul.mubr.bf16.gmra.mxu1 %v2305_v40  ;;  %2798 = vmatmul.mubr.bf16.gmra.mxu0 %v2305_v40  ;;  %v1925_v44 = vpop.f32.mrf.mxu1  ;;  %v2290_v1 = vadd.f32 %v7276_v18, %v2261_v3  ;;  %v5201_v30 = vld [vmem:[%s9225_s7 + $0x18] sm:$0xff]   ;;  %v5203_v26 = vld [vmem:[%s9225_s7 + $0x50] sm:$0xff]   ;;  %v5211_v3 = vld [vmem:[%s9225_s7 + $0x40] sm:$0xff]  }
 0x4e6   : > { %v5097_v59 = vpop.f32.mrf.mxu0  ;;  %2646 = vmatprep.mubr.bf16.mxu1 %v5571_v29  ;;  %2807 = vmatprep.mubr.bf16.mxu0 %v5571_v29  ;;  %v5202_v6 = vld [vmem:[%s9225_s7 + $0x98] sm:$0xff]   ;;  %v5204_v21 = vld [vmem:[%s9225_s7 + $0xd0] sm:$0xff]   ;;  %v5212_v44 = vld [vmem:[%s9225_s7 + $0xc0] sm:$0xff]  }
 0x4e7   : > { %5311 = vrsqrt.f32 %v2187_v50  ;;  %v2138_v35 = vmax.f32 %v2113_v12, 0.0  ;;  %v2262_v53 = vmul.f32 %v7262_v33, %v2233_v38  ;;  %v5030_v13 = vpop.f32.mrf.mxu1  ;;  %4738 = vmatpush3.bf16.msra.mxu0 %v5194_v0  ;;  %v5205_v52 = vld [vmem:[%s9225_s7 + $0x10] sm:$0xff]   ;;  %v5208_v50 = vld [vmem:[%s9225_s7 + $0xc8] sm:$0xff]   ;;  %v5213_v59 = vld [vmem:[%s9225_s7] sm:$0xff]  }
 0x4e8   : > { %v5306_v36 = vpop.eup %5305  ;;  %v2061_v39 = vpop.f32.mrf.mxu0  ;;  %4739 = vmatprep.subr.bf16.mxu0 %v5196_v57  ;;  %v5206_v40 = vld [vmem:[%s9225_s7 + $0x90] sm:$0xff]   ;;  %v5209_v12 = vld [vmem:[%s9225_s7 + $0x8] sm:$0xff]  }
 0x4e9   : > { %v2188_v4 = vadd.f32 1e-05, %v2138_v35  ;;  %v2291_v54 = vadd.f32 %v7276_v18, %v2262_v53  ;;  %v2234_v48 = vmul.f32 %v5306_v36, %v2159_v2  ;;  %v5210_v38 = vld [vmem:[%s9225_s7 + $0x88] sm:$0xff]   ;;  %v5214_v2 = vld [vmem:[%s9225_s7 + $0x80] sm:$0xff]   ;;  %v2344_v35 = vlaneseq }
 0x4ea   : > { %v5098_v31 = vpop.f32.mrf.mxu0  ;;  %v2342_v39 = vld [vmem:[%s9224_s6] sm:$0xf] }
 0x4eb   : > { %5313 = vrsqrt.f32 %v2188_v4  ;;  %v2306_v34 = vpack.c.bf16 %v2291_v54, %v2290_v1  ;;  %v2263_v10 = vmul.f32 %v7262_v33, %v2234_v48  ;;  %v2345_v53 = vshrl.u32 %v2344_v35, 7 }
 0x4ec   : > { %v5308_v19 = vpop.eup %5307 }
 0x4ed   : > { %v2235_v7 = vmul.f32 %v5308_v19, %v2160_v32  ;;  %2647 = vmatmul.mubr.bf16.gmra.mxu1 %v2306_v34  ;;  %2808 = vmatmul.mubr.bf16.gmra.mxu0 %v2306_v34  ;;  %v2292_v46 = vadd.f32 %v7276_v18, %v2263_v10  ;;  %v2346_v36 = vsub.s32 0, %v2345_v53  ;;  %v2354_v13 = vsub.s32 2, %v2345_v53 }
 0x4ee   : > { %2656 = vmatprep.mubr.bf16.mxu1 %v5571_v29  ;;  %2817 = vmatprep.mubr.bf16.mxu0 %v5571_v29 }
 0x4ef   : > { %v2264_v24 = vmul.f32 %v7262_v33, %v2235_v7  ;;  %v7564_v4 = vrot.slane %v2342_v39, %v2346_v36  ;;  %v7566_v1 = vrot.slane %v2342_v39, %v2354_v13 }
 0x4f0   : > { %v5310_v42 = vpop.eup %5309 }
 0x4f1   : > { %v2293_v9 = vadd.f32 %v7276_v18, %v2264_v24  ;;  %v2236_v16 = vmul.f32 %v5310_v42, %v2161_v17 }
 0x4f3   : > { %v2307_v28 = vpack.c.bf16 %v2293_v9, %v2292_v46  ;;  %v2265_v8 = vmul.f32 %v7262_v33, %v2236_v16  ;;  %v2350_v16 = vsub.s32 1, %v2345_v53 }
 0x4f4   : > { %v5312_v49 = vpop.eup %5311 }
 0x4f5   : > { %v2237_v62 = vmul.f32 %v5312_v49, %v2162_v37  ;;  %2657 = vmatmul.mubr.bf16.gmra.mxu1 %v2307_v28  ;;  %2818 = vmatmul.mubr.bf16.gmra.mxu0 %v2307_v28  ;;  %v2294_v60 = vadd.f32 %v7276_v18, %v2265_v8  ;;  %v2358_v8 = vsub.s32 3, %v2345_v53 }
 0x4f6   : > { %2666 = vmatprep.mubr.bf16.mxu1 %v5571_v29  ;;  %2827 = vmatprep.mubr.bf16.mxu0 %v5571_v29 }
 0x4f7   : > { %v2266_v43 = vmul.f32 %v7262_v33, %v2237_v62 }
 0x4f8   : > { %v5314_v63 = vpop.eup %5313 }
 0x4f9   : > { %v2295_v55 = vadd.f32 %v7276_v18, %v2266_v43  ;;  %v2238_v5 = vmul.f32 %v5314_v63, %v2163_v45 }
 0x4fb   : > { %v2308_v15 = vpack.c.bf16 %v2295_v55, %v2294_v60  ;;  %v2267_v14 = vmul.f32 %v7262_v33, %v2238_v5  ;;  %v5195_v33 = vld [vmem:[%s9225_s7 + $0x60] sm:$0xff]   ;;  %v7579_v60 = vrot.slane %v2342_v39, %v2350_v16 }
 0x4fc   : > { %4645 = vmatprep.subr.bf16.mxu1 %v5195_v33 }
 0x4fd   : > { %2667 = vmatmul.mubr.bf16.gmra.mxu1 %v2308_v15  ;;  %2828 = vmatmul.mubr.bf16.gmra.mxu0 %v2308_v15  ;;  %v2296_v22 = vadd.f32 %v7276_v18, %v2267_v14  ;;  %v5199_v18 = vld [vmem:[%s9225_s7 + $0x58] sm:$0xff]   ;;  %v7582_v14 = vrot.slane %v2342_v39, %v2358_v8 }
 0x4fe   : > { %2676 = vmatprep.mubr.bf16.mxu1 %v5571_v29  ;;  %2837 = vmatprep.mubr.bf16.mxu0 %v5571_v29  ;;  %v5198_v29 = vld [vmem:[%s9225_s7 + $0xa0] sm:$0xff]  }
 0x4ff   : > { %v2309_v41 = vpack.c.bf16 %v2296_v22, %v2296_v22  ;;  %4646 = vmatpush3.bf16.msra.mxu1 %v5197_v47  ;;  %4740 = vmatpush3.bf16.msra.mxu0 %v5198_v29 }
 0x500   : > { %4647 = vmatprep.subr.bf16.mxu1 %v5199_v18  ;;  %4741 = vmatprep.subr.bf16.mxu0 %v5200_v23 }
 0x503   : > { %4648 = vmatpush3.bf16.msra.mxu1 %v5201_v30  ;;  %4742 = vmatpush3.bf16.msra.mxu0 %v5202_v6 }
 0x504   : > { %4649 = vmatprep.subr.bf16.mxu1 %v5203_v26  ;;  %4743 = vmatprep.subr.bf16.mxu0 %v5204_v21 }
 0x505   : > { %2677 = vmatmul.mubr.bf16.gmra.mxu1 %v2309_v41  ;;  %2838 = vmatmul.mubr.bf16.gmra.mxu0 %v2309_v41 }
 0x507   : > { %4650 = vmatpush3.bf16.msra.mxu1 %v5205_v52  ;;  %4744 = vmatpush3.bf16.msra.mxu0 %v5206_v40 }
 0x508   : > { %4651 = vmatprep.subr.bf16.mxu1 %v5207_v56  ;;  %4745 = vmatprep.subr.bf16.mxu0 %v5208_v50 }
 0x50b   : > { %4652 = vmatpush3.bf16.msra.mxu1 %v5209_v12  ;;  %4746 = vmatpush3.bf16.msra.mxu0 %v5210_v38 }
 0x50c   : > { %4653 = vmatprep.subr.bf16.mxu1 %v5211_v3  ;;  %4747 = vmatprep.subr.bf16.mxu0 %v5212_v44 }
 0x50f   : > { %4654 = vmatpush3.bf16.msra.mxu1 %v5213_v59  ;;  %4748 = vmatpush3.bf16.msra.mxu0 %v5214_v2 }
 0x510   : > { %5099 = vmatprep.subr.bf16.mxu1 %v7237_v11 }
 0x564   : > { %v2558_v54 = vpop.f32.mrf.mxu1  ;;  %v2719_v48 = vpop.f32.mrf.mxu0 }
 0x565   : > { %v2559_v31 = vadd.f32 %v2558_v54, %v7564_v4  ;;  %v2720_v32 = vadd.f32 %v2719_v48, %v7566_v1 }
 0x566   : > { %v2560_v34 = vpop.f32.mrf.mxu1  ;;  %v2721_v11 = vpop.f32.mrf.mxu0 }
 0x567   : > { %v2946_v19 = vmul.f32 0.044715, %v2559_v31  ;;  %v2948_v7 = vmul.f32 0.044715, %v2720_v32  ;;  %v7592_v47 = vadd.f32 %v2560_v34, %v7579_v60  ;;  %v7597_v21 = vadd.f32 %v2721_v11, %v7582_v14 }
 0x568   : > { %v2562_v10 = vpop.f32.mrf.mxu1  ;;  %v2723_v17 = vpop.f32.mrf.mxu0  ;;  %v7599_v56 = vmul.f32 0.5, %v2559_v31  ;;  %v7606_v3 = vmul.f32 0.5, %v2720_v32 }
 0x569   : > { %v3046_v24 = vmul.f32 %v2946_v19, %v2559_v31  ;;  %v3048_v42 = vmul.f32 %v2948_v7, %v2720_v32  ;;  %v7571_v46 = vadd.f32 %v2562_v10, %v7564_v4  ;;  %v7574_v9 = vadd.f32 %v2723_v17, %v7566_v1 }
 0x56a   : > { %v2564_v25 = vpop.f32.mrf.mxu1  ;;  %v2725_v37 = vpop.f32.mrf.mxu0  ;;  %v2947_v44 = vmul.f32 0.044715, %v7592_v47  ;;  %v2949_v54 = vmul.f32 0.044715, %v7597_v21 }
 0x56b   : > { %v3146_v28 = vmul.f32 %v3046_v24, %v2559_v31  ;;  %v2950_v49 = vmul.f32 0.044715, %v7571_v46  ;;  %v3148_v62 = vmul.f32 %v3048_v42, %v2720_v32  ;;  %v2952_v61 = vmul.f32 0.044715, %v7574_v9 }
 0x56c   : > { %v2568_v45 = vpop.f32.mrf.mxu1  ;;  %v2729_v43 = vpop.f32.mrf.mxu0  ;;  %v7619_v13 = vadd.f32 %v2564_v25, %v7579_v60  ;;  %v7622_v39 = vadd.f32 %v2725_v37, %v7582_v14  ;;  %v7643_v25 = vmul.f32 0.5, %v7592_v47  ;;  %v7646_v37 = vmul.f32 0.5, %v7597_v21 }
 0x56d   : > { %v3050_v63 = vmul.f32 %v2950_v49, %v7571_v46  ;;  %v3246_v27 = vadd.f32 %v3146_v28, %v2559_v31  ;;  %v3052_v51 = vmul.f32 %v2952_v61, %v7574_v9  ;;  %v3248_v15 = vadd.f32 %v3148_v62, %v2720_v32 }
 0x56e   : > { %v2570_v55 = vpop.f32.mrf.mxu1  ;;  %v2731_v5 = vpop.f32.mrf.mxu0  ;;  %v7585_v0 = vadd.f32 %v2568_v45, %v7564_v4  ;;  %v7589_v41 = vadd.f32 %v2729_v43, %v7566_v1  ;;  %9390 = vst [vmem:[#allocation16_spill] sm:$0xff] %v7643_v25  ;;  %9391 = vst [vmem:[#allocation15_spill] sm:$0xff] %v7646_v37  ;;  %v2951_v49 = vmul.f32 0.044715, %v7619_v13  ;;  %v2953_v62 = vmul.f32 0.044715, %v7622_v39 }
 0x56f   : > { %v3150_v57 = vmul.f32 %v3050_v63, %v7571_v46  ;;  %v3346_v30 = vmul.f32 0.7978846, %v3246_v27  ;;  %v3152_v6 = vmul.f32 %v3052_v51, %v7574_v9  ;;  %v3348_v26 = vmul.f32 0.7978846, %v3248_v15 }
 0x570   : > { %9384 = vst [vmem:[#allocation10_spill] sm:$0xff] %v7585_v0  ;;  %v2572_v22 = vpop.f32.mrf.mxu1  ;;  %v2733_v33 = vpop.f32.mrf.mxu0  ;;  %9385 = vst [vmem:[#allocation23_spill] sm:$0xff] %v7589_v41  ;;  %v2954_v29 = vmul.f32 0.044715, %v7585_v0  ;;  %v2956_v12 = vmul.f32 0.044715, %v7589_v41  ;;  %v7626_v48 = vadd.f32 %v2570_v55, %v7579_v60  ;;  %v7631_v7 = vadd.f32 %v2731_v5, %v7582_v14 }
 0x571   : > { %v3250_v50 = vadd.f32 %v3150_v57, %v7571_v46  ;;  %v7604_v38 = vadd.f32 %v2572_v22, %v7564_v4  ;;  %v7611_v2 = vadd.f32 %v2733_v33, %v7566_v1  ;;  %5315 = vtanh.f32 %v3346_v30 }
 0x572   : > { %v2574_v18 = vpop.f32.mrf.mxu1  ;;  %v2735_v23 = vpop.f32.mrf.mxu0  ;;  %v3054_v59 = vmul.f32 %v2954_v29, %v7585_v0  ;;  %v3252_v36 = vadd.f32 %v3152_v6, %v7574_v9  ;;  %5317 = vtanh.f32 %v3348_v26  ;;  %v3056_v19 = vmul.f32 %v2956_v12, %v7589_v41  ;;  %9388 = vst [vmem:[#allocation18_spill] sm:$0xff] %v7631_v7 }
 0x573   : > { %9386 = vst [vmem:[#allocation20_spill] sm:$0xff] %v7604_v38  ;;  %9387 = vst [vmem:[#allocation19_spill] sm:$0xff] %v7611_v2  ;;  %v2958_v31 = vmul.f32 0.044715, %v7604_v38  ;;  %v3350_v11 = vmul.f32 0.7978846, %v3250_v50  ;;  %v3047_v8 = vmul.f32 %v2947_v44, %v7592_v47  ;;  %v3049_v15 = vmul.f32 %v2949_v54, %v7597_v21 }
 0x574   : > { %v3154_v17 = vmul.f32 %v3054_v59, %v7585_v0  ;;  %v2960_v24 = vmul.f32 0.044715, %v7611_v2  ;;  %v3352_v28 = vmul.f32 0.7978846, %v3252_v36  ;;  %v7652_v61 = vmul.f32 0.5, %v7571_v46 }
 0x575   : > { %v2578_v52 = vpop.f32.mrf.mxu1  ;;  %v2739_v40 = vpop.f32.mrf.mxu0  ;;  %v2955_v45 = vmul.f32 0.044715, %v7626_v48  ;;  %v3058_v43 = vmul.f32 %v2958_v31, %v7604_v38  ;;  %5319 = vtanh.f32 %v3350_v11  ;;  %v3156_v5 = vmul.f32 %v3056_v19, %v7589_v41 }
 0x576   : > { %v7634_v10 = vadd.f32 %v2578_v52, %v7564_v4  ;;  %v2957_v27 = vmul.f32 0.044715, %v7631_v7  ;;  %v3254_v22 = vadd.f32 %v3154_v17, %v7585_v0  ;;  %v3060_v46 = vmul.f32 %v2960_v24, %v7611_v2 }
 0x577   : > { %v7613_v35 = vpop.f32.mrf.mxu1  ;;  %v7615_v53 = vpop.f32.mrf.mxu0  ;;  %v7665_v33 = vadd.f32 %v2574_v18, %v7579_v60  ;;  %5321 = vtanh.f32 %v3352_v28  ;;  %v3051_v30 = vmul.f32 %v2951_v49, %v7619_v13  ;;  %v3053_v6 = vmul.f32 %v2953_v62, %v7622_v39 }
 0x578   : > { %9389 = vst [vmem:[#allocation17_spill] sm:$0xff] %v7634_v10  ;;  %v2962_v51 = vmul.f32 0.044715, %v7634_v10  ;;  %v7674_v26 = vadd.f32 %v2735_v23, %v7582_v14  ;;  %v7677_v52 = vmul.f32 %v3047_v8, %v7592_v47  ;;  %v7680_v50 = vmul.f32 0.5, %v7574_v9 }
 0x579   : > { %v2582_v32 = vpop.f32.mrf.mxu1  ;;  %v2743_v34 = vpop.f32.mrf.mxu0  ;;  %9392 = vst [vmem:[#allocation14_spill] sm:$0xff] %v7665_v33  ;;  %v3158_v18 = vmul.f32 %v3058_v43, %v7604_v38  ;;  %v7684_v12 = vadd.f32 %v2739_v40, %v7566_v1  ;;  %v3256_v36 = vadd.f32 %v3156_v5, %v7589_v41  ;;  %v3055_v23 = vmul.f32 %v2955_v45, %v7626_v48 }
 0x57a   : > { %9393 = vst [vmem:[#allocation13_spill] sm:$0xff] %v7674_v26  ;;  %v3057_v54 = vmul.f32 %v2957_v27, %v7631_v7  ;;  %v3062_v31 = vmul.f32 %v2962_v51, %v7634_v10  ;;  %v7695_v9 = vmul.f32 %v3049_v15, %v7597_v21  ;;  %v3354_v11 = vmul.f32 0.7978846, %v3254_v22 }
 0x57b   : > { %v7638_v42 = vpop.f32.mrf.mxu1  ;;  %v7640_v16 = vpop.f32.mrf.mxu0  ;;  %9394 = vst [vmem:[#allocation12_spill] sm:$0xff] %v7684_v12  ;;  %v3160_v19 = vmul.f32 %v3060_v46, %v7611_v2  ;;  %v2959_v40 = vmul.f32 0.044715, %v7665_v33  ;;  %v7704_v28 = vmul.f32 %v3051_v30, %v7619_v13  ;;  %v7707_v49 = vmul.f32 %v3053_v6, %v7622_v39 }
 0x57c   : > { %v2961_v62 = vmul.f32 0.044715, %v7674_v26  ;;  %v7711_v8 = vadd.f32 %v2582_v32, %v7564_v4  ;;  %v3258_v43 = vadd.f32 %v3158_v18, %v7604_v38  ;;  %v2964_v5 = vmul.f32 0.044715, %v7684_v12 }
 0x57d   : > { %v2588_v63 = vpop.f32.mrf.mxu1  ;;  %v7656_v55 = vpop.f32.mrf.mxu0  ;;  %v7717_v27 = vadd.f32 %v7613_v35, %v7579_v60  ;;  %v7720_v51 = vadd.f32 %v2743_v34, %v7566_v1  ;;  %v3356_v30 = vmul.f32 0.7978846, %v3256_v36  ;;  %v7727_v32 = vmul.f32 %v3055_v23, %v7626_v48 }
 0x57e   : > { %9395 = vst [vmem:[#allocation11_spill] sm:$0xff] %v7711_v8  ;;  %v5316_v45 = vpop.eup %5315  ;;  %v7730_v6 = vmul.f32 %v3057_v54, %v7631_v7  ;;  %v3162_v18 = vmul.f32 %v3062_v31, %v7634_v10  ;;  %5323 = vtanh.f32 %v3354_v11  ;;  %v3260_v35 = vadd.f32 %v3160_v19, %v7611_v2 }
 0x57f   : > { %v7667_v57 = vpop.f32.mrf.mxu1  ;;  %v7669_v29 = vpop.f32.mrf.mxu0  ;;  %9396 = vst [vmem:[#allocation2_spill] sm:$0xff] %v7717_v27  ;;  %9397 = vst [vmem:[#allocation3_spill] sm:$0xff] %v7720_v51  ;;  %v3059_v34 = vmul.f32 %v2959_v40, %v7665_v33  ;;  %v2966_v41 = vmul.f32 0.044715, %v7711_v8  ;;  %v3061_v36 = vmul.f32 %v2961_v62, %v7674_v26  ;;  %v7743_v23 = vadd.f32 %v7615_v53, %v7582_v14 }
 0x580   : > { %v5318_v46 = vpop.eup %5317  ;;  %9398 = vst [vmem:[#allocation4_spill] sm:$0xff] %v7727_v32  ;;  %9399 = vst [vmem:[#allocation5_spill] sm:$0xff] %v7730_v6  ;;  %v2968_v54 = vmul.f32 0.044715, %v7720_v51  ;;  %v7747_v31 = vadd.f32 %v2588_v63, %v7564_v4  ;;  %v3546_v11 = vadd.f32 1.0, %v5316_v45  ;;  %v3064_v40 = vmul.f32 %v2964_v5, %v7684_v12 }
 0x581   : > { %v7686_v44 = vpop.f32.mrf.mxu1  ;;  %v7688_v59 = vpop.f32.mrf.mxu0  ;;  %9400 = vst [vmem:[#allocation6_spill] sm:$0xff] %v7743_v23  ;;  %v3358_v19 = vmul.f32 0.7978846, %v3258_v43  ;;  %v2963_v2 = vmul.f32 0.044715, %v7717_v27  ;;  %v3548_v62 = vadd.f32 1.0, %v5318_v46  ;;  %v3262_v37 = vadd.f32 %v3162_v18, %v7634_v10 }
 0x582   : > { %9401 = vst [vmem:[#allocation7_spill] sm:$0xff] %v7747_v31  ;;  %v2970_v53 = vmul.f32 0.044715, %v7747_v31  ;;  %v7759_v6 = vadd.f32 %v7656_v55, %v7566_v1  ;;  %v5320_v63 = vpop.eup %5319  ;;  %5325 = vtanh.f32 %v3356_v30  ;;  %v3360_v45 = vmul.f32 0.7978846, %v3260_v35 }
 0x583   : > { %v7699_v17 = vpop.f32.mrf.mxu1  ;;  %v7701_v24 = vpop.f32.mrf.mxu0  ;;  %v7762_v43 = vmul.f32 %v3059_v34, %v7665_v33  ;;  %v3066_v5 = vmul.f32 %v2966_v41, %v7711_v8  ;;  %v7770_v46 = vmul.f32 %v3061_v36, %v7674_v26  ;;  %v2965_v18 = vmul.f32 0.044715, %v7743_v23 }
 0x584   : > { %9402 = vst [vmem:[#allocation8_spill] sm:$0xff] %v7759_v6  ;;  %v3068_v55 = vmul.f32 %v2968_v54, %v7720_v51  ;;  %v2972_v10 = vmul.f32 0.044715, %v7759_v6  ;;  %v5322_v30 = vpop.eup %5321  ;;  %v7776_v35 = vmul.f32 %v3546_v11, %v7599_v56  ;;  %5327 = vtanh.f32 %v3358_v19 }
 0x585   : > { %v7722_v15 = vpop.f32.mrf.mxu1  ;;  %v7724_v22 = vpop.f32.mrf.mxu0  ;;  %9403 = vst [vmem:[#allocation9_spill] sm:$0xff] %v7762_v43  ;;  %9404 = vst [vmem:[#allocation24_spill] sm:$0xff] %v7770_v46  ;;  %v3164_v41 = vmul.f32 %v3064_v40, %v7684_v12  ;;  %v3063_v34 = vmul.f32 %v2963_v2, %v7717_v27  ;;  %v7785_v36 = vmul.f32 %v3548_v62, %v7606_v3  ;;  %v3550_v46 = vadd.f32 1.0, %v5320_v63 }
 0x586   : > { %v3362_v54 = vmul.f32 0.7978846, %v3262_v37  ;;  %v3070_v26 = vmul.f32 %v2970_v53, %v7747_v31  ;;  %5329 = vtanh.f32 %v3360_v45  ;;  %v3166_v56 = vmul.f32 %v3066_v5, %v7711_v8 }
 0x587   : > { %v7736_v0 = vpop.f32.mrf.mxu1  ;;  %v7738_v20 = vpop.f32.mrf.mxu0  ;;  %v7791_v11 = vadd.f32 %v7638_v42, %v7579_v60  ;;  %v3072_v2 = vmul.f32 %v2972_v10, %v7759_v6  ;;  %v3552_v32 = vadd.f32 1.0, %v5322_v30  ;;  %v3065_v3 = vmul.f32 %v2965_v18, %v7743_v23 }
 0x588   : > { %v3168_v37 = vmul.f32 %v3068_v55, %v7720_v51  ;;  %v7802_v62 = vadd.f32 %v7640_v16, %v7582_v14  ;;  %v3264_v53 = vadd.f32 %v3164_v41, %v7684_v12  ;;  %v7806_v42 = vmul.f32 %v3063_v34, %v7717_v27 }
 0x589   : > { %v7751_v38 = vpop.f32.mrf.mxu1  ;;  %v7753_v58 = vpop.f32.mrf.mxu0  ;;  %v7810_v10 = vadd.f32 %v7667_v57, %v7579_v60  ;;  %v7814_v63 = vadd.f32 %v7686_v44, %v7564_v4  ;;  %v7821_v16 = vmul.f32 %v3550_v46, %v7652_v61  ;;  %5331 = vtanh.f32 %v3362_v54 }
 0x58a   : > { %9405 = vst [vmem:[#allocation25_spill] sm:$0xff] %v7806_v42  ;;  %v3170_v18 = vmul.f32 %v3070_v26, %v7747_v31  ;;  %v7826_v55 = vadd.f32 %v7669_v29, %v7582_v14  ;;  %v3266_v57 = vadd.f32 %v3166_v56, %v7711_v8  ;;  %v2967_v30 = vmul.f32 0.044715, %v7791_v11 }
 0x58b   : > { %v7765_v7 = vpop.f32.mrf.mxu1  ;;  %v7767_v25 = vpop.f32.mrf.mxu0  ;;  %9406 = vst [vmem:[#allocation26_spill] sm:$0xff] %v7810_v10  ;;  %9407 = vst [vmem:[#allocation27_spill] sm:$0xff] %v7814_v63  ;;  %v3172_v44 = vmul.f32 %v3072_v2, %v7759_v6  ;;  %v7833_v41 = vadd.f32 %v7688_v59, %v7566_v1  ;;  %v7842_v26 = vmul.f32 %v3552_v32, %v7680_v50  ;;  %v2969_v56 = vmul.f32 0.044715, %v7802_v62 }
 0x58c   : > { %9408 = vst [vmem:[#allocation28_spill] sm:$0xff] %v7826_v55  ;;  %v7839_v46 = vpop.eup %5323  ;;  %v7845_v29 = vmul.f32 %v3065_v3, %v7743_v23  ;;  %v3268_v54 = vadd.f32 %v3168_v37, %v7720_v51  ;;  %v3364_v2 = vmul.f32 0.7978846, %v3264_v53  ;;  %v2971_v59 = vmul.f32 0.044715, %v7810_v10 }
 0x58d   : > { %v7780_v43 = vpop.f32.mrf.mxu1  ;;  %v7782_v33 = vpop.f32.mrf.mxu0  ;;  %9409 = vst [vmem:[#allocation29_spill] sm:$0xff] %v7833_v41  ;;  %9410 = vst [vmem:[#allocation30_spill] sm:$0xff] %v7839_v46  ;;  %v2974_v12 = vmul.f32 0.044715, %v7814_v63  ;;  %v7853_v8 = vadd.f32 %v7722_v15, %v7564_v4  ;;  %v3270_v3 = vadd.f32 %v3170_v18, %v7747_v31  ;;  %v2973_v37 = vmul.f32 0.044715, %v7826_v55 }
 0x58e   : > { %9411 = vst [vmem:[#allocation31_spill] sm:$0xff] %v7845_v29  ;;  %v7865_v53 = vadd.f32 %v7724_v22, %v7566_v1  ;;  %v3366_v51 = vmul.f32 0.7978846, %v3266_v57  ;;  %v3067_v29 = vmul.f32 %v2967_v30, %v7791_v11  ;;  %v3272_v15 = vadd.f32 %v3172_v44, %v7759_v6 }
 0x58f   : > { %v7794_v19 = vpop.f32.mrf.mxu1  ;;  %v7796_v40 = vpop.f32.mrf.mxu0  ;;  %9412 = vst [vmem:[#allocation32_spill] sm:$0xff] %v7853_v8  ;;  %v2976_v23 = vmul.f32 0.044715, %v7833_v41  ;;  %v3368_v31 = vmul.f32 0.7978846, %v3268_v54  ;;  %v3069_v22 = vmul.f32 %v2969_v56, %v7802_v62  ;;  %v7881_v57 = vadd.f32 %v7699_v17, %v7579_v60 }
 0x590   : > { %9413 = vst [vmem:[#allocation33_spill] sm:$0xff] %v7865_v53  ;;  %v7874_v32 = vpop.eup %5325  ;;  %5333 = vtanh.f32 %v3364_v2  ;;  %v3071_v30 = vmul.f32 %v2971_v59, %v7810_v10  ;;  %v3074_v44 = vmul.f32 %v2974_v12, %v7814_v63  ;;  %v2978_v6 = vmul.f32 0.044715, %v7853_v8 }
 0x591   : > { %v7816_v45 = vpop.f32.mrf.mxu1  ;;  %v7818_v5 = vpop.f32.mrf.mxu0  ;;  %9416 = vst [vmem:[#allocation36_spill] sm:$0xff] %v7874_v32  ;;  %9417 = vst [vmem:[#allocation37_spill] sm:$0xff] %v7881_v57  ;;  %v3370_v54 = vmul.f32 0.7978846, %v3270_v3  ;;  %v3073_v56 = vmul.f32 %v2973_v37, %v7826_v55  ;;  %v7895_v17 = vadd.f32 %v7701_v24, %v7582_v14  ;;  %v2980_v2 = vmul.f32 0.044715, %v7865_v53 }
 0x592   : > { %v7890_v32 = vpop.eup %5327  ;;  %5335 = vtanh.f32 %v3366_v51  ;;  %v7899_v12 = vmul.f32 %v3067_v29, %v7791_v11  ;;  %v3372_v59 = vmul.f32 0.7978846, %v3272_v15  ;;  %v3076_v18 = vmul.f32 %v2976_v23, %v7833_v41 }
 0x593   : > { %v7835_v34 = vpop.f32.mrf.mxu1  ;;  %v7837_v61 = vpop.f32.mrf.mxu0  ;;  %9420 = vst [vmem:[#allocation40_spill] sm:$0xff] %v7895_v17  ;;  %5337 = vtanh.f32 %v3368_v31  ;;  %v7909_v37 = vmul.f32 %v3069_v22, %v7802_v62  ;;  %v2975_v24 = vmul.f32 0.044715, %v7881_v57  ;;  %v7914_v51 = vadd.f32 %v7751_v38, %v7564_v4 }
 0x594   : > { %v7906_v3 = vpop.eup %5329  ;;  %v7917_v29 = vmul.f32 %v3071_v30, %v7810_v10  ;;  %v3174_v23 = vmul.f32 %v3074_v44, %v7814_v63  ;;  %v3078_v15 = vmul.f32 %v2978_v6, %v7853_v8  ;;  %5339 = vtanh.f32 %v3370_v54 }
 0x595   : > { %v7855_v42 = vpop.f32.mrf.mxu1  ;;  %v7857_v50 = vpop.f32.mrf.mxu0  ;;  %9422 = vst [vmem:[#allocation42_spill] sm:$0xff] %v7909_v37  ;;  %9423 = vst [vmem:[#allocation43_spill] sm:$0xff] %v7914_v51  ;;  %v7930_v37 = vmul.f32 %v3073_v56, %v7826_v55  ;;  %v2977_v38 = vmul.f32 0.044715, %v7895_v17  ;;  %v3080_v30 = vmul.f32 %v2980_v2, %v7865_v53  ;;  %5341 = vtanh.f32 %v3372_v59 }
 0x596   : > { %9424 = vst [vmem:[#allocation44_spill] sm:$0xff] %v7917_v29  ;;  %v7934_v29 = vpop.eup %5331  ;;  %v3176_v6 = vmul.f32 %v3076_v18, %v7833_v41  ;;  %v3247_v44 = vadd.f32 %v7677_v52, %v7592_v47  ;;  %v7950_v2 = vadd.f32 %v7738_v20, %v7582_v14  ;;  %v2982_v59 = vmul.f32 0.044715, %v7914_v51 }
 0x597   : > { %v7870_v27 = vpop.f32.mrf.mxu1  ;;  %v7872_v46 = vpop.f32.mrf.mxu0  ;;  %9426 = vst [vmem:[#allocation46_spill] sm:$0xff] %v7930_v37  ;;  %9427 = vst [vmem:[#allocation47_spill] sm:$0xff] %v7934_v29  ;;  %v3075_v37 = vmul.f32 %v2975_v24, %v7881_v57  ;;  %v3251_v18 = vadd.f32 %v7704_v28, %v7619_v13  ;;  %v3178_v55 = vmul.f32 %v3078_v15, %v7853_v8 }
 0x598   : > { %9414 = vst [vmem:[#allocation34_spill] sm:$0xff] %v7870_v27  ;;  %9415 = vst [vmem:[#allocation35_spill] sm:$0xff] %v7872_v46  ;;  %v3347_v52 = vmul.f32 0.7978846, %v3247_v44  ;;  %v3077_v24 = vmul.f32 %v2977_v38, %v7895_v17  ;;  %v3180_v20 = vmul.f32 %v3080_v30, %v7865_v53  ;;  %v3249_v29 = vadd.f32 %v7695_v9, %v7597_v21 }
 0x599   : > { %v7886_v46 = vpop.f32.mrf.mxu1  ;;  %v7888_v27 = vpop.f32.mrf.mxu0  ;;  %9431 = vst [vmem:[#allocation51_spill] sm:$0xff] %v7950_v2  ;;  %v3276_v28 = vadd.f32 %v3176_v6, %v7833_v41  ;;  %v3253_v15 = vadd.f32 %v7707_v49, %v7622_v39  ;;  %v2981_v38 = vmul.f32 0.044715, %v7950_v2  ;;  %v3082_v30 = vmul.f32 %v2982_v59, %v7914_v51 }
 0x59a   : > { %9418 = vst [vmem:[#allocation38_spill] sm:$0xff] %v7886_v46  ;;  %9419 = vst [vmem:[#allocation39_spill] sm:$0xff] %v7888_v27  ;;  %5343 = vtanh.f32 %v3347_v52  ;;  %v3278_v21 = vadd.f32 %v3178_v55, %v7853_v8  ;;  %v7980_v52 = vadd.f32 %v7780_v43, %v7564_v4  ;;  %v7989_v59 = vmul.f32 %v3075_v37, %v7881_v57  ;;  %v9466_v57 = vld [vmem:[#allocation18_spill] sm:$0xff] }
 0x59b   : > { %v7902_v46 = vpop.f32.mrf.mxu1  ;;  %v7904_v27 = vpop.f32.mrf.mxu0  ;;  %v3353_v6 = vmul.f32 0.7978846, %v3253_v15  ;;  %v7994_v55 = vadd.f32 %v7765_v7, %v7579_v60  ;;  %v7997_v43 = vmul.f32 %v3077_v24, %v7895_v17  ;;  %v3182_v24 = vmul.f32 %v3082_v30, %v7914_v51 }
 0x59c   : > { %9421 = vst [vmem:[#allocation41_spill] sm:$0xff] %v7904_v27  ;;  %v7923_v27 = vadd.f32 %v7753_v58, %v7566_v1  ;;  %v7939_v58 = vadd.f32 %v7736_v0, %v7579_v60  ;;  %v3274_v0 = vadd.f32 %v3174_v23, %v7814_v63  ;;  %9436 = vst [vmem:[#allocation56_spill] sm:$0xff] %v7980_v52 }
 0x59d   : > { %v7925_v31 = vpop.f32.mrf.mxu1  ;;  %v7927_v22 = vpop.f32.mrf.mxu0  ;;  %9439 = vst [vmem:[#allocation59_spill] sm:$0xff] %v7989_v59  ;;  %9440 = vst [vmem:[#allocation60_spill] sm:$0xff] %v7997_v43 }
 0x59e   : > { %9425 = vst [vmem:[#allocation45_spill] sm:$0xff] %v7923_v27  ;;  %9428 = vst [vmem:[#allocation48_spill] sm:$0xff] %v7939_v58  ;;  %v2984_v47 = vmul.f32 0.044715, %v7923_v27  ;;  %v2979_v23 = vmul.f32 0.044715, %v7939_v58 }
 0x59f   : > { %v7943_v54 = vpop.f32.mrf.mxu1  ;;  %v7945_v56 = vpop.f32.mrf.mxu0 }
 0x5a0   : > { %9429 = vst [vmem:[#allocation49_spill] sm:$0xff] %v7943_v54  ;;  %9430 = vst [vmem:[#allocation50_spill] sm:$0xff] %v7945_v56  ;;  %v3351_v54 = vmul.f32 0.7978846, %v3251_v18  ;;  %v3349_v18 = vmul.f32 0.7978846, %v3249_v29  ;;  %v3084_v9 = vmul.f32 %v2984_v47, %v7923_v27  ;;  %v3280_v29 = vadd.f32 %v3180_v20, %v7865_v53 }
 0x5a1   : > { %v7958_v10 = vpop.f32.mrf.mxu1  ;;  %v7960_v56 = vpop.f32.mrf.mxu0  ;;  %v8001_v47 = vadd.f32 %v7782_v33, %v7566_v1  ;;  %v3079_v7 = vmul.f32 %v2979_v23, %v7939_v58  ;;  %v3378_v33 = vmul.f32 0.7978846, %v3278_v21  ;;  %v2983_v23 = vmul.f32 0.044715, %v7994_v55 }
 0x5a2   : > { %9432 = vst [vmem:[#allocation52_spill] sm:$0xff] %v7958_v10  ;;  %9433 = vst [vmem:[#allocation53_spill] sm:$0xff] %v7960_v56  ;;  %5345 = vtanh.f32 %v3351_v54  ;;  %v3376_v54 = vmul.f32 0.7978846, %v3276_v28  ;;  %v3081_v28 = vmul.f32 %v2981_v38, %v7950_v2  ;;  %v3184_v8 = vmul.f32 %v3084_v9, %v7923_v27 }
 0x5a3   : > { %v7970_v44 = vpop.f32.mrf.mxu1  ;;  %v7972_v63 = vpop.f32.mrf.mxu0  ;;  %9441 = vst [vmem:[#allocation61_spill] sm:$0xff] %v8001_v47  ;;  %5347 = vtanh.f32 %v3349_v18  ;;  %v8027_v38 = vadd.f32 %v7767_v25, %v7582_v14  ;;  %v2988_v18 = vmul.f32 0.044715, %v8001_v47  ;;  %v8034_v21 = vadd.f32 %v7794_v19, %v7579_v60 }
 0x5a4   : > { %9434 = vst [vmem:[#allocation54_spill] sm:$0xff] %v7970_v44  ;;  %9435 = vst [vmem:[#allocation55_spill] sm:$0xff] %v7972_v63  ;;  %v7986_v63 = vpop.eup %5333  ;;  %v3374_v44 = vmul.f32 0.7978846, %v3274_v0  ;;  %v8005_v0 = vadd.f32 %v7816_v45, %v7564_v4  ;;  %5349 = vtanh.f32 %v3353_v6  ;;  %v2986_v45 = vmul.f32 0.044715, %v7980_v52 }
 0x5a5   : > { %v7982_v49 = vpop.f32.mrf.mxu1  ;;  %v7984_v41 = vpop.f32.mrf.mxu0  ;;  %v3282_v19 = vadd.f32 %v3182_v24, %v7914_v51  ;;  %v2851_v24 = vmul.f32 0.5, %v7619_v13 }
 0x5a6   : > { %9437 = vst [vmem:[#allocation57_spill] sm:$0xff] %v7982_v49  ;;  %9438 = vst [vmem:[#allocation58_spill] sm:$0xff] %v7984_v41  ;;  %v8011_v20 = vpop.eup %5335  ;;  %5351 = vtanh.f32 %v3374_v44  ;;  %v3380_v41 = vmul.f32 0.7978846, %v3280_v29  ;;  %v2990_v9 = vmul.f32 0.044715, %v8005_v0  ;;  %v8039_v44 = vadd.f32 %v7818_v5, %v7566_v1 }
 0x5a7   : > { %9442 = vst [vmem:[#allocation62_spill] sm:$0xff] %v8005_v0  ;;  %v8007_v37 = vpop.f32.mrf.mxu1  ;;  %v8009_v15 = vpop.f32.mrf.mxu0  ;;  %5353 = vtanh.f32 %v3376_v54  ;;  %v3086_v5 = vmul.f32 %v2986_v45, %v7980_v52 }
 0x5a8   : > { %9443 = vst [vmem:[#allocation63_spill] sm:$0xff] %v8007_v37  ;;  %9444 = vst [vmem:[#allocation64_spill] sm:$0xff] %v8009_v15  ;;  %v8016_v53 = vpop.eup %5337  ;;  %5355 = vtanh.f32 %v3378_v33  ;;  %v2987_v33 = vmul.f32 0.044715, %v8034_v21  ;;  %v3090_v45 = vmul.f32 %v2990_v9, %v8005_v0 }
 0x5a9   : > { %v8020_v37 = vpop.f32.mrf.mxu1  ;;  %v8022_v15 = vpop.f32.mrf.mxu0  ;;  %9448 = vst [vmem:[#allocation68_spill] sm:$0xff] %v8039_v44  ;;  %5357 = vtanh.f32 %v3380_v41 }
 0x5aa   : > { %9445 = vst [vmem:[#allocation65_spill] sm:$0xff] %v8020_v37  ;;  %9446 = vst [vmem:[#allocation66_spill] sm:$0xff] %v8022_v15  ;;  %v8029_v30 = vpop.eup %5339  ;;  %v8048_v15 = vmul.f32 %v3079_v7, %v7939_v58  ;;  %v8051_v37 = vmul.f32 %v3081_v28, %v7950_v2  ;;  %v8065_v7 = vmul.f32 %v2983_v23, %v7994_v55  ;;  %v2985_v28 = vmul.f32 0.044715, %v8027_v38 }
 0x5ab   : > { %9447 = vst [vmem:[#allocation67_spill] sm:$0xff] %v8029_v30  ;;  %v8041_v6 = vpop.f32.mrf.mxu1  ;;  %v8043_v29 = vpop.f32.mrf.mxu0  ;;  %v3284_v30 = vadd.f32 %v3184_v8, %v7923_v27  ;;  %v3088_v8 = vmul.f32 %v2988_v18, %v8001_v47  ;;  %v2853_v23 = vmul.f32 0.5, %v7622_v39  ;;  %v9460_v18 = vld [vmem:[#allocation9_spill] sm:$0xff] }
 0x5ac   : > { %9449 = vst [vmem:[#allocation69_spill] sm:$0xff] %v8041_v6  ;;  %9450 = vst [vmem:[#allocation70_spill] sm:$0xff] %v8043_v29  ;;  %v8045_v25 = vpop.eup %5341  ;;  %v8058_v6 = vadd.f32 %v7796_v40, %v7582_v14  ;;  %v2992_v40 = vmul.f32 0.044715, %v8039_v44  ;;  %v3085_v39 = vmul.f32 %v2985_v28, %v8027_v38  ;;  %v9467_v28 = vld [vmem:[#allocation5_spill] sm:$0xff] }
 0x5ad   : > { %9451 = vst [vmem:[#allocation71_spill] sm:$0xff] %v8045_v25  ;;  %9452 = vst [vmem:[#allocation72_spill] sm:$0xff] %v8048_v15  ;;  %v8060_v29 = vpop.f32.mrf.mxu1  ;;  %v8062_v54 = vpop.f32.mrf.mxu0  ;;  %v8084_v58 = vmul.f32 0.7978846, %v3284_v30  ;;  %v3186_v25 = vmul.f32 %v3086_v5, %v7980_v52  ;;  %v3087_v30 = vmul.f32 %v2987_v33, %v8034_v21 }
 0x5ae   : > { %9453 = vst [vmem:[#allocation73_spill] sm:$0xff] %v8051_v37  ;;  %9454 = vst [vmem:[#allocation74_spill] sm:$0xff] %v8060_v29  ;;  %v5344_v41 = vpop.eup %5343  ;;  %v9458_v29 = vld [vmem:[#allocation4_spill] sm:$0xff]  ;;  %v9459_v37 = vld [vmem:[#allocation14_spill] sm:$0xff]  ;;  %v3092_v5 = vmul.f32 %v2992_v40, %v8039_v44  ;;  %v8115_v40 = vadd.f32 %v7855_v42, %v7564_v4 }
 0x5af   : > { %9455 = vst [vmem:[#allocation75_spill] sm:$0xff] %v8062_v54  ;;  %v8073_v27 = vpop.f32.mrf.mxu1  ;;  %v8075_v51 = vpop.f32.mrf.mxu0  ;;  %v8077_v54 = vmul.f32 0.7978846, %v3282_v19  ;;  %v3255_v13 = vadd.f32 %v9458_v29, %v7626_v48  ;;  %v3259_v2 = vadd.f32 %v9460_v18, %v9459_v37  ;;  %v3547_v9 = vadd.f32 1.0, %v5344_v41 }
 0x5b0   : > { %9456 = vst [vmem:[#allocation76_spill] sm:$0xff] %v8073_v27  ;;  %9457 = vst [vmem:[#allocation77_spill] sm:$0xff] %v8075_v51  ;;  %v5346_v15 = vpop.eup %5345  ;;  %v8088_v27 = vmul.f32 0.044715, %v8058_v6  ;;  %v3188_v18 = vmul.f32 %v3088_v8, %v8001_v47  ;;  %v3190_v41 = vmul.f32 %v3090_v45, %v8005_v0  ;;  %v3286_v33 = vadd.f32 %v3186_v25, %v7980_v52 }
 0x5b1   : > { %v8090_v51 = vpop.f32.mrf.mxu1  ;;  %v8092_v19 = vpop.f32.mrf.mxu0  ;;  %v3551_v49 = vadd.f32 1.0, %v5346_v15  ;;  %v3355_v29 = vmul.f32 0.7978846, %v3255_v13  ;;  %v3359_v43 = vmul.f32 0.7978846, %v3259_v2  ;;  %v3257_v15 = vadd.f32 %v9467_v28, %v9466_v57  ;;  %v9468_v13 = vld [vmem:[#allocation13_spill] sm:$0xff] }
 0x5b2   : > { %9461 = vst [vmem:[#allocation4_spill] sm:$0xff] %v8090_v51  ;;  %9462 = vst [vmem:[#allocation14_spill] sm:$0xff] %v8092_v19  ;;  %v9465_v51 = vld [vmem:[#allocation16_spill] sm:$0xff]  ;;  %v5348_v8 = vpop.eup %5347  ;;  %v8111_v45 = vadd.f32 %v7835_v34, %v7579_v60  ;;  %v3288_v34 = vadd.f32 %v3188_v18, %v8001_v47 }
 0x5b3   : > { %v8099_v17 = vpop.f32.mrf.mxu1  ;;  %v8101_v56 = vpop.f32.mrf.mxu0  ;;  %v3647_v59 = vmul.f32 %v3547_v9, %v9465_v51  ;;  %v3651_v19 = vmul.f32 %v3551_v49, %v2851_v24  ;;  %v9469_v2 = vld [vmem:[#allocation24_spill] sm:$0xff]  ;;  %5359 = vtanh.f32 %v3355_v29  ;;  %9470 = vst [vmem:[#allocation16_spill] sm:$0xff] %v8115_v40  ;;  %v3549_v28 = vadd.f32 1.0, %v5348_v8 }
 0x5b4   : > { %9463 = vst [vmem:[#allocation9_spill] sm:$0xff] %v8099_v17  ;;  %9464 = vst [vmem:[#allocation78_spill] sm:$0xff] %v8101_v56  ;;  %v3261_v10 = vadd.f32 %v9469_v2, %v9468_v13  ;;  %v5350_v24 = vpop.eup %5349  ;;  %5361 = vtanh.f32 %v3359_v43  ;;  %v3357_v2 = vmul.f32 0.7978846, %v3257_v15  ;;  %v8126_v29 = vadd.f32 %v7857_v50, %v7566_v1 }
 0x5b5   : > { %v8117_v51 = vpop.f32.mrf.mxu1  ;;  %v8119_v49 = vpop.f32.mrf.mxu0  ;;  %v3747_v9 = vpack.c.bf16 %v3651_v19, %v3647_v59  ;;  %v3553_v25 = vadd.f32 1.0, %v5350_v24  ;;  %v3290_v59 = vadd.f32 %v3190_v41, %v8005_v0  ;;  %v3192_v43 = vmul.f32 %v3092_v5, %v8039_v44  ;;  %v9503_v0 = vld [vmem:[#allocation2_spill] sm:$0xff] }
 0x5b6   : > { %9471 = vst [vmem:[#allocation18_spill] sm:$0xff] %v8117_v51  ;;  %9472 = vst [vmem:[#allocation5_spill] sm:$0xff] %v8119_v49  ;;  %v8121_v56 = vpop.eup %5351  ;;  %v3361_v52 = vmul.f32 0.7978846, %v3261_v10  ;;  %v8136_v19 = vadd.f32 %v7837_v61, %v7582_v14  ;;  %5363 = vtanh.f32 %v3357_v2  ;;  %v9476_v10 = vld [vmem:[#allocation15_spill] sm:$0xff]  ;;  %v9477_v8 = vpack.c.bf16 %v7821_v16, %v7776_v35  ;;  %v5523_v16 = vld [vmem:[%s9225_s7 + $0xb8] sm:$0xff]  }
 0x5b7   : > { %9473 = vst [vmem:[#allocation13_spill] sm:$0xff] %v8126_v29  ;;  %v8128_v42 = vpop.f32.mrf.mxu1  ;;  %v8130_v51 = vpop.f32.mrf.mxu0  ;;  %4091 = vmatprep.mubr.bf16.mxu1 %v3747_v9  ;;  %v3649_v15 = vmul.f32 %v3549_v28, %v9476_v10  ;;  %v3653_v50 = vmul.f32 %v3553_v25, %v2853_v23  ;;  %v2994_v24 = vmul.f32 0.044715, %v8115_v40  ;;  %v8153_v61 = vmul.f32 %v8065_v7, %v7994_v55  ;;  %v9504_v49 = vld [vmem:[#allocation25_spill] sm:$0xff] }
 0x5b8   : > { %9474 = vst [vmem:[#allocation24_spill] sm:$0xff] %v8128_v42  ;;  %9475 = vst [vmem:[#allocation79_spill] sm:$0xff] %v8130_v51  ;;  %v8138_v18 = vpop.eup %5353  ;;  %4092 = vmatmul.mubr.bf16.vlgmr.msra.gmra.mxu1 %v9477_v8  ;;  %5365 = vtanh.f32 %v3361_v52  ;;  %v8156_v28 = vmul.f32 %v3085_v39, %v8027_v38  ;;  %v3386_v23 = vmul.f32 0.7978846, %v3286_v33  ;;  %v2991_v35 = vmul.f32 0.044715, %v8111_v45 }
 0x5b9   : > { %v8145_v41 = vpop.f32.mrf.mxu1  ;;  %v8147_v5 = vpop.f32.mrf.mxu0  ;;  %5107 = vmatpush3.bf16.msra.mxu1 %v5523_v16  ;;  %5367 = vtanh.f32 %v8077_v54  ;;  %v3749_v2 = vpack.c.bf16 %v3653_v50, %v3649_v15  ;;  %v3388_v25 = vmul.f32 0.7978846, %v3288_v34  ;;  %v2996_v7 = vmul.f32 0.044715, %v8126_v29  ;;  %v9482_v33 = vld [vmem:[#allocation21_spill] sm:$0xff]  ;;  %v9496_v42 = vld [vmem:[#allocation36_spill] sm:$0xff] }
 0x5ba   : > { %9478 = vst [vmem:[#allocation15_spill] sm:$0xff] %v8145_v41  ;;  %9479 = vst [vmem:[#allocation80_spill] sm:$0xff] %v8147_v5  ;;  %v8149_v9 = vpop.eup %5355  ;;  %5100 = vmatprep.subr.bf16.mxu1 %v9482_v33  ;;  %5369 = vtanh.f32 %v8084_v58  ;;  %v3390_v8 = vmul.f32 0.7978846, %v3290_v59  ;;  %v3292_v51 = vadd.f32 %v3192_v43, %v8039_v44  ;;  %v2993_v16 = vmul.f32 0.044715, %v8136_v19 }
 0x5bb   : > { %v8162_v52 = vpop.eup %5357  ;;  %v8166_v10 = vpop.f32.mrf.mxu1  ;;  %4227 = vmatprep.mubr.bf16.mxu0 %v3749_v2  ;;  %v8175_v54 = vmul.f32 %v3087_v30, %v8034_v21  ;;  %v8179_v34 = vmul.f32 %v8088_v27, %v8058_v6  ;;  %v3094_v15 = vmul.f32 %v2994_v24, %v8115_v40  ;;  %v3558_v50 = vadd.f32 1.0, %v7890_v32  ;;  %v9484_v30 = vld [vmem:[#allocation30_spill] sm:$0xff]  ;;  %v5524_v27 = vld [vmem:[%s9225_s7 + $0xb0] sm:$0xff]  }
 0x5bc   : > { %9480 = vst [vmem:[#allocation81_spill] sm:$0xff] %v8166_v10  ;;  %v8168_v39 = vpop.f32.mrf.mxu0  ;;  %5371 = vtanh.f32 %v3386_v23  ;;  %v9483_v58 = vpack.c.bf16 %v7842_v26, %v7785_v36  ;;  %v8187_v59 = vmul.f32 %v2991_v35, %v8111_v45  ;;  %v2855_v43 = vmul.f32 0.5, %v7626_v48  ;;  %v9485_v23 = vld [vmem:[#allocation20_spill] sm:$0xff]  ;;  %v9488_v33 = vld [vmem:[#allocation22_spill] sm:$0xff] }
 0x5bd   : > { %9481 = vst [vmem:[#allocation82_spill] sm:$0xff] %v8168_v39  ;;  %v3554_v2 = vadd.f32 1.0, %v9484_v30  ;;  %5108 = vmatpush3.bf16.msra.mxu1 %v5524_v27  ;;  %5373 = vtanh.f32 %v3388_v25  ;;  %v2859_v32 = vmul.f32 0.5, %v9459_v37  ;;  %v3096_v24 = vmul.f32 %v2996_v7, %v8126_v29  ;;  %v8197_v26 = vpop.f32.mrf.mxu1  ;;  %v9489_v30 = vld [vmem:[#allocation10_spill] sm:$0xff]  ;;  %v9492_v39 = vld [vmem:[#allocation39_spill] sm:$0xff] }
 0x5be   : > { %4228 = vmatmul.mubr.bf16.vlgmr.msra.gmra.mxu0 %v9483_v58  ;;  %v2858_v36 = vmul.f32 0.5, %v9485_v23  ;;  %9486 = vst [vmem:[#allocation21_spill] sm:$0xff] %v8197_v26  ;;  %v8199_v35 = vpop.f32.mrf.mxu0  ;;  %5101 = vmatprep.subr.bf16.mxu1 %v9488_v33  ;;  %5375 = vtanh.f32 %v3390_v8  ;;  %v8202_v48 = vmul.f32 0.7978846, %v3292_v51  ;;  %v8205_v58 = vmul.f32 %v2993_v16, %v8136_v19  ;;  %v9490_v7 = vld [vmem:[#allocation38_spill] sm:$0xff]  ;;  %v9494_v26 = vld [vmem:[#allocation23_spill] sm:$0xff] }
 0x5bf   : > { %9487 = vst [vmem:[#allocation30_spill] sm:$0xff] %v8199_v35  ;;  %v2854_v25 = vmul.f32 0.5, %v9489_v30  ;;  %v3194_v37 = vmul.f32 %v3094_v15, %v8115_v40  ;;  %v8211_v23 = vadd.f32 %v9490_v7, %v7564_v4  ;;  %v8215_v35 = vadd.f32 %v9492_v39, %v7566_v1  ;;  %v5525_v15 = vld [vmem:[%s9225_s7 + $0xa8] sm:$0xff]   ;;  %v8226_v41 = vpop.f32.mrf.mxu1 }
 0x5c0   : > { %v3658_v27 = vmul.f32 %v3558_v50, %v2858_v36  ;;  %v5360_v33 = vpop.eup %5359  ;;  %v2857_v51 = vmul.f32 0.5, %v9466_v57  ;;  %v2861_v8 = vmul.f32 0.5, %v9468_v13  ;;  %v2856_v10 = vmul.f32 0.5, %v9494_v26  ;;  %v9495_v7 = vld [vmem:[#allocation19_spill] sm:$0xff]  ;;  %9497 = vst [vmem:[#allocation10_spill] sm:$0xff] %v8226_v41  ;;  %v8228_v57 = vpop.f32.mrf.mxu0  ;;  %v5526_v13 = vld [vmem:[%s9225_s7 + $0xe0] sm:$0xff]  }
 0x5c1   : > { %9491 = vst [vmem:[#allocation20_spill] sm:$0xff] %v8211_v23  ;;  %9493 = vst [vmem:[#allocation22_spill] sm:$0xff] %v8215_v35  ;;  %v3654_v16 = vmul.f32 %v3554_v2, %v2854_v25  ;;  %5109 = vmatpush3.bf16.msra.mxu1 %v5525_v15  ;;  %v5362_v50 = vpop.eup %5361  ;;  %v3555_v36 = vadd.f32 1.0, %v5360_v33  ;;  %v3196_v30 = vmul.f32 %v3096_v24, %v8126_v29  ;;  %v2860_v39 = vmul.f32 0.5, %v9495_v7  ;;  %v9499_v25 = vld [vmem:[#allocation34_spill] sm:$0xff]  ;;  %v9501_v24 = vld [vmem:[#allocation35_spill] sm:$0xff] }
 0x5c2   : > { %v3556_v5 = vadd.f32 1.0, %v9496_v42  ;;  %9498 = vst [vmem:[#allocation38_spill] sm:$0xff] %v8228_v57  ;;  %5102 = vmatprep.subr.bf16.mxu1 %v5526_v13  ;;  %v3559_v2 = vadd.f32 1.0, %v5362_v50  ;;  %v3560_v26 = vadd.f32 1.0, %v7906_v3  ;;  %v8236_v33 = vadd.f32 %v9499_v25, %v7579_v60 }
 0x5c3   : > { %v8240_v15 = vadd.f32 %v9501_v24, %v7582_v14  ;;  %v5364_v42 = vpop.eup %5363  ;;  %v3294_v7 = vadd.f32 %v3194_v37, %v8115_v40  ;;  %v3750_v57 = vpack.c.bf16 %v3658_v27, %v3654_v16  ;;  %v2998_v41 = vmul.f32 0.044715, %v8211_v23  ;;  %v5527_v24 = vld [vmem:[%s9225_s7 + $0xa0] sm:$0xff]   ;;  %v8253_v40 = vpop.f32.mrf.mxu1 }
 0x5c4   : > { %9500 = vst [vmem:[#allocation39_spill] sm:$0xff] %v8236_v33  ;;  %v3000_v44 = vmul.f32 0.044715, %v8215_v35  ;;  %v3655_v50 = vmul.f32 %v3555_v36, %v2855_v43  ;;  %v3659_v47 = vmul.f32 %v3559_v2, %v2859_v32  ;;  %v3557_v3 = vadd.f32 1.0, %v5364_v42  ;;  %9505 = vst [vmem:[#allocation19_spill] sm:$0xff] %v8253_v40  ;;  %v8255_v43 = vpop.f32.mrf.mxu0 }
 0x5c5   : > { %9502 = vst [vmem:[#allocation23_spill] sm:$0xff] %v8240_v15  ;;  %v5366_v13 = vpop.eup %5365  ;;  %v3263_v25 = vadd.f32 %v9504_v49, %v9503_v0  ;;  %5110 = vmatpush3.bf16.msra.mxu1 %v5527_v24  ;;  %v3296_v37 = vadd.f32 %v3196_v30, %v8126_v29  ;;  %v3656_v27 = vmul.f32 %v3556_v5, %v2856_v10  ;;  %9506 = vst [vmem:[#allocation36_spill] sm:$0xff] %v8255_v43  ;;  %v5528_v49 = vld [vmem:[%s9225_s7 + $0xd8] sm:$0xff]  }
 0x5c6   : > { %v3561_v17 = vadd.f32 1.0, %v5366_v13  ;;  %v3267_v16 = vadd.f32 %v7899_v12, %v7791_v11  ;;  %5103 = vmatprep.subr.bf16.mxu1 %v5528_v49  ;;  %v8260_v32 = vpop.eup %5367  ;;  %v3751_v36 = vpack.c.bf16 %v3659_v47, %v3655_v50  ;;  %v3660_v2 = vmul.f32 %v3560_v26, %v2860_v39  ;;  %v9508_v47 = vld [vmem:[#allocation6_spill] sm:$0xff]  ;;  %v9509_v39 = vld [vmem:[#allocation31_spill] sm:$0xff] }
 0x5c7   : > { %v8264_v30 = vadd.f32 %v7902_v46, %v7579_v60  ;;  %v3363_v5 = vmul.f32 0.7978846, %v3263_v25  ;;  %v8266_v10 = vpop.eup %5369  ;;  %v3657_v12 = vmul.f32 %v3557_v3, %v2857_v51  ;;  %v2995_v13 = vmul.f32 0.044715, %v8236_v33  ;;  %v5529_v46 = vld [vmem:[%s9225_s7 + $0x98] sm:$0xff]   ;;  %v8285_v3 = vpop.f32.mrf.mxu1 }
 0x5c8   : > { %v3661_v42 = vmul.f32 %v3561_v17, %v2861_v8  ;;  %v3367_v24 = vmul.f32 0.7978846, %v3267_v16  ;;  %4099 = vmatprep.mubr.bf16.mxu1 %v3751_v36  ;;  %v3098_v43 = vmul.f32 %v2998_v41, %v8211_v23  ;;  %v3100_v49 = vmul.f32 %v3000_v44, %v8215_v35  ;;  %v9510_v8 = vld [vmem:[#allocation42_spill] sm:$0xff]  ;;  %9512 = vst [vmem:[#allocation2_spill] sm:$0xff] %v8285_v3  ;;  %v8287_v25 = vpop.f32.mrf.mxu0  ;;  %v5530_v16 = vld [vmem:[%s9225_s7 + $0xd0] sm:$0xff]  }
 0x5c9   : > { %9507 = vst [vmem:[#allocation34_spill] sm:$0xff] %v8264_v30  ;;  %5377 = vtanh.f32 %v3363_v5  ;;  %v3265_v26 = vadd.f32 %v9509_v39, %v9508_v47  ;;  %5111 = vmatpush3.bf16.msra.mxu1 %v5529_v46  ;;  %v8276_v50 = vpop.eup %5371  ;;  %v2997_v51 = vmul.f32 0.044715, %v8240_v15  ;;  %v3269_v41 = vadd.f32 %v9510_v8, %v7802_v62  ;;  %9513 = vst [vmem:[#allocation25_spill] sm:$0xff] %v8287_v25  ;;  %v9515_v39 = vld [vmem:[#allocation41_spill] sm:$0xff] }
 0x5ca   : > { %v3753_v17 = vpack.c.bf16 %v3661_v42, %v3657_v12  ;;  %4100 = vmatmul.mubr.bf16.gmra.mxu1 %v3750_v57  ;;  %v8283_v44 = vadd.f32 %v7925_v31, %v7564_v4  ;;  %5104 = vmatprep.subr.bf16.mxu1 %v5530_v16  ;;  %v8292_v36 = vpop.eup %5373  ;;  %v3752_v57 = vpack.c.bf16 %v3660_v2, %v3656_v27  ;;  %v2999_v5 = vmul.f32 0.044715, %v8264_v30 }
 0x5cb   : > { %9514 = vst [vmem:[#allocation6_spill] sm:$0xff] %v8292_v36  ;;  %5379 = vtanh.f32 %v3367_v24  ;;  %v3365_v12 = vmul.f32 0.7978846, %v3265_v26  ;;  %v8295_v42 = vpop.eup %5375  ;;  %v3394_v31 = vmul.f32 0.7978846, %v3294_v7  ;;  %v8299_v46 = vadd.f32 %v9515_v39, %v7582_v14  ;;  %v5531_v7 = vld [vmem:[%s9225_s7 + $0x90] sm:$0xff]  }
 0x5cc   : > { %9511 = vst [vmem:[#allocation35_spill] sm:$0xff] %v8283_v44  ;;  %4235 = vmatprep.mubr.bf16.mxu0 %v3753_v17  ;;  %v3369_v8 = vmul.f32 0.7978846, %v3269_v41  ;;  %v8303_v25 = vadd.f32 %v7927_v22, %v7566_v1  ;;  %v3396_v16 = vmul.f32 0.7978846, %v3296_v37  ;;  %v3198_v27 = vmul.f32 %v3098_v43, %v8211_v23  ;;  %v8316_v37 = vpop.f32.mrf.mxu1  ;;  %v8318_v43 = vpop.f32.mrf.mxu0  ;;  %v5532_v17 = vld [vmem:[%s9225_s7 + $0xc8] sm:$0xff]  }
 0x5cd   : > { %4236 = vmatmul.mubr.bf16.gmra.mxu0 %v3752_v57  ;;  %5381 = vtanh.f32 %v3365_v12  ;;  %v3002_v2 = vmul.f32 0.044715, %v8283_v44  ;;  %5112 = vmatpush3.bf16.msra.mxu1 %v5531_v7  ;;  %v8312_v24 = vmul.f32 %v8179_v34, %v8058_v6  ;;  %v3095_v26 = vmul.f32 %v2995_v13, %v8236_v33  ;;  %9517 = vst [vmem:[#allocation42_spill] sm:$0xff] %v8316_v37  ;;  %v9521_v7 = vld [vmem:[#allocation47_spill] sm:$0xff] }
 0x5ce   : > { %9516 = vst [vmem:[#allocation31_spill] sm:$0xff] %v8303_v25  ;;  %v3200_v22 = vmul.f32 %v3100_v49, %v8215_v35  ;;  %5383 = vtanh.f32 %v3369_v8  ;;  %9518 = vst [vmem:[#allocation41_spill] sm:$0xff] %v8318_v43  ;;  %5105 = vmatprep.subr.bf16.mxu1 %v5532_v17  ;;  %v8326_v34 = vmul.f32 %v8187_v59, %v8111_v45  ;;  %v3001_v41 = vmul.f32 0.044715, %v8299_v46  ;;  %v8348_v17 = vpop.f32.mrf.mxu1 }
 0x5cf   : > { %5385 = vtanh.f32 %v8202_v48  ;;  %v3097_v13 = vmul.f32 %v2997_v51, %v8240_v15  ;;  %v3099_v49 = vmul.f32 %v2999_v5, %v8264_v30  ;;  %v3004_v57 = vmul.f32 0.044715, %v8303_v25  ;;  %v5533_v51 = vld [vmem:[%s9225_s7 + $0x88] sm:$0xff]  }
 0x5d0   : > { %5387 = vtanh.f32 %v3394_v31  ;;  %v3566_v12 = vadd.f32 1.0, %v8011_v20  ;;  %v8335_v39 = vmul.f32 %v8205_v58, %v8136_v19  ;;  %v3298_v48 = vadd.f32 %v3198_v27, %v8211_v23  ;;  %v9520_v20 = vld [vmem:[#allocation11_spill] sm:$0xff]  ;;  %v5534_v27 = vld [vmem:[%s9225_s7 + $0xc0] sm:$0xff]   ;;  %v2682_v37 = vpop.f32.mrf.mxu1 }
 0x5d1   : > { %5389 = vtanh.f32 %v3396_v16  ;;  %v3102_v59 = vmul.f32 %v3002_v2, %v8283_v44  ;;  %5113 = vmatpush3.bf16.msra.mxu1 %v5533_v51  ;;  %v8343_v5 = vmul.f32 %v3095_v26, %v8236_v33  ;;  %v3300_v31 = vadd.f32 %v3200_v22, %v8215_v35  ;;  %9522 = vst [vmem:[#allocation11_spill] sm:$0xff] %v8348_v17  ;;  %v8350_v16 = vpop.f32.mrf.mxu0  ;;  %v9527_v37 = vld [vmem:[#allocation49_spill] sm:$0xff]  ;;  %v9532_v35 = vld [vmem:[#allocation3_spill] sm:$0xff] }
 0x5d2   : > { %v2866_v8 = vmul.f32 0.5, %v9520_v20  ;;  %v3562_v58 = vadd.f32 1.0, %v9521_v7  ;;  %9523 = vst [vmem:[#allocation47_spill] sm:$0xff] %v8350_v16  ;;  %5106 = vmatprep.subr.bf16.mxu1 %v5534_v27  ;;  %v8356_v2 = vmul.f32 %v3097_v13, %v8240_v15  ;;  %v8359_v26 = vmul.f32 %v3099_v49, %v8264_v30  ;;  %v9526_v16 = vld [vmem:[#allocation17_spill] sm:$0xff] }
 0x5d3   : > { %9519 = vst [vmem:[#allocation83_spill] sm:$0xff] %v8343_v5  ;;  %v2863_v22 = vmul.f32 0.5, %v9503_v0  ;;  %v2867_v51 = vmul.f32 0.5, %v7791_v11  ;;  %v8364_v20 = vmul.f32 %v3001_v41, %v8299_v46  ;;  %v3104_v7 = vmul.f32 %v3004_v57, %v8303_v25  ;;  %v2843_v27 = vpop.f32.mrf.mxu0  ;;  %v5535_v11 = vld [vmem:[%s9225_s7 + $0x80] sm:$0xff]   ;;  %v9537_v5 = vld [vmem:[#allocation37_spill] sm:$0xff] }
 0x5d4   : > { %9524 = vst [vmem:[#allocation84_spill] sm:$0xff] %v8356_v2  ;;  %9525 = vst [vmem:[#allocation85_spill] sm:$0xff] %v8359_v26  ;;  %v2862_v17 = vmul.f32 0.5, %v9526_v16  ;;  %v3666_v43 = vmul.f32 %v3566_v12, %v2866_v8  ;;  %v8368_v3 = vmul.f32 0.7978846, %v3298_v48  ;;  %v3202_v13 = vmul.f32 %v3102_v59, %v8283_v44  ;;  %v9529_v48 = vld [vmem:[#allocation50_spill] sm:$0xff] }
 0x5d5   : > { %v3564_v49 = vadd.f32 1.0, %v7986_v63  ;;  %v3568_v0 = vadd.f32 1.0, %v8016_v53  ;;  %5114 = vmatpush3.bf16.msra.mxu1 %v5535_v11  ;;  %v8376_v57 = vmul.f32 0.7978846, %v3300_v31  ;;  %v8380_v12 = vadd.f32 %v9527_v37, %v7579_v60  ;;  %v2683_v63 = vpop.f32.mrf.mxu1  ;;  %v2844_v8 = vpop.f32.mrf.mxu0  ;;  %v9531_v27 = vld [vmem:[#allocation12_spill] sm:$0xff] }
 0x5d6   : > { %v5378_v41 = vpop.eup %5377  ;;  %v3662_v16 = vmul.f32 %v3562_v58, %v2862_v17  ;;  %v8384_v59 = vadd.f32 %v9529_v48, %v7582_v14  ;;  %v2864_v40 = vmul.f32 0.5, %v9531_v27  ;;  %v2868_v29 = vmul.f32 0.5, %v9532_v35  ;;  %v9533_v11 = vld [vmem:[#allocation52_spill] sm:$0xff] }
 0x5d7   : > { %9528 = vst [vmem:[#allocation17_spill] sm:$0xff] %v8380_v12  ;;  %v3563_v53 = vadd.f32 1.0, %v5378_v41  ;;  %v8390_v31 = vadd.f32 %v9533_v11, %v7564_v4  ;;  %v2865_v17 = vmul.f32 0.5, %v9508_v47  ;;  %v2869_v37 = vmul.f32 0.5, %v7802_v62  ;;  %v9535_v11 = vld [vmem:[#allocation26_spill] sm:$0xff]  ;;  %v9536_v26 = vld [vmem:[#allocation44_spill] sm:$0xff] }
 0x5d8   : > { %9530 = vst [vmem:[#allocation49_spill] sm:$0xff] %v8384_v59  ;;  %v5380_v58 = vpop.eup %5379  ;;  %v3204_v23 = vmul.f32 %v3104_v7, %v8303_v25  ;;  %v3754_v48 = vpack.c.bf16 %v3666_v43, %v3662_v16  ;;  %v3302_v63 = vadd.f32 %v3202_v13, %v8283_v44  ;;  %v3664_v41 = vmul.f32 %v3564_v49, %v2864_v40  ;;  %v9538_v47 = vld [vmem:[#allocation59_spill] sm:$0xff]  ;;  %v9540_v49 = vld [vmem:[#allocation53_spill] sm:$0xff] }
 0x5d9   : > { %9534 = vst [vmem:[#allocation50_spill] sm:$0xff] %v8390_v31  ;;  %v3567_v2 = vadd.f32 1.0, %v5380_v58  ;;  %v3668_v8 = vmul.f32 %v3568_v0, %v2868_v29  ;;  %v3003_v35 = vmul.f32 0.044715, %v8380_v12  ;;  %v3005_v15 = vmul.f32 0.044715, %v8384_v59 }
 0x5da   : > { %v5382_v27 = vpop.eup %5381  ;;  %v3271_v30 = vadd.f32 %v9536_v26, %v9535_v11  ;;  %v3275_v33 = vadd.f32 %v9538_v47, %v9537_v5  ;;  %v3663_v36 = vmul.f32 %v3563_v53, %v2863_v22  ;;  %v3006_v16 = vmul.f32 0.044715, %v8390_v31  ;;  %v9543_v22 = vld [vmem:[#allocation54_spill] sm:$0xff] }
 0x5db   : > { %v5384_v62 = vpop.eup %5383  ;;  %v3667_v7 = vmul.f32 %v3567_v2, %v2867_v51  ;;  %v3565_v43 = vadd.f32 1.0, %v5382_v27  ;;  %v3304_v29 = vadd.f32 %v3204_v23, %v8303_v25  ;;  %v8408_v0 = vadd.f32 %v9540_v49, %v7566_v1  ;;  %v9546_v23 = vld [vmem:[#allocation28_spill] sm:$0xff]  ;;  %v9547_v25 = vld [vmem:[#allocation46_spill] sm:$0xff] }
 0x5dc   : > { %v8403_v13 = vpop.eup %5385  ;;  %v3569_v40 = vadd.f32 1.0, %v5384_v62  ;;  %v3371_v58 = vmul.f32 0.7978846, %v3271_v30  ;;  %v3756_v47 = vpack.c.bf16 %v3668_v8, %v3664_v41  ;;  %v8414_v2 = vadd.f32 %v9543_v22, %v7579_v60  ;;  %v9548_v41 = vld [vmem:[#allocation40_spill] sm:$0xff] }
 0x5dd   : > { %9539 = vst [vmem:[#allocation12_spill] sm:$0xff] %v8403_v13  ;;  %9541 = vst [vmem:[#allocation3_spill] sm:$0xff] %v8408_v0  ;;  %v8410_v26 = vpop.eup %5387  ;;  %v3755_v44 = vpack.c.bf16 %v3667_v7, %v3663_v36  ;;  %v3375_v51 = vmul.f32 0.7978846, %v3275_v33  ;;  %v3665_v27 = vmul.f32 %v3565_v43, %v2865_v17  ;;  %v3273_v13 = vadd.f32 %v9547_v25, %v9546_v23  ;;  %v9549_v8 = vld [vmem:[#allocation60_spill] sm:$0xff]  ;;  %v9550_v43 = vld [vmem:[#allocation57_spill] sm:$0xff] }
 0x5de   : > { %9542 = vst [vmem:[#allocation52_spill] sm:$0xff] %v8410_v26  ;;  %9544 = vst [vmem:[#allocation26_spill] sm:$0xff] %v8414_v2  ;;  %v8416_v53 = vpop.eup %5389  ;;  %v3669_v62 = vmul.f32 %v3569_v40, %v2869_v37  ;;  %5391 = vtanh.f32 %v3371_v58  ;;  %v3402_v49 = vmul.f32 0.7978846, %v3302_v63  ;;  %v3103_v30 = vmul.f32 %v3003_v35, %v8380_v12  ;;  %v9553_v63 = vld [vmem:[#allocation7_spill] sm:$0xff] }
 0x5df   : > { %9545 = vst [vmem:[#allocation44_spill] sm:$0xff] %v8416_v53  ;;  %4107 = vmatprep.mubr.bf16.mxu1 %v3755_v44  ;;  %v3106_v36 = vmul.f32 %v3006_v16, %v8390_v31  ;;  %v3277_v7 = vadd.f32 %v9549_v8, %v9548_v41  ;;  %v3008_v33 = vmul.f32 0.044715, %v8408_v0  ;;  %5393 = vtanh.f32 %v3375_v51  ;;  %v9551_v44 = vld [vmem:[#allocation58_spill] sm:$0xff]  ;;  %v9554_v16 = vld [vmem:[#allocation27_spill] sm:$0xff] }
 0x5e0   : > { %v3757_v22 = vpack.c.bf16 %v3669_v62, %v3665_v27  ;;  %4108 = vmatmul.mubr.bf16.gmra.mxu1 %v3754_v48  ;;  %v3373_v17 = vmul.f32 0.7978846, %v3273_v13  ;;  %v8427_v40 = vadd.f32 %v9550_v43, %v7564_v4  ;;  %v8431_v25 = vadd.f32 %v9551_v44, %v7566_v1  ;;  %v9555_v48 = vld [vmem:[#allocation67_spill] sm:$0xff] }
 0x5e1   : > { %v3377_v37 = vmul.f32 0.7978846, %v3277_v7  ;;  %v2870_v35 = vmul.f32 0.5, %v9553_v63  ;;  %v2874_v58 = vmul.f32 0.5, %v9554_v16  ;;  %v3570_v27 = vadd.f32 1.0, %v9555_v48  ;;  %v9556_v8 = vld [vmem:[#allocation55_spill] sm:$0xff] }
 0x5e2   : > { %9552 = vst [vmem:[#allocation37_spill] sm:$0xff] %v8431_v25  ;;  %4243 = vmatprep.mubr.bf16.mxu0 %v3757_v22  ;;  %5395 = vtanh.f32 %v3373_v17  ;;  %v3574_v51 = vadd.f32 1.0, %v8121_v56  ;;  %v3206_v13 = vmul.f32 %v3106_v36, %v8390_v31  ;;  %v3007_v62 = vmul.f32 0.044715, %v8414_v2  ;;  %v9557_v44 = vld [vmem:[#allocation71_spill] sm:$0xff]  ;;  %v9559_v36 = vld [vmem:[#allocation29_spill] sm:$0xff] }
 0x5e3   : > { %4244 = vmatmul.mubr.bf16.gmra.mxu0 %v3756_v47  ;;  %v8441_v7 = vadd.f32 %v9556_v8, %v7582_v14  ;;  %5397 = vtanh.f32 %v3377_v37  ;;  %v3108_v43 = vmul.f32 %v3008_v33, %v8408_v0  ;;  %v8444_v22 = vmul.f32 %v3570_v27, %v2870_v35  ;;  %v9558_v47 = vld [vmem:[#allocation8_spill] sm:$0xff] }
 0x5e4   : > { %v8446_v17 = vmul.f32 %v3574_v51, %v2874_v58  ;;  %v3572_v63 = vadd.f32 1.0, %v9557_v44  ;;  %v3010_v56 = vmul.f32 0.044715, %v8427_v40  ;;  %v2872_v16 = vmul.f32 0.5, %v9558_v47 }
 0x5e5   : > { %v2876_v48 = vmul.f32 0.5, %v9559_v36  ;;  %v3576_v53 = vadd.f32 1.0, %v8138_v18  ;;  %v3404_v26 = vmul.f32 0.7978846, %v3304_v29  ;;  %v3105_v8 = vmul.f32 %v3005_v15, %v8384_v59 }
 0x5e6   : > { %v3012_v37 = vmul.f32 0.044715, %v8431_v25  ;;  %5399 = vtanh.f32 %v8368_v3  ;;  %v3107_v35 = vmul.f32 %v3007_v62, %v8414_v2  ;;  %v8459_v58 = vmul.f32 %v3572_v63, %v2872_v16  ;;  %v9563_v63 = vld [vmem:[#allocation63_spill] sm:$0xff] }
 0x5e7   : > { %v8461_v27 = vmul.f32 %v3576_v53, %v2876_v48  ;;  %5401 = vtanh.f32 %v8376_v57  ;;  %v3306_v18 = vadd.f32 %v3206_v13, %v8390_v31  ;;  %v3208_v29 = vmul.f32 %v3108_v43, %v8408_v0 }
 0x5e8   : > { %v3009_v15 = vmul.f32 0.044715, %v8441_v7  ;;  %v8469_v51 = vmul.f32 %v8364_v20, %v8299_v46  ;;  %5403 = vtanh.f32 %v3402_v49  ;;  %v3110_v3 = vmul.f32 %v3010_v56, %v8427_v40 }
 0x5e9   : > { %5405 = vtanh.f32 %v3404_v26  ;;  %v8475_v53 = vmul.f32 %v3103_v30, %v8380_v12  ;;  %v8478_v57 = vmul.f32 %v3105_v8, %v8384_v59  ;;  %v3112_v13 = vmul.f32 %v3012_v37, %v8431_v25 }
 0x5ea   : > { %v8482_v44 = vmul.f32 %v3107_v35, %v8414_v2  ;;  %v2871_v20 = vmul.f32 0.5, %v9535_v11  ;;  %v2875_v49 = vmul.f32 0.5, %v9537_v5  ;;  %v8488_v56 = vadd.f32 %v9563_v63, %v7579_v60  ;;  %v9564_v11 = vld [vmem:[#allocation65_spill] sm:$0xff]  ;;  %v9566_v5 = vld [vmem:[#allocation48_spill] sm:$0xff] }
 0x5eb   : > { %9560 = vst [vmem:[#allocation59_spill] sm:$0xff] %v8475_v53  ;;  %9561 = vst [vmem:[#allocation53_spill] sm:$0xff] %v8478_v57  ;;  %v5392_v43 = vpop.eup %5391  ;;  %v3406_v26 = vmul.f32 0.7978846, %v3306_v18  ;;  %v3308_v30 = vadd.f32 %v3208_v29, %v8408_v0  ;;  %v8492_v47 = vmul.f32 %v3009_v15, %v8441_v7  ;;  %v2873_v48 = vmul.f32 0.5, %v9546_v23  ;;  %v9567_v35 = vld [vmem:[#allocation72_spill] sm:$0xff] }
 0x5ec   : > { %9562 = vst [vmem:[#allocation54_spill] sm:$0xff] %v8482_v44  ;;  %v3571_v16 = vadd.f32 1.0, %v5392_v43  ;;  %v5394_v36 = vpop.eup %5393  ;;  %v3210_v8 = vmul.f32 %v3110_v3, %v8427_v40  ;;  %v8498_v37 = vadd.f32 %v9564_v11, %v7564_v4  ;;  %v3279_v63 = vadd.f32 %v9567_v35, %v9566_v5  ;;  %v9568_v3 = vld [vmem:[#allocation64_spill] sm:$0xff]  ;;  %v9569_v11 = vld [vmem:[#allocation66_spill] sm:$0xff] }
 0x5ed   : > { %v3575_v62 = vadd.f32 1.0, %v5394_v36  ;;  %v2877_v18 = vmul.f32 0.5, %v9548_v41  ;;  %v3212_v29 = vmul.f32 %v3112_v13, %v8431_v25  ;;  %v3283_v15 = vadd.f32 %v8153_v61, %v7994_v55 }
 0x5ee   : > { %9565 = vst [vmem:[#allocation28_spill] sm:$0xff] %v8498_v37  ;;  %v3011_v23 = vmul.f32 0.044715, %v8488_v56  ;;  %v8509_v33 = vadd.f32 %v9568_v3, %v7582_v14  ;;  %v8513_v0 = vadd.f32 %v9569_v11, %v7566_v1  ;;  %v3379_v35 = vmul.f32 0.7978846, %v3279_v63 }
 0x5ef   : > { %v5396_v43 = vpop.eup %5395  ;;  %v3671_v31 = vmul.f32 %v3571_v16, %v2871_v20  ;;  %v3675_v41 = vmul.f32 %v3575_v62, %v2875_v49  ;;  %v3383_v13 = vmul.f32 0.7978846, %v3283_v15  ;;  %v3310_v61 = vadd.f32 %v3210_v8, %v8427_v40  ;;  %v9571_v16 = vld [vmem:[#allocation51_spill] sm:$0xff]  ;;  %v9572_v8 = vld [vmem:[#allocation73_spill] sm:$0xff] }
 0x5f0   : > { %9570 = vst [vmem:[#allocation46_spill] sm:$0xff] %v8513_v0  ;;  %v5398_v36 = vpop.eup %5397  ;;  %v3573_v57 = vadd.f32 1.0, %v5396_v43  ;;  %v3014_v44 = vmul.f32 0.044715, %v8498_v37  ;;  %5407 = vtanh.f32 %v3379_v35  ;;  %v3408_v2 = vmul.f32 0.7978846, %v3308_v30 }
 0x5f1   : > { %v3577_v59 = vadd.f32 1.0, %v5398_v36  ;;  %5409 = vtanh.f32 %v3406_v26  ;;  %v3759_v3 = vpack.c.bf16 %v3675_v41, %v3671_v31  ;;  %v3312_v53 = vadd.f32 %v3212_v29, %v8431_v25 }
 0x5f2   : > { %v3673_v12 = vmul.f32 %v3573_v57, %v2873_v48  ;;  %v3111_v63 = vmul.f32 %v3011_v23, %v8488_v56  ;;  %5411 = vtanh.f32 %v3383_v13  ;;  %v3013_v62 = vmul.f32 0.044715, %v8509_v33  ;;  %v9580_v13 = vld [vmem:[#allocation43_spill] sm:$0xff] }
 0x5f3   : > { %v3677_v11 = vmul.f32 %v3577_v59, %v2877_v18  ;;  %v8519_v20 = vpop.eup %5399  ;;  %4115 = vmatprep.mubr.bf16.mxu1 %v3759_v3  ;;  %v3016_v49 = vmul.f32 0.044715, %v8513_v0  ;;  %v3281_v15 = vadd.f32 %v9572_v8, %v9571_v16  ;;  %v3285_v31 = vadd.f32 %v8156_v28, %v8027_v38  ;;  %v9574_v18 = vld [vmem:[#allocation69_spill] sm:$0xff]  ;;  %v9575_v28 = vld [vmem:[#allocation74_spill] sm:$0xff] }
 0x5f4   : > { %v8527_v26 = vpop.eup %5401  ;;  %v3410_v59 = vmul.f32 0.7978846, %v3310_v61  ;;  %v9573_v30 = vpack.c.bf16 %v8446_v17, %v8444_v22  ;;  %v3114_v48 = vmul.f32 %v3014_v44, %v8498_v37  ;;  %v8535_v29 = vadd.f32 %v9574_v18, %v7579_v60  ;;  %v9579_v17 = vld [vmem:[#allocation32_spill] sm:$0xff] }
 0x5f5   : > { %v3761_v57 = vpack.c.bf16 %v3677_v11, %v3673_v12  ;;  %v8537_v43 = vpop.eup %5403  ;;  %v3381_v23 = vmul.f32 0.7978846, %v3281_v15  ;;  %v3385_v35 = vmul.f32 0.7978846, %v3285_v31  ;;  %v8541_v36 = vadd.f32 %v9575_v28, %v7564_v4  ;;  %v9577_v12 = vld [vmem:[#allocation75_spill] sm:$0xff]  ;;  %v9582_v31 = vld [vmem:[#allocation70_spill] sm:$0xff] }
 0x5f6   : > { %4116 = vmatmul.mubr.bf16.gmra.mxu1 %v9573_v30  ;;  %v8545_v41 = vadd.f32 %v9577_v12, %v7566_v1  ;;  %v8547_v22 = vpop.eup %5405  ;;  %v2878_v44 = vmul.f32 0.5, %v9579_v17  ;;  %v2882_v61 = vmul.f32 0.5, %v9580_v13  ;;  %v3578_v3 = vadd.f32 1.0, %v8149_v9  ;;  %v9584_v12 = vld [vmem:[#allocation45_spill] sm:$0xff] }
 0x5f7   : > { %9576 = vst [vmem:[#allocation40_spill] sm:$0xff] %v8541_v36  ;;  %4251 = vmatprep.mubr.bf16.mxu0 %v3761_v57  ;;  %v3582_v11 = vadd.f32 1.0, %v8260_v32  ;;  %v9581_v8 = vpack.c.bf16 %v8461_v27, %v8459_v58  ;;  %v3116_v15 = vmul.f32 %v3016_v49, %v8513_v0  ;;  %v8559_v30 = vadd.f32 %v9582_v31, %v7582_v14  ;;  %v9583_v58 = vld [vmem:[#allocation33_spill] sm:$0xff] }
 0x5f8   : > { %9578 = vst [vmem:[#allocation60_spill] sm:$0xff] %v8545_v41  ;;  %5413 = vtanh.f32 %v3381_v23  ;;  %v3580_v57 = vadd.f32 1.0, %v8162_v52  ;;  %v3214_v18 = vmul.f32 %v3114_v48, %v8498_v37  ;;  %v8563_v28 = vmul.f32 %v3578_v3, %v2878_v44 }
 0x5f9   : > { %4252 = vmatmul.mubr.bf16.gmra.mxu0 %v9581_v8  ;;  %5415 = vtanh.f32 %v3385_v35  ;;  %v8565_v9 = vmul.f32 %v3582_v11, %v2882_v61  ;;  %v3018_v32 = vmul.f32 0.044715, %v8541_v36  ;;  %v2880_v27 = vmul.f32 0.5, %v9583_v58 }
 0x5fa   : > { %v2884_v49 = vmul.f32 0.5, %v9584_v12  ;;  %v3584_v17 = vadd.f32 1.0, %v8266_v10  ;;  %v8573_v23 = vmul.f32 %v8492_v47, %v8441_v7  ;;  %v3412_v52 = vmul.f32 0.7978846, %v3312_v53  ;;  %v9587_v12 = vld [vmem:[#allocation14_spill] sm:$0xff] }
 0x5fb   : > { %v3020_v48 = vmul.f32 0.044715, %v8545_v41  ;;  %v3762_v35 = vpack.c.bf16 %v8565_v9, %v8563_v28  ;;  %v3113_v44 = vmul.f32 %v3013_v62, %v8509_v33  ;;  %v3216_v13 = vmul.f32 %v3116_v15, %v8513_v0 }
 0x5fc   : > { %v8580_v61 = vmul.f32 %v3580_v57, %v2880_v27  ;;  %v8582_v3 = vmul.f32 %v3584_v17, %v2884_v49  ;;  %5417 = vtanh.f32 %v3408_v2  ;;  %v8585_v10 = vmul.f32 %v3111_v63, %v8488_v56 }
 0x5fd   : > { %v3015_v47 = vmul.f32 0.044715, %v8535_v29  ;;  %v3017_v53 = vmul.f32 0.044715, %v8559_v30  ;;  %v5408_v11 = vpop.eup %5407  ;;  %5419 = vtanh.f32 %v3410_v59  ;;  %v3314_v8 = vadd.f32 %v3214_v18, %v8498_v37 }
 0x5fe   : > { %v3118_v62 = vmul.f32 %v3018_v32, %v8541_v36  ;;  %v8593_v31 = vpop.eup %5409  ;;  %v2879_v2 = vmul.f32 0.5, %v9566_v5  ;;  %v2883_v63 = vmul.f32 0.5, %v7994_v55  ;;  %v3579_v57 = vadd.f32 1.0, %v5408_v11  ;;  %v9585_v32 = vld [vmem:[#allocation4_spill] sm:$0xff] }
 0x5ff   : > { %v3120_v28 = vmul.f32 %v3020_v48, %v8545_v41  ;;  %v5412_v9 = vpop.eup %5411  ;;  %5421 = vtanh.f32 %v3412_v52  ;;  %v8599_v59 = vmul.f32 %v3113_v44, %v8509_v33  ;;  %v3316_v18 = vadd.f32 %v3216_v13, %v8513_v0  ;;  %v9589_v44 = vld [vmem:[#allocation76_spill] sm:$0xff] }
 0x600   : > { %v8604_v58 = vadd.f32 %v9585_v32, %v7564_v4  ;;  %v8607_v27 = vmul.f32 %v3015_v47, %v8535_v29  ;;  %v8610_v5 = vmul.f32 %v3017_v53, %v8559_v30  ;;  %v3583_v55 = vadd.f32 1.0, %v5412_v9 }
 0x601   : > { %v8614_v49 = vadd.f32 %v9587_v12, %v7566_v1  ;;  %v8616_v17 = vmul.f32 0.7978846, %v3314_v8  ;;  %v2881_v52 = vmul.f32 0.5, %v9571_v16  ;;  %v3218_v48 = vmul.f32 %v3118_v62, %v8541_v36  ;;  %v9591_v8 = vld [vmem:[#allocation77_spill] sm:$0xff] }
 0x602   : > { %9586 = vst [vmem:[#allocation57_spill] sm:$0xff] %v8604_v58  ;;  %v8622_v13 = vadd.f32 %v9589_v44, %v7579_v60  ;;  %v3679_v47 = vmul.f32 %v3579_v57, %v2879_v2  ;;  %v3683_v11 = vmul.f32 %v3583_v55, %v2883_v63  ;;  %v3220_v53 = vmul.f32 %v3120_v28, %v8545_v41  ;;  %v9593_v62 = vld [vmem:[#allocation9_spill] sm:$0xff] }
 0x603   : > { %9588 = vst [vmem:[#allocation58_spill] sm:$0xff] %v8614_v49  ;;  %v3287_v9 = vadd.f32 %v8175_v54, %v8034_v21  ;;  %v8627_v32 = vmul.f32 0.7978846, %v3316_v18  ;;  %v8631_v12 = vadd.f32 %v9591_v8, %v7582_v14  ;;  %v3022_v16 = vmul.f32 0.044715, %v8604_v58 }
 0x604   : > { %9590 = vst [vmem:[#allocation7_spill] sm:$0xff] %v8622_v13  ;;  %v8636_v15 = vadd.f32 %v9593_v62, %v7579_v60  ;;  %v3763_v2 = vpack.c.bf16 %v3683_v11, %v3679_v47  ;;  %v3024_v63 = vmul.f32 0.044715, %v8614_v49  ;;  %v3291_v57 = vadd.f32 %v8326_v34, %v8111_v45 }
 0x605   : > { %9592 = vst [vmem:[#allocation27_spill] sm:$0xff] %v8631_v12  ;;  %v5414_v44 = vpop.eup %5413  ;;  %v3387_v54 = vmul.f32 0.7978846, %v3287_v9  ;;  %v2885_v18 = vmul.f32 0.5, %v8027_v38  ;;  %v3318_v8 = vadd.f32 %v3218_v48, %v8541_v36  ;;  %v3019_v0 = vmul.f32 0.044715, %v8622_v13 }
 0x606   : > { %9594 = vst [vmem:[#allocation67_spill] sm:$0xff] %v8636_v15  ;;  %v5416_v28 = vpop.eup %5415  ;;  %v3581_v55 = vadd.f32 1.0, %v5414_v44  ;;  %4123 = vmatprep.mubr.bf16.mxu1 %v3763_v2  ;;  %v3320_v62 = vadd.f32 %v3220_v53, %v8545_v41  ;;  %v3391_v37 = vmul.f32 0.7978846, %v3291_v57  ;;  %v3021_v47 = vmul.f32 0.044715, %v8631_v12 }
 0x607   : > { %v3585_v25 = vadd.f32 1.0, %v5416_v28  ;;  %5423 = vtanh.f32 %v3387_v54  ;;  %4124 = vmatmul.mubr.bf16.gmra.mxu1 %v3762_v35  ;;  %v3122_v34 = vmul.f32 %v3022_v16, %v8604_v58  ;;  %v3289_v11 = vadd.f32 %v8312_v24, %v8058_v6  ;;  %v9595_v35 = vld [vmem:[#allocation78_spill] sm:$0xff]  ;;  %v9605_v36 = vld [vmem:[#allocation68_spill] sm:$0xff] }
 0x608   : > { %v3293_v38 = vadd.f32 %v8335_v39, %v8136_v19  ;;  %v3681_v48 = vmul.f32 %v3581_v55, %v2881_v52  ;;  %v3124_v44 = vmul.f32 %v3024_v63, %v8614_v49  ;;  %v3023_v2 = vmul.f32 0.044715, %v8636_v15  ;;  %v9597_v39 = vld [vmem:[#allocation18_spill] sm:$0xff] }
 0x609   : > { %v3685_v9 = vmul.f32 %v3585_v25, %v2885_v18  ;;  %v8653_v53 = vpop.eup %5417  ;;  %v8657_v57 = vadd.f32 %v9595_v35, %v7582_v14  ;;  %5425 = vtanh.f32 %v3391_v37  ;;  %v3389_v16 = vmul.f32 0.7978846, %v3289_v11  ;;  %v9599_v25 = vld [vmem:[#allocation5_spill] sm:$0xff]  ;;  %v9601_v18 = vld [vmem:[#allocation56_spill] sm:$0xff]  ;;  %v9602_v41 = vld [vmem:[#allocation62_spill] sm:$0xff] }
 0x60a   : > { %v3393_v54 = vmul.f32 0.7978846, %v3293_v38  ;;  %v8659_v28 = vpop.eup %5419  ;;  %v8663_v52 = vadd.f32 %v9597_v39, %v7564_v4  ;;  %v8667_v63 = vadd.f32 %v9599_v25, %v7566_v1  ;;  %v2886_v55 = vmul.f32 0.5, %v9601_v18 }
 0x60b   : > { %9596 = vst [vmem:[#allocation55_spill] sm:$0xff] %v8659_v28  ;;  %v3765_v24 = vpack.c.bf16 %v3685_v9, %v3681_v48  ;;  %5427 = vtanh.f32 %v3389_v16  ;;  %v2890_v35 = vmul.f32 0.5, %v9602_v41  ;;  %v3586_v37 = vadd.f32 1.0, %v8276_v50  ;;  %v9604_v9 = vld [vmem:[#allocation61_spill] sm:$0xff]  ;;  %v9607_v50 = vld [vmem:[#allocation6_spill] sm:$0xff]  ;;  %v9608_v28 = vld [vmem:[#allocation12_spill] sm:$0xff] }
 0x60c   : > { %9598 = vst [vmem:[#allocation71_spill] sm:$0xff] %v8663_v52  ;;  %9600 = vst [vmem:[#allocation8_spill] sm:$0xff] %v8667_v63  ;;  %v3590_v11 = vadd.f32 1.0, %v8295_v42  ;;  %v8673_v38 = vpop.eup %5421  ;;  %v3222_v48 = vmul.f32 %v3122_v34, %v8604_v58  ;;  %5429 = vtanh.f32 %v3393_v54  ;;  %v2888_v39 = vmul.f32 0.5, %v9604_v9 }
 0x60d   : > { %9603 = vst [vmem:[#allocation29_spill] sm:$0xff] %v8673_v38  ;;  %4259 = vmatprep.mubr.bf16.mxu0 %v3765_v24  ;;  %v2892_v25 = vmul.f32 0.5, %v9605_v36  ;;  %v9606_v18 = vpack.c.bf16 %v8582_v3, %v8580_v61  ;;  %v8681_v16 = vmul.f32 %v3586_v37, %v2886_v55  ;;  %v3588_v42 = vadd.f32 1.0, %v9607_v50  ;;  %v9620_v61 = vld [vmem:[#allocation85_spill] sm:$0xff] }
 0x60e   : > { %v8683_v41 = vmul.f32 %v3590_v11, %v2890_v35  ;;  %v3592_v38 = vadd.f32 1.0, %v9608_v28  ;;  %v3418_v24 = vmul.f32 0.7978846, %v3318_v8  ;;  %v3119_v34 = vmul.f32 %v3019_v0, %v8622_v13  ;;  %v9619_v11 = vld [vmem:[#allocation34_spill] sm:$0xff] }
 0x60f   : > { %4260 = vmatmul.mubr.bf16.gmra.mxu0 %v9606_v18  ;;  %v3224_v54 = vmul.f32 %v3124_v44, %v8614_v49  ;;  %v3026_v9 = vmul.f32 0.044715, %v8663_v52  ;;  %v3028_v36 = vmul.f32 0.044715, %v8667_v63  ;;  %v8693_v3 = vmul.f32 %v3588_v42, %v2888_v39 }
 0x610   : > { %v8695_v55 = vmul.f32 %v3592_v38, %v2892_v25  ;;  %v8699_v35 = vmul.f32 %v8607_v27, %v8535_v29  ;;  %v3420_v8 = vmul.f32 0.7978846, %v3320_v62  ;;  %v3121_v0 = vmul.f32 %v3021_v47, %v8631_v12  ;;  %v9609_v47 = vld [vmem:[#allocation15_spill] sm:$0xff] }
 0x611   : > { %v3322_v44 = vadd.f32 %v3222_v48, %v8604_v58  ;;  %5431 = vtanh.f32 %v8616_v17  ;;  %v3123_v28 = vmul.f32 %v3023_v2, %v8636_v15  ;;  %v3025_v37 = vmul.f32 0.044715, %v8657_v57 }
 0x612   : > { %5433 = vtanh.f32 %v8627_v32  ;;  %v8711_v27 = vmul.f32 %v8610_v5, %v8559_v30  ;;  %v3324_v62 = vadd.f32 %v3224_v54, %v8614_v49  ;;  %v8716_v38 = vadd.f32 %v9609_v47, %v7564_v4 }
 0x613   : > { %5435 = vtanh.f32 %v3418_v24  ;;  %v8719_v2 = vmul.f32 %v3119_v34, %v8622_v13  ;;  %v3126_v48 = vmul.f32 %v3026_v9, %v8663_v52  ;;  %v3128_v39 = vmul.f32 %v3028_v36, %v8667_v63 }
 0x614   : > { %9610 = vst [vmem:[#allocation63_spill] sm:$0xff] %v8716_v38  ;;  %v5424_v17 = vpop.eup %5423  ;;  %5437 = vtanh.f32 %v3420_v8  ;;  %v8724_v32 = vmul.f32 %v3121_v0, %v8631_v12  ;;  %v3422_v5 = vmul.f32 0.7978846, %v3322_v44  ;;  %v2887_v25 = vmul.f32 0.5, %v8034_v21 }
 0x615   : > { %9611 = vst [vmem:[#allocation65_spill] sm:$0xff] %v8719_v2  ;;  %v8728_v18 = vmul.f32 %v3123_v28, %v8636_v15  ;;  %v8731_v50 = vmul.f32 %v3025_v37, %v8657_v57  ;;  %v2891_v42 = vmul.f32 0.5, %v8111_v45  ;;  %v3587_v24 = vadd.f32 1.0, %v5424_v17  ;;  %v9614_v28 = vld [vmem:[#allocation80_spill] sm:$0xff]  ;;  %v9618_v17 = vld [vmem:[#allocation83_spill] sm:$0xff] }
 0x616   : > { %9612 = vst [vmem:[#allocation48_spill] sm:$0xff] %v8724_v32  ;;  %v5426_v34 = vpop.eup %5425  ;;  %v8734_v54 = vmul.f32 0.7978846, %v3324_v62  ;;  %v2889_v9 = vmul.f32 0.5, %v8058_v6  ;;  %v2893_v36 = vmul.f32 0.5, %v8136_v19  ;;  %v3226_v21 = vmul.f32 %v3126_v48, %v8663_v52  ;;  %v9616_v62 = vld [vmem:[#allocation24_spill] sm:$0xff] }
 0x617   : > { %9613 = vst [vmem:[#allocation72_spill] sm:$0xff] %v8728_v18  ;;  %v3030_v8 = vmul.f32 0.044715, %v8716_v38  ;;  %v3591_v0 = vadd.f32 1.0, %v5426_v34  ;;  %v3228_v44 = vmul.f32 %v3128_v39, %v8667_v63  ;;  %v8743_v37 = vadd.f32 %v9614_v28, %v7566_v1  ;;  %v9617_v6 = vld [vmem:[#allocation39_spill] sm:$0xff] }
 0x618   : > { %v5428_v45 = vpop.eup %5427  ;;  %5439 = vtanh.f32 %v3422_v5  ;;  %v8747_v47 = vadd.f32 %v9616_v62, %v7579_v60  ;;  %v3295_v19 = vadd.f32 %v9618_v17, %v9617_v6  ;;  %v3299_v34 = vadd.f32 %v9620_v61, %v9619_v11  ;;  %v9621_v32 = vld [vmem:[#allocation79_spill] sm:$0xff] }
 0x619   : > { %9615 = vst [vmem:[#allocation64_spill] sm:$0xff] %v8743_v37  ;;  %v5430_v49 = vpop.eup %5429  ;;  %v3687_v48 = vmul.f32 %v3587_v24, %v2887_v25  ;;  %v3691_v58 = vmul.f32 %v3591_v0, %v2891_v42  ;;  %v3589_v39 = vadd.f32 1.0, %v5428_v45  ;;  %v8755_v28 = vadd.f32 %v9621_v32, %v7582_v14  ;;  %v9623_v42 = vld [vmem:[#allocation23_spill] sm:$0xff]  ;;  %v9624_v24 = vld [vmem:[#allocation84_spill] sm:$0xff] }
 0x61a   : > { %v3593_v12 = vadd.f32 1.0, %v5430_v49  ;;  %v3130_v5 = vmul.f32 %v3030_v8, %v8716_v38  ;;  %v3395_v18 = vmul.f32 0.7978846, %v3295_v19  ;;  %v3399_v62 = vmul.f32 0.7978846, %v3299_v34  ;;  %v9625_v8 = vld [vmem:[#allocation81_spill] sm:$0xff] }
 0x61b   : > { %9622 = vst [vmem:[#allocation66_spill] sm:$0xff] %v8755_v28  ;;  %v3767_v15 = vpack.c.bf16 %v3691_v58, %v3687_v48  ;;  %v3326_v2 = vadd.f32 %v3226_v21, %v8663_v52  ;;  %v3328_v17 = vadd.f32 %v3228_v44, %v8667_v63  ;;  %v3032_v61 = vmul.f32 0.044715, %v8743_v37  ;;  %v9628_v34 = vld [vmem:[#allocation21_spill] sm:$0xff] }
 0x61c   : > { %v3689_v13 = vmul.f32 %v3589_v39, %v2889_v9  ;;  %v3693_v25 = vmul.f32 %v3593_v12, %v2893_v36  ;;  %5441 = vtanh.f32 %v3395_v18  ;;  %v3297_v0 = vadd.f32 %v9624_v24, %v9623_v42  ;;  %v9647_v52 = vld [vmem:[#allocation17_spill] sm:$0xff] }
 0x61d   : > { %4131 = vmatprep.mubr.bf16.mxu1 %v3767_v15  ;;  %v3027_v49 = vmul.f32 0.044715, %v8747_v47  ;;  %v3029_v32 = vmul.f32 0.044715, %v8755_v28  ;;  %v8767_v58 = vadd.f32 %v9625_v8, %v7579_v60  ;;  %v3301_v21 = vadd.f32 %v8469_v51, %v8299_v46  ;;  %v9629_v51 = vld [vmem:[#allocation16_spill] sm:$0xff]  ;;  %v9635_v8 = vld [vmem:[#allocation82_spill] sm:$0xff] }
 0x61e   : > { %v8771_v44 = vpop.eup %5431  ;;  %v3769_v9 = vpack.c.bf16 %v3693_v25, %v3689_v13  ;;  %v9627_v12 = vpack.c.bf16 %v8683_v41, %v8681_v16  ;;  %v3230_v15 = vmul.f32 %v3130_v5, %v8716_v38  ;;  %5443 = vtanh.f32 %v3399_v62  ;;  %v9631_v16 = vld [vmem:[#allocation20_spill] sm:$0xff] }
 0x61f   : > { %9626 = vst [vmem:[#allocation51_spill] sm:$0xff] %v8767_v58  ;;  %v3397_v18 = vmul.f32 0.7978846, %v3297_v0  ;;  %v8777_v36 = vpop.eup %5433  ;;  %v3132_v45 = vmul.f32 %v3032_v61, %v8743_v37  ;;  %v3401_v19 = vmul.f32 0.7978846, %v3301_v21  ;;  %v8782_v48 = vadd.f32 %v9628_v34, %v7564_v4  ;;  %v9632_v5 = vld [vmem:[#allocation52_spill] sm:$0xff] }
 0x620   : > { %4132 = vmatmul.mubr.bf16.gmra.mxu1 %v9627_v12  ;;  %v2894_v39 = vmul.f32 0.5, %v9629_v51  ;;  %v8785_v13 = vpop.eup %5435  ;;  %4267 = vmatprep.mubr.bf16.mxu0 %v3769_v9  ;;  %v2898_v41 = vmul.f32 0.5, %v9631_v16  ;;  %v3594_v62 = vadd.f32 1.0, %v9632_v5  ;;  %v3598_v25 = vadd.f32 1.0, %v8519_v20  ;;  %v9637_v9 = vld [vmem:[#allocation30_spill] sm:$0xff] }
 0x621   : > { %9630 = vst [vmem:[#allocation73_spill] sm:$0xff] %v8785_v13  ;;  %5445 = vtanh.f32 %v3397_v18  ;;  %v8790_v24 = vpop.eup %5437  ;;  %v3426_v61 = vmul.f32 0.7978846, %v3326_v2  ;;  %v9634_v0 = vpack.c.bf16 %v8695_v55, %v8693_v3  ;;  %v8797_v21 = vadd.f32 %v9635_v8, %v7582_v14  ;;  %v9638_v2 = vld [vmem:[#allocation44_spill] sm:$0xff]  ;;  %v9639_v55 = vld [vmem:[#allocation13_spill] sm:$0xff]  ;;  %v9640_v5 = vld [vmem:[#allocation22_spill] sm:$0xff] }
 0x622   : > { %9633 = vst [vmem:[#allocation69_spill] sm:$0xff] %v8790_v24  ;;  %5447 = vtanh.f32 %v3401_v19  ;;  %v8801_v12 = vadd.f32 %v9637_v9, %v7566_v1  ;;  %v3330_v18 = vadd.f32 %v3230_v15, %v8716_v38  ;;  %v8804_v34 = vmul.f32 %v3594_v62, %v2894_v39  ;;  %v9641_v39 = vld [vmem:[#allocation19_spill] sm:$0xff]  ;;  %v9650_v13 = vld [vmem:[#allocation54_spill] sm:$0xff] }
 0x623   : > { %4268 = vmatmul.mubr.bf16.gmra.mxu0 %v9634_v0  ;;  %9636 = vst [vmem:[#allocation74_spill] sm:$0xff] %v8797_v21  ;;  %v8806_v20 = vmul.f32 %v3598_v25, %v2898_v41  ;;  %v3596_v51 = vadd.f32 1.0, %v9638_v2  ;;  %v3232_v3 = vmul.f32 %v3132_v45, %v8743_v37  ;;  %v2896_v16 = vmul.f32 0.5, %v9639_v55 }
 0x624   : > { %v2900_v0 = vmul.f32 0.5, %v9640_v5  ;;  %v3600_v19 = vadd.f32 1.0, %v8527_v26  ;;  %v3428_v8 = vmul.f32 0.7978846, %v3328_v17  ;;  %v3034_v9 = vmul.f32 0.044715, %v8782_v48 }
 0x625   : > { %v8818_v41 = vadd.f32 %v9641_v39, %v7564_v4  ;;  %v8820_v62 = vpop.eup %5439  ;;  %v3031_v45 = vmul.f32 0.044715, %v8767_v58  ;;  %v3036_v25 = vmul.f32 0.044715, %v8801_v12  ;;  %v8824_v2 = vmul.f32 %v3596_v51, %v2896_v16 }
 0x626   : > { %9642 = vst [vmem:[#allocation75_spill] sm:$0xff] %v8820_v62  ;;  %v8826_v55 = vmul.f32 %v3600_v19, %v2900_v0  ;;  %5449 = vtanh.f32 %v8734_v54  ;;  %v8831_v26 = vmul.f32 %v8731_v50, %v8657_v57  ;;  %v8834_v17 = vmul.f32 %v3027_v49, %v8747_v47  ;;  %v9644_v0 = vld [vmem:[#allocation36_spill] sm:$0xff] }
 0x627   : > { %v3033_v5 = vmul.f32 0.044715, %v8797_v21  ;;  %v3430_v39 = vmul.f32 0.7978846, %v3330_v18  ;;  %v3332_v15 = vadd.f32 %v3232_v3, %v8743_v37  ;;  %v3038_v16 = vmul.f32 0.044715, %v8818_v41 }
 0x628   : > { %5451 = vtanh.f32 %v3426_v61  ;;  %v8842_v54 = vmul.f32 %v3029_v32, %v8755_v28  ;;  %v3134_v50 = vmul.f32 %v3034_v9, %v8782_v48  ;;  %v8847_v49 = vadd.f32 %v9644_v0, %v7566_v1 }
 0x629   : > { %v5442_v19 = vpop.eup %5441  ;;  %5453 = vtanh.f32 %v3428_v8  ;;  %v8850_v18 = vmul.f32 %v3031_v45, %v8767_v58  ;;  %v2895_v3 = vmul.f32 0.5, %v9617_v6  ;;  %v3136_v51 = vmul.f32 %v3036_v25, %v8801_v12  ;;  %v9648_v45 = vld [vmem:[#allocation59_spill] sm:$0xff]  ;;  %v9652_v58 = vld [vmem:[#allocation38_spill] sm:$0xff] }
 0x62a   : > { %9643 = vst [vmem:[#allocation32_spill] sm:$0xff] %v8842_v54  ;;  %v8855_v61 = vmul.f32 %v3033_v5, %v8797_v21  ;;  %v2899_v32 = vmul.f32 0.5, %v9619_v11  ;;  %v3595_v63 = vadd.f32 1.0, %v5442_v19  ;;  %v2897_v9 = vmul.f32 0.5, %v9623_v42  ;;  %v9649_v5 = vld [vmem:[#allocation26_spill] sm:$0xff] }
 0x62b   : > { %9645 = vst [vmem:[#allocation43_spill] sm:$0xff] %v8850_v18  ;;  %v5444_v37 = vpop.eup %5443  ;;  %5455 = vtanh.f32 %v3430_v39  ;;  %v3432_v0 = vmul.f32 0.7978846, %v3332_v15  ;;  %v3138_v8 = vmul.f32 %v3038_v16, %v8818_v41  ;;  %v3303_v38 = vadd.f32 %v9648_v45, %v9647_v52  ;;  %v9651_v15 = vld [vmem:[#allocation10_spill] sm:$0xff] }
 0x62c   : > { %9646 = vst [vmem:[#allocation70_spill] sm:$0xff] %v8855_v61  ;;  %v3599_v24 = vadd.f32 1.0, %v5444_v37  ;;  %v3234_v6 = vmul.f32 %v3134_v50, %v8782_v48  ;;  %v3040_v25 = vmul.f32 0.044715, %v8847_v49  ;;  %v3307_v62 = vadd.f32 %v9650_v13, %v9649_v5 }
 0x62d   : > { %v2901_v19 = vmul.f32 0.5, %v8299_v46  ;;  %v3236_v42 = vmul.f32 %v3136_v51, %v8801_v12  ;;  %v8870_v39 = vadd.f32 %v9651_v15, %v7579_v60  ;;  %v3403_v16 = vmul.f32 0.7978846, %v3303_v38 }
 0x62e   : > { %v5446_v11 = vpop.eup %5445  ;;  %v3695_v45 = vmul.f32 %v3595_v63, %v2895_v3  ;;  %v3699_v37 = vmul.f32 %v3599_v24, %v2899_v32  ;;  %v3407_v50 = vmul.f32 0.7978846, %v3307_v62  ;;  %v8874_v54 = vadd.f32 %v9652_v58, %v7582_v14  ;;  %v9653_v24 = vld [vmem:[#allocation2_spill] sm:$0xff]  ;;  %v9654_v58 = vld [vmem:[#allocation25_spill] sm:$0xff] }
 0x62f   : > { %v5448_v61 = vpop.eup %5447  ;;  %v3597_v21 = vadd.f32 1.0, %v5446_v11  ;;  %v3238_v13 = vmul.f32 %v3138_v8, %v8818_v41  ;;  %5457 = vtanh.f32 %v3403_v16  ;;  %v3334_v51 = vadd.f32 %v3234_v6, %v8782_v48  ;;  %v9656_v32 = vld [vmem:[#allocation53_spill] sm:$0xff] }
 0x630   : > { %v3601_v18 = vadd.f32 1.0, %v5448_v61  ;;  %5459 = vtanh.f32 %v3432_v0  ;;  %v3771_v46 = vpack.c.bf16 %v3699_v37, %v3695_v45  ;;  %v3140_v15 = vmul.f32 %v3040_v25, %v8847_v49  ;;  %v9655_v61 = vld [vmem:[#allocation49_spill] sm:$0xff] }
 0x631   : > { %v3697_v38 = vmul.f32 %v3597_v21, %v2897_v9  ;;  %v3336_v63 = vadd.f32 %v3236_v42, %v8801_v12  ;;  %5461 = vtanh.f32 %v3407_v50  ;;  %v8882_v62 = vadd.f32 %v9653_v24, %v7579_v60  ;;  %v9659_v50 = vld [vmem:[#allocation50_spill] sm:$0xff] }
 0x632   : > { %v3701_v28 = vmul.f32 %v3601_v18, %v2901_v19  ;;  %4139 = vmatprep.mubr.bf16.mxu1 %v3771_v46  ;;  %v8886_v3 = vadd.f32 %v9654_v58, %v7582_v14  ;;  %v3305_v0 = vadd.f32 %v9656_v32, %v9655_v61  ;;  %v3309_v8 = vadd.f32 %v8573_v23, %v8441_v7  ;;  %v9658_v23 = vld [vmem:[#allocation35_spill] sm:$0xff] }
 0x633   : > { %v8892_v21 = vpop.eup %5449  ;;  %v9657_v9 = vpack.c.bf16 %v8806_v20, %v8804_v34  ;;  %v3035_v6 = vmul.f32 0.044715, %v8870_v39  ;;  %v3037_v25 = vmul.f32 0.044715, %v8874_v54  ;;  %v3338_v11 = vadd.f32 %v3238_v13, %v8818_v41 }
 0x634   : > { %v3773_v18 = vpack.c.bf16 %v3701_v28, %v3697_v38  ;;  %v3434_v19 = vmul.f32 0.7978846, %v3334_v51  ;;  %v3240_v42 = vmul.f32 %v3140_v15, %v8847_v49  ;;  %v3405_v16 = vmul.f32 0.7978846, %v3305_v0 }
 0x635   : > { %4140 = vmatmul.mubr.bf16.gmra.mxu1 %v9657_v9  ;;  %v3409_v45 = vmul.f32 0.7978846, %v3309_v8  ;;  %v8901_v37 = vpop.eup %5451  ;;  %v2902_v28 = vmul.f32 0.5, %v9658_v23  ;;  %v2906_v46 = vmul.f32 0.5, %v9659_v50  ;;  %v3602_v34 = vadd.f32 1.0, %v8537_v43 }
 0x636   : > { %4275 = vmatprep.mubr.bf16.mxu0 %v3773_v18  ;;  %v3606_v20 = vadd.f32 1.0, %v8593_v31  ;;  %v8907_v38 = vpop.eup %5453  ;;  %v3436_v24 = vmul.f32 0.7978846, %v3336_v63  ;;  %v9660_v13 = vpack.c.bf16 %v8826_v55, %v8824_v2  ;;  %v3039_v51 = vmul.f32 0.044715, %v8882_v62  ;;  %v9661_v31 = vld [vmem:[#allocation31_spill] sm:$0xff] }
 0x637   : > { %v3041_v15 = vmul.f32 0.044715, %v8886_v3  ;;  %5463 = vtanh.f32 %v3405_v16  ;;  %v3438_v58 = vmul.f32 0.7978846, %v3338_v11  ;;  %v8914_v32 = vmul.f32 %v3602_v34, %v2902_v28  ;;  %v9662_v63 = vld [vmem:[#allocation3_spill] sm:$0xff] }
 0x638   : > { %4276 = vmatmul.mubr.bf16.gmra.mxu0 %v9660_v13  ;;  %5465 = vtanh.f32 %v3409_v45  ;;  %v8916_v0 = vmul.f32 %v3606_v20, %v2906_v46  ;;  %v8918_v43 = vpop.eup %5455  ;;  %v2904_v8 = vmul.f32 0.5, %v9661_v31  ;;  %v2908_v18 = vmul.f32 0.5, %v9662_v63  ;;  %v9663_v13 = vld [vmem:[#allocation42_spill] sm:$0xff]  ;;  %v9664_v31 = vld [vmem:[#allocation41_spill] sm:$0xff] }
 0x639   : > { %v3604_v2 = vadd.f32 1.0, %v8547_v22  ;;  %v3608_v55 = vadd.f32 1.0, %v8653_v53  ;;  %v8925_v9 = vmul.f32 %v3035_v6, %v8870_v39  ;;  %v8928_v11 = vmul.f32 %v3037_v25, %v8874_v54 }
 0x63a   : > { %v3340_v16 = vadd.f32 %v3240_v42, %v8847_v49  ;;  %v3774_v45 = vpack.c.bf16 %v8916_v0, %v8914_v32  ;;  %5467 = vtanh.f32 %v3434_v19  ;;  %v2903_v23 = vmul.f32 0.5, %v9647_v52 }
 0x63b   : > { %v8934_v28 = vmul.f32 %v3604_v2, %v2904_v8  ;;  %v8936_v50 = vmul.f32 %v3608_v55, %v2908_v18  ;;  %5469 = vtanh.f32 %v3436_v24  ;;  %v8939_v22 = vmul.f32 %v3039_v51, %v8882_v62 }
 0x63c   : > { %v2907_v53 = vmul.f32 0.5, %v9649_v5  ;;  %v3311_v6 = vadd.f32 %v8585_v10, %v8488_v56  ;;  %v5458_v25 = vpop.eup %5457  ;;  %5471 = vtanh.f32 %v3438_v58  ;;  %v8945_v42 = vmul.f32 %v3041_v15, %v8886_v3 }
 0x63d   : > { %v3776_v52 = vpack.c.bf16 %v8936_v50, %v8934_v28  ;;  %v3315_v19 = vadd.f32 %v8699_v35, %v8535_v29  ;;  %v8951_v46 = vpop.eup %5459  ;;  %v8953_v34 = vmul.f32 0.7978846, %v3340_v16  ;;  %v3603_v20 = vadd.f32 1.0, %v5458_v25  ;;  %v9666_v16 = vld [vmem:[#allocation55_spill] sm:$0xff] }
 0x63e   : > { %v2905_v5 = vmul.f32 0.5, %v9655_v61  ;;  %v3411_v24 = vmul.f32 0.7978846, %v3311_v6  ;;  %v5462_v10 = vpop.eup %5461  ;;  %v8958_v51 = vadd.f32 %v9663_v13, %v7564_v4  ;;  %v3313_v58 = vadd.f32 %v8599_v59, %v8509_v33  ;;  %v9665_v4 = vld [vmem:[#allocation28_spill] sm:$0xff]  ;;  %v9668_v13 = vld [vmem:[#allocation37_spill] sm:$0xff] }
 0x63f   : > { %v3415_v15 = vmul.f32 0.7978846, %v3315_v19  ;;  %v3317_v35 = vadd.f32 %v8711_v27, %v8559_v30  ;;  %v3607_v32 = vadd.f32 1.0, %v5462_v10  ;;  %v3703_v0 = vmul.f32 %v3603_v20, %v2903_v23 }
 0x640   : > { %v8966_v8 = vadd.f32 %v9664_v31, %v7566_v1  ;;  %v2910_v61 = vmul.f32 0.5, %v8427_v40  ;;  %5473 = vtanh.f32 %v3411_v24  ;;  %v3413_v63 = vmul.f32 0.7978846, %v3313_v58  ;;  %v9667_v1 = vld [vmem:[#allocation29_spill] sm:$0xff]  ;;  %v9669_v58 = vld [vmem:[#allocation46_spill] sm:$0xff]  ;;  %v9670_v31 = vld [vmem:[#allocation7_spill] sm:$0xff] }
 0x641   : > { %v3417_v18 = vmul.f32 0.7978846, %v3317_v35  ;;  %v2914_v2 = vmul.f32 0.5, %v9665_v4  ;;  %v3707_v55 = vmul.f32 %v3607_v32, %v2907_v53  ;;  %5475 = vtanh.f32 %v3415_v15 }
 0x642   : > { %v3610_v59 = vadd.f32 1.0, %v9666_v16  ;;  %v3614_v6 = vadd.f32 1.0, %v8771_v44  ;;  %v2909_v27 = vmul.f32 0.5, %v8441_v7  ;;  %v3042_v23 = vmul.f32 0.044715, %v8958_v51  ;;  %v9673_v16 = vld [vmem:[#allocation72_spill] sm:$0xff] }
 0x643   : > { %5477 = vtanh.f32 %v3413_v63  ;;  %v3612_v25 = vadd.f32 1.0, %v9667_v1  ;;  %v3775_v40 = vpack.c.bf16 %v3707_v55, %v3703_v0  ;;  %v2912_v15 = vmul.f32 0.5, %v9668_v13  ;;  %v9672_v55 = vld [vmem:[#allocation67_spill] sm:$0xff] }
 0x644   : > { %v5464_v19 = vpop.eup %5463  ;;  %5479 = vtanh.f32 %v3417_v18  ;;  %v8975_v20 = vmul.f32 %v3610_v59, %v2910_v61  ;;  %v8977_v24 = vmul.f32 %v3614_v6, %v2914_v2  ;;  %v2916_v44 = vmul.f32 0.5, %v9669_v58  ;;  %v9671_v61 = vld [vmem:[#allocation65_spill] sm:$0xff] }
 0x645   : > { %v5466_v53 = vpop.eup %5465  ;;  %v3605_v10 = vadd.f32 1.0, %v5464_v19  ;;  %v3616_v7 = vadd.f32 1.0, %v8777_v36  ;;  %4147 = vmatprep.mubr.bf16.mxu1 %v3775_v40  ;;  %v3044_v32 = vmul.f32 0.044715, %v8966_v8  ;;  %v3319_v63 = vadd.f32 %v9671_v61, %v9670_v31  ;;  %v9674_v40 = vld [vmem:[#allocation27_spill] sm:$0xff]  ;;  %v9677_v61 = vld [vmem:[#allocation66_spill] sm:$0xff] }
 0x646   : > { %v3609_v35 = vadd.f32 1.0, %v5466_v53  ;;  %v3142_v18 = vmul.f32 %v3042_v23, %v8958_v51  ;;  %4148 = vmatmul.mubr.bf16.gmra.mxu1 %v3774_v45  ;;  %v8988_v4 = vmul.f32 %v3612_v25, %v2912_v15  ;;  %v3323_v36 = vadd.f32 %v9673_v16, %v9672_v55  ;;  %v9675_v53 = vld [vmem:[#allocation48_spill] sm:$0xff]  ;;  %v9676_v23 = vld [vmem:[#allocation11_spill] sm:$0xff]  ;;  %v9681_v25 = vld [vmem:[#allocation74_spill] sm:$0xff] }
 0x647   : > { %v8990_v2 = vmul.f32 %v3616_v7, %v2916_v44  ;;  %v8994_v59 = vpop.eup %5467  ;;  %v3705_v6 = vmul.f32 %v3605_v10, %v2905_v5  ;;  %v3419_v19 = vmul.f32 0.7978846, %v3319_v63  ;;  %v3321_v13 = vadd.f32 %v9675_v53, %v9674_v40  ;;  %v9679_v53 = vld [vmem:[#allocation51_spill] sm:$0xff] }
 0x648   : > { %v3709_v1 = vmul.f32 %v3609_v35, %v2909_v27  ;;  %v8998_v58 = vpop.eup %5469  ;;  %v9002_v45 = vadd.f32 %v9676_v23, %v7579_v60  ;;  %v3423_v15 = vmul.f32 0.7978846, %v3323_v36  ;;  %v3325_v44 = vadd.f32 %v8831_v26, %v8657_v57  ;;  %v9678_v60 = vld [vmem:[#allocation32_spill] sm:$0xff]  ;;  %v9680_v36 = vld [vmem:[#allocation43_spill] sm:$0xff]  ;;  %v9682_v26 = vld [vmem:[#allocation70_spill] sm:$0xff] }
 0x649   : > { %v9008_v7 = vpop.eup %5471  ;;  %v3144_v27 = vmul.f32 %v3044_v32, %v8966_v8  ;;  %5481 = vtanh.f32 %v3419_v19  ;;  %v3421_v10 = vmul.f32 0.7978846, %v3321_v13  ;;  %v3227_v35 = vmul.f32 %v8834_v17, %v8747_v47 }
 0x64a   : > { %v3777_v5 = vpack.c.bf16 %v3709_v1, %v3705_v6  ;;  %v3229_v63 = vmul.f32 %v9678_v60, %v9677_v61  ;;  %5483 = vtanh.f32 %v3423_v15  ;;  %v3425_v16 = vmul.f32 0.7978846, %v3325_v44 }
 0x64b   : > { %v3231_v23 = vmul.f32 %v9680_v36, %v9679_v53  ;;  %v3233_v0 = vmul.f32 %v9682_v26, %v9681_v25  ;;  %v3242_v6 = vmul.f32 %v3142_v18, %v8958_v51  ;;  %5485 = vtanh.f32 %v3421_v10 }
 0x64c   : > { %4283 = vmatprep.mubr.bf16.mxu0 %v3777_v5  ;;  %v9022_v32 = vmul.f32 %v8925_v9, %v8870_v39  ;;  %v9026_v17 = vmul.f32 %v8928_v11, %v8874_v54  ;;  %v9030_v1 = vmul.f32 %v8939_v22, %v8882_v62  ;;  %5487 = vtanh.f32 %v3425_v16  ;;  %v9683_v22 = vld [vmem:[#allocation47_spill] sm:$0xff] }
 0x64d   : > { %4284 = vmatmul.mubr.bf16.gmra.mxu0 %v3776_v52  ;;  %v5474_v19 = vpop.eup %5473  ;;  %5489 = vtanh.f32 %v8953_v34  ;;  %v9038_v9 = vmul.f32 %v8945_v42, %v8886_v3  ;;  %v3244_v18 = vmul.f32 %v3144_v27, %v8966_v8  ;;  %v3043_v11 = vmul.f32 0.044715, %v9002_v45 }
 0x64e   : > { %v5476_v13 = vpop.eup %5475  ;;  %v9044_v15 = vadd.f32 %v9683_v22, %v7582_v14  ;;  %v2911_v28 = vmul.f32 0.5, %v8488_v56  ;;  %v3611_v50 = vadd.f32 1.0, %v5474_v19  ;;  %v3327_v52 = vadd.f32 %v3227_v35, %v8747_v47 }
 0x64f   : > { %v9049_v34 = vadd.f32 %v3242_v6, %v8958_v51  ;;  %v2915_v42 = vmul.f32 0.5, %v8535_v29  ;;  %v3615_v5 = vadd.f32 1.0, %v5476_v13  ;;  %v3331_v27 = vadd.f32 %v3231_v23, %v9679_v53 }
 0x650   : > { %v5478_v44 = vpop.eup %5477  ;;  %v2913_v60 = vmul.f32 0.5, %v8509_v33  ;;  %v2917_v14 = vmul.f32 0.5, %v8559_v30  ;;  %v3427_v36 = vmul.f32 0.7978846, %v3327_v52  ;;  %v3711_v56 = vmul.f32 %v3611_v50, %v2911_v28 }
 0x651   : > { %v5480_v10 = vpop.eup %5479  ;;  %v3613_v16 = vadd.f32 1.0, %v5478_v44  ;;  %v3715_v26 = vmul.f32 %v3615_v5, %v2915_v42  ;;  %v3431_v35 = vmul.f32 0.7978846, %v3331_v27  ;;  %v9056_v22 = vmul.f32 %v3043_v11, %v9002_v45  ;;  %v9684_v44 = vld [vmem:[#allocation75_spill] sm:$0xff] }
 0x652   : > { %v3617_v19 = vadd.f32 1.0, %v5480_v10  ;;  %5491 = vtanh.f32 %v3427_v36  ;;  %v3329_v29 = vadd.f32 %v3229_v63, %v9677_v61  ;;  %v3333_v33 = vadd.f32 %v3233_v0, %v9681_v25  ;;  %v9688_v36 = vld [vmem:[#allocation58_spill] sm:$0xff] }
 0x653   : > { %v3713_v6 = vmul.f32 %v3613_v16, %v2913_v60  ;;  %v3779_v13 = vpack.c.bf16 %v3715_v26, %v3711_v56  ;;  %5493 = vtanh.f32 %v3431_v35  ;;  %v9061_v30 = vadd.f32 %v3244_v18, %v8966_v8  ;;  %v9686_v18 = vld [vmem:[#allocation57_spill] sm:$0xff]  ;;  %v9691_v35 = vld [vmem:[#allocation40_spill] sm:$0xff] }
 0x654   : > { %v3717_v23 = vmul.f32 %v3617_v19, %v2917_v14  ;;  %v2919_v28 = vmul.f32 0.5, %v9670_v31  ;;  %v2923_v50 = vmul.f32 0.5, %v9672_v55  ;;  %v3429_v52 = vmul.f32 0.7978846, %v3329_v29  ;;  %v9687_v31 = vld [vmem:[#allocation73_spill] sm:$0xff]  ;;  %v9692_v29 = vld [vmem:[#allocation60_spill] sm:$0xff] }
 0x655   : > { %4155 = vmatprep.mubr.bf16.mxu1 %v3779_v13  ;;  %v3622_v42 = vadd.f32 1.0, %v9684_v44  ;;  %v3624_v5 = vadd.f32 1.0, %v8892_v21  ;;  %v3433_v63 = vmul.f32 0.7978846, %v3333_v33  ;;  %v9685_v10 = vpack.c.bf16 %v8977_v24, %v8975_v20  ;;  %v9689_v26 = vld [vmem:[#allocation69_spill] sm:$0xff] }
 0x656   : > { %v3781_v11 = vpack.c.bf16 %v3717_v23, %v3713_v6  ;;  %v5482_v27 = vpop.eup %5481  ;;  %v2921_v0 = vmul.f32 0.5, %v9674_v40  ;;  %v2922_v60 = vmul.f32 0.5, %v9686_v18  ;;  %v3618_v14 = vadd.f32 1.0, %v9687_v31 }
 0x657   : > { %4156 = vmatmul.mubr.bf16.gmra.mxu1 %v9685_v10  ;;  %5495 = vtanh.f32 %v3429_v52  ;;  %v5484_v55 = vpop.eup %5483  ;;  %v3619_v16 = vadd.f32 1.0, %v5482_v27  ;;  %v2924_v56 = vmul.f32 0.5, %v9688_v36  ;;  %v3620_v21 = vadd.f32 1.0, %v9689_v26 }
 0x658   : > { %4291 = vmatprep.mubr.bf16.mxu0 %v3781_v11  ;;  %5497 = vtanh.f32 %v3433_v63  ;;  %v5486_v19 = vpop.eup %5485  ;;  %v9690_v20 = vpack.c.bf16 %v8990_v2, %v8988_v4  ;;  %v3623_v24 = vadd.f32 1.0, %v5484_v55  ;;  %v2925_v40 = vmul.f32 0.5, %v8657_v57 }
 0x659   : > { %v2918_v6 = vmul.f32 0.5, %v9691_v35  ;;  %v2920_v13 = vmul.f32 0.5, %v9692_v29  ;;  %v5488_v23 = vpop.eup %5487  ;;  %v3719_v33 = vmul.f32 %v3619_v16, %v2919_v28  ;;  %v3621_v52 = vadd.f32 1.0, %v5486_v19 }
 0x65a   : > { %4292 = vmatmul.mubr.bf16.gmra.mxu0 %v9690_v20  ;;  %v3722_v11 = vmul.f32 %v3622_v42, %v2922_v60  ;;  %v3724_v44 = vmul.f32 %v3624_v5, %v2924_v56  ;;  %v9081_v27 = vpop.eup %5489  ;;  %v3723_v63 = vmul.f32 %v3623_v24, %v2923_v50  ;;  %v3625_v10 = vadd.f32 1.0, %v5488_v23  ;;  %v9693_v24 = vld [vmem:[#allocation63_spill] sm:$0xff] }
 0x65b   : > { %v3335_v4 = vadd.f32 %v9022_v32, %v8870_v39  ;;  %v3339_v2 = vadd.f32 %v9030_v1, %v8882_v62  ;;  %v3045_v57 = vmul.f32 0.044715, %v9044_v15  ;;  %v3721_v18 = vmul.f32 %v3621_v52, %v2921_v0 }
 0x65c   : > { %v3718_v31 = vmul.f32 %v3618_v14, %v2918_v6  ;;  %v3720_v55 = vmul.f32 %v3620_v21, %v2920_v13  ;;  %v3783_v36 = vpack.c.bf16 %v3723_v63, %v3719_v33  ;;  %v3725_v28 = vmul.f32 %v3625_v10, %v2925_v40  ;;  %v9694_v6 = vld [vmem:[#allocation71_spill] sm:$0xff] }
 0x65d   : > { %v3435_v16 = vmul.f32 0.7978846, %v3335_v4  ;;  %v3439_v42 = vmul.f32 0.7978846, %v3339_v2  ;;  %v3442_v5 = vmul.f32 0.7978846, %v9049_v34  ;;  %v3337_v50 = vadd.f32 %v9026_v17, %v8874_v54 }
 0x65e   : > { %v3782_v60 = vpack.c.bf16 %v3722_v11, %v3718_v31  ;;  %v3341_v32 = vadd.f32 %v9038_v9, %v8886_v3  ;;  %4163 = vmatprep.mubr.bf16.mxu1 %v3783_v36  ;;  %v3785_v1 = vpack.c.bf16 %v3725_v28, %v3721_v18  ;;  %v3784_v56 = vpack.c.bf16 %v3724_v44, %v3720_v55  ;;  %v9696_v55 = vld [vmem:[#allocation8_spill] sm:$0xff] }
 0x65f   : > { %v3630_v0 = vadd.f32 1.0, %v8918_v43  ;;  %5499 = vtanh.f32 %v3435_v16  ;;  %v5492_v14 = vpop.eup %5491  ;;  %v3626_v26 = vadd.f32 1.0, %v8901_v37  ;;  %v3437_v21 = vmul.f32 0.7978846, %v3337_v50 }
 0x660   : > { %4164 = vmatmul.mubr.bf16.gmra.mxu1 %v3782_v60  ;;  %5501 = vtanh.f32 %v3439_v42  ;;  %v3441_v34 = vmul.f32 0.7978846, %v3341_v32  ;;  %v5494_v19 = vpop.eup %5493  ;;  %v3145_v20 = vmul.f32 %v3045_v57, %v9044_v15  ;;  %4299 = vmatprep.mubr.bf16.mxu0 %v3785_v1  ;;  %v2927_v17 = vmul.f32 0.5, %v8747_v47 }
 0x661   : > { %v3627_v9 = vadd.f32 1.0, %v5492_v14  ;;  %v2930_v40 = vmul.f32 0.5, %v9693_v24  ;;  %v2931_v43 = vmul.f32 0.5, %v9679_v53  ;;  %v3631_v35 = vadd.f32 1.0, %v5494_v19  ;;  %v9695_v53 = vld [vmem:[#allocation64_spill] sm:$0xff] }
 0x662   : > { %4300 = vmatmul.mubr.bf16.gmra.mxu0 %v3784_v56  ;;  %v2926_v29 = vmul.f32 0.5, %v9694_v6  ;;  %5503 = vtanh.f32 %v3437_v21  ;;  %v2929_v37 = vmul.f32 0.5, %v9677_v61  ;;  %v3632_v23 = vadd.f32 1.0, %v8951_v46 }
 0x663   : > { %v3730_v13 = vmul.f32 %v3630_v0, %v2930_v40  ;;  %5505 = vtanh.f32 %v3441_v34  ;;  %v3727_v52 = vmul.f32 %v3627_v9, %v2927_v17  ;;  %v3731_v11 = vmul.f32 %v3631_v35, %v2931_v43 }
 0x664   : > { %v5496_v33 = vpop.eup %5495  ;;  %v3726_v47 = vmul.f32 %v3626_v26, %v2926_v29  ;;  %v3243_v44 = vmul.f32 %v9056_v22, %v9002_v45  ;;  %v2932_v4 = vmul.f32 0.5, %v9695_v53  ;;  %v3628_v2 = vadd.f32 1.0, %v8907_v38 }
 0x665   : > { %v5498_v63 = vpop.eup %5497  ;;  %v3629_v10 = vadd.f32 1.0, %v5496_v33  ;;  %5507 = vtanh.f32 %v3442_v5  ;;  %v3787_v57 = vpack.c.bf16 %v3731_v11, %v3727_v52  ;;  %v2933_v61 = vmul.f32 0.5, %v9681_v25 }
 0x666   : > { %v3633_v18 = vadd.f32 1.0, %v5498_v63  ;;  %v3343_v46 = vadd.f32 %v3243_v44, %v9002_v45  ;;  %v3786_v31 = vpack.c.bf16 %v3730_v13, %v3726_v47  ;;  %v2928_v36 = vmul.f32 0.5, %v9696_v55 }
 0x667   : > { %v3732_v28 = vmul.f32 %v3632_v23, %v2932_v4  ;;  %v3245_v16 = vmul.f32 %v3145_v20, %v9044_v15  ;;  %v3444_v22 = vmul.f32 0.7978846, %v9061_v30  ;;  %4171 = vmatprep.mubr.bf16.mxu1 %v3787_v57  ;;  %v3729_v42 = vmul.f32 %v3629_v10, %v2929_v37 }
 0x668   : > { %v3733_v60 = vmul.f32 %v3633_v18, %v2933_v61  ;;  %v3443_v50 = vmul.f32 0.7978846, %v3343_v46  ;;  %4172 = vmatmul.mubr.bf16.gmra.mxu1 %v3786_v31  ;;  %v3728_v38 = vmul.f32 %v3628_v2, %v2928_v36  ;;  %v3638_v1 = vadd.f32 1.0, %v9008_v7  ;;  %v9130_v31 = vld [vmem:[%s9226_s8 + $0x4] ss:$0 sm:$0xff] }
 0x669   : > { %v3345_v5 = vadd.f32 %v3245_v16, %v9044_v15  ;;  %v2938_v26 = vmul.f32 0.5, %v8818_v41  ;;  %v3634_v21 = vadd.f32 1.0, %v8994_v59  ;;  %v2935_v34 = vmul.f32 0.5, %v8870_v39 }
 0x66a   : > { %v3789_v25 = vpack.c.bf16 %v3733_v60, %v3729_v42  ;;  %5509 = vtanh.f32 %v3443_v50  ;;  %v3788_v32 = vpack.c.bf16 %v3732_v28, %v3728_v38  ;;  %v2939_v19 = vmul.f32 0.5, %v8882_v62 }
 0x66b   : > { %v3445_v56 = vmul.f32 0.7978846, %v3345_v5  ;;  %5511 = vtanh.f32 %v3444_v22  ;;  %v3640_v17 = vadd.f32 1.0, %v9081_v27  ;;  %v2934_v9 = vmul.f32 0.5, %v8782_v48 }
 0x66c   : > { %v5500_v0 = vpop.eup %5499  ;;  %4307 = vmatprep.mubr.bf16.mxu0 %v3789_v25  ;;  %v3738_v24 = vmul.f32 %v3638_v1, %v2938_v26  ;;  %v2940_v40 = vmul.f32 0.5, %v8847_v49  ;;  %v3636_v59 = vadd.f32 1.0, %v8998_v58  ;;  %v2937_v29 = vmul.f32 0.5, %v8874_v54 }
 0x66d   : > { %v5502_v14 = vpop.eup %5501  ;;  %4308 = vmatmul.mubr.bf16.gmra.mxu0 %v3788_v32  ;;  %v3635_v30 = vadd.f32 1.0, %v5500_v0  ;;  %5513 = vtanh.f32 %v3445_v56  ;;  %v2941_v39 = vmul.f32 0.5, %v8886_v3  ;;  %v3734_v37 = vmul.f32 %v3634_v21, %v2934_v9 }
 0x66e   : > { %v3639_v20 = vadd.f32 1.0, %v5502_v14  ;;  %v2936_v23 = vmul.f32 0.5, %v8801_v12  ;;  %v3740_v48 = vmul.f32 %v3640_v17, %v2940_v40  ;;  %v2942_v54 = vmul.f32 0.5, %v8958_v51  ;;  %v5536_v14 = vld [vmem:[%s5670_s26] sm:$0xff] }
 0x66f   : > { %v5504_v7 = vpop.eup %5503  ;;  %v3735_v35 = vmul.f32 %v3635_v30, %v2935_v34  ;;  %v3790_v49 = vpack.c.bf16 %v3738_v24, %v3734_v37  ;;  %v2943_v3 = vmul.f32 0.5, %v9002_v45  ;;  %v2945_v18 = vmul.f32 0.5, %v9044_v15 }
 0x670   : > { %v5506_v43 = vpop.eup %5505  ;;  %v3739_v6 = vmul.f32 %v3639_v20, %v2939_v19  ;;  %v3637_v41 = vadd.f32 1.0, %v5504_v7  ;;  %v3736_v11 = vmul.f32 %v3636_v59, %v2936_v23  ;;  %v2944_v15 = vmul.f32 0.5, %v8966_v8  ;;  %v5537_v19 = vld [vmem:[%s5670_s26 + $0x8] sm:$0xff] }
 0x671   : > { %v3641_v62 = vadd.f32 1.0, %v5506_v43 }
 0x672   : > { %v5508_v13 = vpop.eup %5507  ;;  %v3791_v27 = vpack.c.bf16 %v3739_v6, %v3735_v35  ;;  %v3737_v33 = vmul.f32 %v3637_v41, %v2937_v29  ;;  %v3792_v58 = vpack.c.bf16 %v3740_v48, %v3736_v11 }
 0x673   : > { %v3741_v52 = vmul.f32 %v3641_v62, %v2941_v39  ;;  %v3642_v44 = vadd.f32 1.0, %v5508_v13  ;;  %v5538_v13 = vld [vmem:[%s5670_s26 + $0x10] sm:$0xff] }
 0x674   : > { %4179 = vmatprep.mubr.bf16.mxu1 %v3791_v27 }
 0x675   : > { %v3793_v47 = vpack.c.bf16 %v3741_v52, %v3737_v33  ;;  %4180 = vmatmul.mubr.bf16.gmra.mxu1 %v3790_v49  ;;  %v3742_v4 = vmul.f32 %v3642_v44, %v2942_v54  ;;  %v5539_v33 = vld [vmem:[%s5670_s26 + $0x18] sm:$0xff] }
 0x677   : > { %v5510_v63 = vpop.eup %5509  ;;  %4315 = vmatprep.mubr.bf16.mxu0 %v3793_v47  ;;  %v3794_v45 = vpack.c.bf16 %v3742_v4, %v3742_v4 }
 0x678   : > { %4316 = vmatmul.mubr.bf16.gmra.mxu0 %v3792_v58  ;;  %v3643_v10 = vadd.f32 1.0, %v5510_v63  ;;  %v4655_v53 = vpop.f32.mrf.mxu1  ;;  %v5512_v12 = vpop.eup %5511 }
 0x679   : > { %v3644_v28 = vadd.f32 1.0, %v5512_v12 }
 0x67a   : > { %v5514_v2 = vpop.eup %5513  ;;  %v3743_v57 = vmul.f32 %v3643_v10, %v2943_v3  ;;  %v4656_v61 = vpop.f32.mrf.mxu1 }
 0x67b   : > { %v3645_v46 = vadd.f32 1.0, %v5514_v2  ;;  %v4657_v55 = vadd.f32 %v4656_v61, %v4655_v53  ;;  %v3744_v32 = vmul.f32 %v3644_v28, %v2944_v15  ;;  %v5540_v61 = vld [vmem:[%s5670_s26 + $0x20] sm:$0xff] }
 0x67c   : > { %v3795_v51 = vpack.c.bf16 %v3743_v57, %v3743_v57  ;;  %v4658_v36 = vpop.f32.mrf.mxu1 }
 0x67d   : > { %v3745_v16 = vmul.f32 %v3645_v46, %v2945_v18  ;;  %v4094_v42 = vadd.f32 %v4657_v55, %v9130_v31  ;;  %v3796_v21 = vpack.c.bf16 %v3744_v32, %v3744_v32 }
 0x67e   : > { %v4749_v22 = vpop.f32.mrf.mxu0  ;;  %4187 = vmatprep.mubr.bf16.mxu1 %v3795_v51  ;;  %v4659_v60 = vpop.f32.mrf.mxu1  ;;  %v5541_v51 = vld [vmem:[%s5670_s26 + $0x28] sm:$0xff] }
 0x67f   : > { %4188 = vmatmul.mubr.bf16.gmra.mxu1 %v3794_v45  ;;  %v3797_v50 = vpack.c.bf16 %v3745_v16, %v3745_v16  ;;  %v4660_v5 = vadd.f32 %v4659_v60, %v4658_v36 }
 0x680   : > { %v4750_v38 = vpop.f32.mrf.mxu0 }
 0x681   : > { %v4751_v25 = vadd.f32 %v4750_v38, %v4749_v22  ;;  %4323 = vmatprep.mubr.bf16.mxu1 %v3797_v50  ;;  %v4097_v0 = vadd.f32 %v4660_v5, %v9130_v31 }
 0x682   : > { %v4752_v1 = vpop.f32.mrf.mxu0 }
 0x683   : > { %v4230_v56 = vadd.f32 %v4751_v25, %v4094_v42 }
 0x684   : > { %v4753_v8 = vpop.f32.mrf.mxu0 }
 0x685   : > { %v4331_v30 = vadd.f32 %v5536_v14, %v4230_v56  ;;  %v4754_v26 = vadd.f32 %v4753_v8, %v4752_v1 }
 0x687   : > { %4356 = vst [vmem:[%s9140_s12] sm:$0xff] %v4331_v30  ;;  %v4233_v34 = vadd.f32 %v4754_v26, %v4097_v0  ;;  %4324 = vmatmul.mubr.bf16.vlgmr.msra.gmra.mxu1 %v3796_v21  ;;  %v5542_v0 = vld [vmem:[%s5670_s26 + $0x30] sm:$0xff]  ;;  %v5543_v26 = vld [vmem:[%s5670_s26 + $0x38] sm:$0xff] }
 0x689   : > { %v4332_v20 = vadd.f32 %v5537_v19, %v4233_v34 }
 0x68a   : > { %v4661_v17 = vpop.f32.mrf.mxu1 }
 0x68b   : > { %4357 = vst [vmem:[%s9140_s12 + $0x8] sm:$0xff] %v4332_v20 }
 0x68c   : > { %v4662_v7 = vpop.f32.mrf.mxu1 }
 0x68d   : > { %v4755_v9 = vpop.f32.mrf.mxu0  ;;  %v4663_v24 = vadd.f32 %v4662_v7, %v4661_v17 }
 0x68e   : > { %v4664_v40 = vpop.f32.mrf.mxu1 }
 0x68f   : > { %v4102_v43 = vadd.f32 %v4663_v24, %v9130_v31  ;;  %v4756_v35 = vpop.f32.mrf.mxu0 }
 0x690   : > { %v4757_v6 = vadd.f32 %v4756_v35, %v4755_v9  ;;  %v4665_v41 = vpop.f32.mrf.mxu1 }
 0x691   : > { %v4758_v59 = vpop.f32.mrf.mxu0  ;;  %v4666_v29 = vadd.f32 %v4665_v41, %v4664_v40 }
 0x692   : > { %v4238_v39 = vadd.f32 %v4757_v6, %v4102_v43 }
 0x693   : > { %v4105_v62 = vadd.f32 %v4666_v29, %v9130_v31  ;;  %v4759_v37 = vpop.f32.mrf.mxu0 }
 0x694   : > { %v4333_v27 = vadd.f32 %v5538_v13, %v4238_v39  ;;  %v4760_v23 = vadd.f32 %v4759_v37, %v4758_v59  ;;  %v5544_v39 = vld [vmem:[%s5670_s26 + $0x40] sm:$0xff] }
 0x696   : > { %4358 = vst [vmem:[%s9140_s12 + $0x10] sm:$0xff] %v4333_v27  ;;  %v4241_v48 = vadd.f32 %v4760_v23, %v4105_v62  ;;  %v5545_v27 = vld [vmem:[%s5670_s26 + $0x48] sm:$0xff] }
 0x698   : > { %v4334_v52 = vadd.f32 %v5539_v33, %v4241_v48 }
 0x69a   : > { %4359 = vst [vmem:[%s9140_s12 + $0x18] sm:$0xff] %v4334_v52 }
 0x6a0   : > { %v4667_v49 = vpop.f32.mrf.mxu1 }
 0x6a2   : > { %v4668_v11 = vpop.f32.mrf.mxu1 }
 0x6a3   : > { %v4761_v47 = vpop.f32.mrf.mxu0  ;;  %v4669_v44 = vadd.f32 %v4668_v11, %v4667_v49 }
 0x6a4   : > { %v4670_v58 = vpop.f32.mrf.mxu1 }
 0x6a5   : > { %v4110_v63 = vadd.f32 %v4669_v44, %v9130_v31  ;;  %v4762_v54 = vpop.f32.mrf.mxu0 }
 0x6a6   : > { %v4763_v3 = vadd.f32 %v4762_v54, %v4761_v47  ;;  %v4671_v10 = vpop.f32.mrf.mxu1 }
 0x6a7   : > { %v4764_v53 = vpop.f32.mrf.mxu0  ;;  %v4672_v12 = vadd.f32 %v4671_v10, %v4670_v58 }
 0x6a8   : > { %v4246_v4 = vadd.f32 %v4763_v3, %v4110_v63 }
 0x6a9   : > { %v4113_v2 = vadd.f32 %v4672_v12, %v9130_v31  ;;  %v4765_v57 = vpop.f32.mrf.mxu0 }
 0x6aa   : > { %v4335_v18 = vadd.f32 %v5540_v61, %v4246_v4  ;;  %v4766_v46 = vadd.f32 %v4765_v57, %v4764_v53  ;;  %v5546_v4 = vld [vmem:[%s5670_s26 + $0x50] sm:$0xff] }
 0x6ac   : > { %4360 = vst [vmem:[%s9140_s12 + $0x20] sm:$0xff] %v4335_v18  ;;  %v4249_v55 = vadd.f32 %v4766_v46, %v4113_v2  ;;  %v5547_v18 = vld [vmem:[%s5670_s26 + $0x58] sm:$0xff] }
 0x6ae   : > { %v4336_v36 = vadd.f32 %v5541_v51, %v4249_v55 }
 0x6b0   : > { %4361 = vst [vmem:[%s9140_s12 + $0x28] sm:$0xff] %v4336_v36 }
 0x6b6   : > { %v4673_v28 = vpop.f32.mrf.mxu1 }
 0x6b8   : > { %v4674_v45 = vpop.f32.mrf.mxu1 }
 0x6b9   : > { %v4767_v16 = vpop.f32.mrf.mxu0  ;;  %v4675_v22 = vadd.f32 %v4674_v45, %v4673_v28 }
 0x6ba   : > { %v4676_v42 = vpop.f32.mrf.mxu1 }
 0x6bb   : > { %v4118_v60 = vadd.f32 %v4675_v22, %v9130_v31  ;;  %v4768_v15 = vpop.f32.mrf.mxu0 }
 0x6bc   : > { %v4769_v50 = vadd.f32 %v4768_v15, %v4767_v16  ;;  %v4677_v38 = vpop.f32.mrf.mxu1 }
 0x6bd   : > { %v4770_v5 = vpop.f32.mrf.mxu0  ;;  %v4678_v25 = vadd.f32 %v4677_v38, %v4676_v42 }
 0x6be   : > { %v4254_v32 = vadd.f32 %v4769_v50, %v4118_v60 }
 0x6bf   : > { %v4121_v1 = vadd.f32 %v4678_v25, %v9130_v31  ;;  %v4771_v56 = vpop.f32.mrf.mxu0 }
 0x6c0   : > { %v4337_v8 = vadd.f32 %v5542_v0, %v4254_v32  ;;  %v4772_v14 = vadd.f32 %v4771_v56, %v4770_v5  ;;  %v5548_v32 = vld [vmem:[%s5670_s26 + $0x60] sm:$0xff] }
 0x6c2   : > { %4362 = vst [vmem:[%s9140_s12 + $0x30] sm:$0xff] %v4337_v8  ;;  %v4257_v30 = vadd.f32 %v4772_v14, %v4121_v1  ;;  %v5549_v8 = vld [vmem:[%s5670_s26 + $0x68] sm:$0xff] }
 0x6c4   : > { %v4338_v21 = vadd.f32 %v5543_v26, %v4257_v30 }
 0x6c6   : > { %4363 = vst [vmem:[%s9140_s12 + $0x38] sm:$0xff] %v4338_v21 }
 0x6c7   : > { %v4679_v34 = vpop.f32.mrf.mxu1 }
 0x6c9   : > { %v4680_v19 = vpop.f32.mrf.mxu1 }
 0x6ca   : > { %v4681_v20 = vadd.f32 %v4680_v19, %v4679_v34 }
 0x6cb   : > { %v4682_v17 = vpop.f32.mrf.mxu1 }
 0x6cc   : > { %v4126_v24 = vadd.f32 %v4681_v20, %v9130_v31 }
 0x6cd   : > { %v4683_v9 = vpop.f32.mrf.mxu1 }
 0x6ce   : > { %v4684_v40 = vadd.f32 %v4683_v9, %v4682_v17 }
 0x6cf   : > { %v4773_v7 = vpop.f32.mrf.mxu0 }
 0x6d0   : > { %v4129_v59 = vadd.f32 %v4684_v40, %v9130_v31 }
 0x6d1   : > { %v4774_v43 = vpop.f32.mrf.mxu0 }
 0x6d2   : > { %v4775_v35 = vadd.f32 %v4774_v43, %v4773_v7 }
 0x6d3   : > { %v4776_v6 = vpop.f32.mrf.mxu0 }
 0x6d4   : > { %v4262_v41 = vadd.f32 %v4775_v35, %v4126_v24 }
 0x6d5   : > { %v4777_v29 = vpop.f32.mrf.mxu0 }
 0x6d6   : > { %v4339_v62 = vadd.f32 %v5544_v39, %v4262_v41  ;;  %v4778_v37 = vadd.f32 %v4777_v29, %v4776_v6  ;;  %v5550_v41 = vld [vmem:[%s5670_s26 + $0x70] sm:$0xff] }
 0x6d8   : > { %4364 = vst [vmem:[%s9140_s12 + $0x40] sm:$0xff] %v4339_v62  ;;  %v4265_v13 = vadd.f32 %v4778_v37, %v4129_v59  ;;  %v5551_v37 = vld [vmem:[%s5670_s26 + $0x78] sm:$0xff] }
 0x6da   : > { %v4340_v23 = vadd.f32 %v5545_v27, %v4265_v13 }
 0x6dc   : > { %4365 = vst [vmem:[%s9140_s12 + $0x48] sm:$0xff] %v4340_v23 }
 0x6e0   : > { %v4685_v48 = vpop.f32.mrf.mxu1 }
 0x6e2   : > { %v4686_v33 = vpop.f32.mrf.mxu1 }
 0x6e3   : > { %v4779_v52 = vpop.f32.mrf.mxu0  ;;  %v4687_v49 = vadd.f32 %v4686_v33, %v4685_v48 }
 0x6e4   : > { %v4688_v11 = vpop.f32.mrf.mxu1 }
 0x6e5   : > { %v4134_v47 = vadd.f32 %v4687_v49, %v9130_v31  ;;  %v4780_v44 = vpop.f32.mrf.mxu0 }
 0x6e6   : > { %v4781_v58 = vadd.f32 %v4780_v44, %v4779_v52  ;;  %v4689_v63 = vpop.f32.mrf.mxu1 }
 0x6e7   : > { %v4782_v54 = vpop.f32.mrf.mxu0  ;;  %v4690_v3 = vadd.f32 %v4689_v63, %v4688_v11 }
 0x6e8   : > { %v4270_v10 = vadd.f32 %v4781_v58, %v4134_v47 }
 0x6e9   : > { %v4137_v53 = vadd.f32 %v4690_v3, %v9130_v31  ;;  %v4783_v12 = vpop.f32.mrf.mxu0  ;;  %v5552_v3 = vld [vmem:[%s5670_s26 + $0x80] sm:$0xff] }
 0x6ea   : > { %v4341_v2 = vadd.f32 %v5546_v4, %v4270_v10  ;;  %v4784_v57 = vadd.f32 %v4783_v12, %v4782_v54 }
 0x6ec   : > { %4366 = vst [vmem:[%s9140_s12 + $0x50] sm:$0xff] %v4341_v2  ;;  %v4273_v61 = vadd.f32 %v4784_v57, %v4137_v53 }
 0x6ee   : > { %v4342_v46 = vadd.f32 %v5547_v18, %v4273_v61 }
 0x6f0   : > { %4367 = vst [vmem:[%s9140_s12 + $0x58] sm:$0xff] %v4342_v46  ;;  %v5553_v46 = vld [vmem:[%s5670_s26 + $0x88] sm:$0xff] }
 0x6f5   : > { %v4691_v55 = vpop.f32.mrf.mxu1 }
 0x6f7   : > { %v4692_v51 = vpop.f32.mrf.mxu1 }
 0x6f8   : > { %v4785_v36 = vpop.f32.mrf.mxu0  ;;  %v4693_v28 = vadd.f32 %v4692_v51, %v4691_v55 }
 0x6f9   : > { %v4694_v45 = vpop.f32.mrf.mxu1 }
 0x6fa   : > { %v4142_v16 = vadd.f32 %v4693_v28, %v9130_v31  ;;  %v4786_v22 = vpop.f32.mrf.mxu0 }
 0x6fb   : > { %v4787_v42 = vadd.f32 %v4786_v22, %v4785_v36  ;;  %v4695_v60 = vpop.f32.mrf.mxu1 }
 0x6fc   : > { %v4788_v15 = vpop.f32.mrf.mxu0  ;;  %v4696_v50 = vadd.f32 %v4695_v60, %v4694_v45 }
 0x6fd   : > { %v4278_v38 = vadd.f32 %v4787_v42, %v4142_v16 }
 0x6fe   : > { %v4145_v5 = vadd.f32 %v4696_v50, %v9130_v31  ;;  %v4789_v25 = vpop.f32.mrf.mxu0  ;;  %v5554_v50 = vld [vmem:[%s5670_s26 + $0x90] sm:$0xff] }
 0x6ff   : > { %v4343_v1 = vadd.f32 %v5548_v32, %v4278_v38  ;;  %v4790_v56 = vadd.f32 %v4789_v25, %v4788_v15 }
 0x701   : > { %4368 = vst [vmem:[%s9140_s12 + $0x60] sm:$0xff] %v4343_v1  ;;  %v4281_v0 = vadd.f32 %v4790_v56, %v4145_v5 }
 0x703   : > { %v4344_v14 = vadd.f32 %v5549_v8, %v4281_v0  ;;  %v5555_v8 = vld [vmem:[%s5670_s26 + $0x98] sm:$0xff] }
 0x705   : > { %4369 = vst [vmem:[%s9140_s12 + $0x68] sm:$0xff] %v4344_v14 }
 0x706   : > { %v4697_v30 = vpop.f32.mrf.mxu1 }
 0x708   : > { %v4698_v26 = vpop.f32.mrf.mxu1 }
 0x709   : > { %v4699_v21 = vadd.f32 %v4698_v26, %v4697_v30 }
 0x70a   : > { %v4700_v34 = vpop.f32.mrf.mxu1 }
 0x70b   : > { %v4150_v17 = vadd.f32 %v4699_v21, %v9130_v31 }
 0x70c   : > { %v4701_v20 = vpop.f32.mrf.mxu1 }
 0x70d   : > { %v4791_v19 = vpop.f32.mrf.mxu0  ;;  %v4702_v7 = vadd.f32 %v4701_v20, %v4700_v34 }
 0x70f   : > { %v4792_v9 = vpop.f32.mrf.mxu0  ;;  %v4153_v35 = vadd.f32 %v4702_v7, %v9130_v31 }
 0x710   : > { %v4793_v24 = vadd.f32 %v4792_v9, %v4791_v19 }
 0x711   : > { %v4794_v40 = vpop.f32.mrf.mxu0 }
 0x712   : > { %v4286_v43 = vadd.f32 %v4793_v24, %v4150_v17 }
 0x713   : > { %v4795_v6 = vpop.f32.mrf.mxu0 }
 0x714   : > { %v4345_v59 = vadd.f32 %v5550_v41, %v4286_v43  ;;  %v4796_v29 = vadd.f32 %v4795_v6, %v4794_v40  ;;  %v5556_v43 = vld [vmem:[%s5670_s26 + $0xa0] sm:$0xff] }
 0x716   : > { %4370 = vst [vmem:[%s9140_s12 + $0x70] sm:$0xff] %v4345_v59  ;;  %v4289_v39 = vadd.f32 %v4796_v29, %v4153_v35 }
 0x717   : > { %v4703_v62 = vpop.f32.mrf.mxu1 }
 0x718   : > { %v4346_v13 = vadd.f32 %v5551_v37, %v4289_v39  ;;  %v5557_v39 = vld [vmem:[%s5670_s26 + $0xa8] sm:$0xff] }
 0x719   : > { %v4704_v23 = vpop.f32.mrf.mxu1 }
 0x71a   : > { %v4797_v27 = vpop.f32.mrf.mxu0  ;;  %4371 = vst [vmem:[%s9140_s12 + $0x78] sm:$0xff] %v4346_v13  ;;  %v4705_v48 = vadd.f32 %v4704_v23, %v4703_v62 }
 0x71b   : > { %v4706_v52 = vpop.f32.mrf.mxu1 }
 0x71c   : > { %v4798_v33 = vpop.f32.mrf.mxu0  ;;  %v4158_v49 = vadd.f32 %v4705_v48, %v9130_v31 }
 0x71d   : > { %v4799_v11 = vadd.f32 %v4798_v33, %v4797_v27  ;;  %v4707_v44 = vpop.f32.mrf.mxu1 }
 0x71e   : > { %v4800_v47 = vpop.f32.mrf.mxu0  ;;  %v4708_v63 = vadd.f32 %v4707_v44, %v4706_v52 }
 0x71f   : > { %v4294_v58 = vadd.f32 %v4799_v11, %v4158_v49 }
 0x720   : > { %v4801_v54 = vpop.f32.mrf.mxu0  ;;  %v4161_v53 = vadd.f32 %v4708_v63, %v9130_v31  ;;  %v4709_v4 = vpop.f32.mrf.mxu1  ;;  %v5558_v63 = vld [vmem:[%s5670_s26 + $0xb0] sm:$0xff] }
 0x721   : > { %v4347_v10 = vadd.f32 %v5552_v3, %v4294_v58  ;;  %v4802_v12 = vadd.f32 %v4801_v54, %v4800_v47 }
 0x722   : > { %v4803_v57 = vpop.f32.mrf.mxu0  ;;  %v4710_v61 = vpop.f32.mrf.mxu1 }
 0x723   : > { %4372 = vst [vmem:[%s9140_s12 + $0x80] sm:$0xff] %v4347_v10  ;;  %v4297_v2 = vadd.f32 %v4802_v12, %v4161_v53  ;;  %v4711_v18 = vadd.f32 %v4710_v61, %v4709_v4  ;;  %v5559_v4 = vld [vmem:[%s5670_s26 + $0xb8] sm:$0xff] }
 0x724   : > { %v4804_v51 = vpop.f32.mrf.mxu0  ;;  %v4712_v36 = vpop.f32.mrf.mxu1 }
 0x725   : > { %v4348_v55 = vadd.f32 %v5553_v46, %v4297_v2  ;;  %v4166_v28 = vadd.f32 %v4711_v18, %v9130_v31  ;;  %v4805_v45 = vadd.f32 %v4804_v51, %v4803_v57 }
 0x726   : > { %v4806_v16 = vpop.f32.mrf.mxu0  ;;  %v4713_v22 = vpop.f32.mrf.mxu1 }
 0x727   : > { %4373 = vst [vmem:[%s9140_s12 + $0x88] sm:$0xff] %v4348_v55  ;;  %v4302_v42 = vadd.f32 %v4805_v45, %v4166_v28  ;;  %v4714_v60 = vadd.f32 %v4713_v22, %v4712_v36  ;;  %v5560_v22 = vld [vmem:[%s5670_s26 + $0xc0] sm:$0xf] }
 0x728   : > { %v4807_v15 = vpop.f32.mrf.mxu0  ;;  %v4715_v32 = vpop.f32.mrf.mxu1 }
 0x729   : > { %v4349_v38 = vadd.f32 %v5554_v50, %v4302_v42  ;;  %v4169_v5 = vadd.f32 %v4714_v60, %v9130_v31  ;;  %v4808_v25 = vadd.f32 %v4807_v15, %v4806_v16 }
 0x72a   : > { %v4716_v56 = vpop.f32.mrf.mxu1 }
 0x72b   : > { %4374 = vst [vmem:[%s9140_s12 + $0x90] sm:$0xff] %v4349_v38  ;;  %v4305_v1 = vadd.f32 %v4808_v25, %v4169_v5  ;;  %v4717_v0 = vadd.f32 %v4716_v56, %v4715_v32 }
 0x72c   : > { %v4718_v26 = vpop.f32.mrf.mxu1 }
 0x72d   : > { %v4350_v14 = vadd.f32 %v5555_v8, %v4305_v1  ;;  %v4809_v30 = vpop.f32.mrf.mxu0  ;;  %v4174_v21 = vadd.f32 %v4717_v0, %v9130_v31 }
 0x72e   : > { %v4719_v19 = vpop.f32.mrf.mxu1 }
 0x72f   : > { %4375 = vst [vmem:[%s9140_s12 + $0x98] sm:$0xff] %v4350_v14  ;;  %v4810_v34 = vpop.f32.mrf.mxu0  ;;  %v4720_v17 = vadd.f32 %v4719_v19, %v4718_v26 }
 0x730   : > { %v4811_v20 = vadd.f32 %v4810_v34, %v4809_v30 }
 0x731   : > { %v4812_v7 = vpop.f32.mrf.mxu0  ;;  %v4177_v24 = vadd.f32 %v4720_v17, %v9130_v31 }
 0x732   : > { %v4310_v9 = vadd.f32 %v4811_v20, %v4174_v21 }
 0x733   : > { %v4813_v40 = vpop.f32.mrf.mxu0 }
 0x734   : > { %v4351_v35 = vadd.f32 %v5556_v43, %v4310_v9  ;;  %v4814_v6 = vadd.f32 %v4813_v40, %v4812_v7 }
 0x735   : > { %v4721_v41 = vpop.f32.mrf.mxu1 }
 0x736   : > { %4376 = vst [vmem:[%s9140_s12 + $0xa0] sm:$0xff] %v4351_v35  ;;  %v4313_v59 = vadd.f32 %v4814_v6, %v4177_v24 }
 0x737   : > { %v4722_v29 = vpop.f32.mrf.mxu1 }
 0x738   : > { %v4352_v62 = vadd.f32 %v5557_v39, %v4313_v59  ;;  %v4815_v37 = vpop.f32.mrf.mxu0  ;;  %v4723_v13 = vadd.f32 %v4722_v29, %v4721_v41 }
 0x739   : > { %v4724_v27 = vpop.f32.mrf.mxu1 }
 0x73a   : > { %4377 = vst [vmem:[%s9140_s12 + $0xa8] sm:$0xff] %v4352_v62  ;;  %v4182_v23 = vadd.f32 %v4723_v13, %v9130_v31  ;;  %v4816_v48 = vpop.f32.mrf.mxu0 }
 0x73b   : > { %v4817_v33 = vadd.f32 %v4816_v48, %v4815_v37  ;;  %v4725_v52 = vpop.f32.mrf.mxu1 }
 0x73c   : > { %v4818_v49 = vpop.f32.mrf.mxu0  ;;  %v4726_v11 = vadd.f32 %v4725_v52, %v4724_v27 }
 0x73d   : > { %v4318_v47 = vadd.f32 %v4817_v33, %v4182_v23 }
 0x73e   : > { %v4185_v44 = vadd.f32 %v4726_v11, %v9130_v31  ;;  %v4819_v58 = vpop.f32.mrf.mxu0 }
 0x73f   : > { %v4353_v54 = vadd.f32 %v5558_v63, %v4318_v47  ;;  %v4820_v3 = vadd.f32 %v4819_v58, %v4818_v49  ;;  %v4727_v10 = vpop.f32.mrf.mxu1 }
 0x741   : > { %4378 = vst [vmem:[%s9140_s12 + $0xb0] sm:$0xff] %v4353_v54  ;;  %v4321_v53 = vadd.f32 %v4820_v3, %v4185_v44  ;;  %v4728_v12 = vpop.f32.mrf.mxu1 }
 0x742   : > { %v4729_v18 = vadd.f32 %v4728_v12, %v4727_v10 }
 0x743   : > { %v4354_v2 = vadd.f32 %v5559_v4, %v4321_v53  ;;  %v4730_v57 = vpop.f32.mrf.mxu1 }
 0x744   : > { %v4190_v51 = vadd.f32 %v4729_v18, %v9130_v31 }
 0x745   : > { %4379 = vst [vmem:[%s9140_s12 + $0xb8] sm:$0xff] %v4354_v2  ;;  %v4731_v61 = vpop.f32.mrf.mxu1 }
 0x747   : > { %v4821_v46 = vpop.f32.mrf.mxu1 }
 0x749   : > { %v4822_v55 = vpop.f32.mrf.mxu1 }
 0x74a   : > { %v4823_v36 = vadd.f32 %v4822_v55, %v4821_v46 }
 0x74b   : > { %v4824_v28 = vpop.f32.mrf.mxu1 }
 0x74c   : > { %v4326_v45 = vadd.f32 %v4823_v36, %v4190_v51 }
 0x74d   : > { %v4825_v16 = vpop.f32.mrf.mxu1 }
 0x74e   : > { %v4355_v42 = vadd.f32 %v5560_v22, %v4326_v45 }
 0x750   : > { %4380 = vst [vmem:[%s9140_s12 + $0xc0] sm:$0xf] %v4355_v42 }
 0x751 PF: > { %s19_s30 = sadd.s32 1, %s5567_s30  }
 0x752   : > { %p16_p4 = scmp.ge.s32.totalorder %s19_s30, 4  }
 0x754   :  { %18 = sbr.rel (!%p16_p4) target bundleno = 1 (0x1), region = 86 }

</bundles_post_ra>
